<compile_context>
chip_gen: v7x
topology: tpu7x:2x2x1
jax: 0.10.0
libtpu: 0.0.40
codegen_flags: <defaults>
</compile_context>

<pallas_src>
import functools
import math

import jax
import jax.numpy as jnp
from jax.experimental import pallas as pl
from jax.experimental.pallas import tpu as pltpu

# ----------------------------------------------------------------------------
# Pallas kernel: fused MLP (1..L chained matmuls) with bias + optional ReLU.
# Grid = (M/TM,).  Each layer's K and N are full blocks (weights resident in
# VMEM, grid-invariant index_map), so there is no reduction grid axis; the MXU
# accumulates in f32 and the epilogue is applied on the output tile.
# ----------------------------------------------------------------------------
TM_CONV = 512        # big M tiles for the HBM-bound conv matmuls
TM_HEAD = 128        # M grid for heads -> v7x megacore can split across TCs
VMEM_LIMIT_BYTES = 32 * 1024 * 1024


def _round_up(v, m):
    return ((v + m - 1) // m) * m


def _choose_m_tiling(m, tm_max):
    mp = _round_up(max(m, 16), 16)
    if mp <= tm_max:
        return mp, mp
    return tm_max, _round_up(m, tm_max)


def _fused_mlp_kernel(*refs, relus):
    """refs = (x, w1, b1, ..., wL, bL, out).  Chained MXU matmuls; bf16
    operands, f32 accumulate; intermediates stay in vregs/VMEM."""
    x_ref, o_ref = refs[0], refs[-1]
    n_layers = len(relus)
    h = x_ref[...]
    for layer in range(n_layers):
        w_ref = refs[1 + 2 * layer]
        b_ref = refs[2 + 2 * layer]
        acc = jnp.dot(h, w_ref[...], preferred_element_type=jnp.float32)
        acc = acc + b_ref[...]
        if relus[layer]:
            acc = jnp.maximum(acc, 0.0)
        h = acc.astype(jnp.bfloat16) if layer + 1 < n_layers else acc
    o_ref[...] = h.astype(o_ref.dtype)


def fused_mlp(x, layers, *, out_dtype=jnp.float32, tm=TM_HEAD):
    """y = (fc_L o ... o fc_1)(x).  layers = [(w (K,N) bf16, b (N,) f32, relu)]."""
    M, K = x.shape
    TM, Mp = _choose_m_tiling(M, tm)
    xp = x.astype(jnp.bfloat16)
    if Mp != M:
        xp = jnp.pad(xp, ((0, Mp - M), (0, 0)))

    relus = tuple(bool(r) for (_, _, r) in layers)
    n_out = layers[-1][0].shape[1]

    in_specs = [pl.BlockSpec((TM, K), lambda i: (i, 0))]
    operands = [xp]
    for (w, b, _) in layers:
        kl, nl = w.shape
        in_specs.append(pl.BlockSpec((kl, nl), lambda i: (0, 0)))
        in_specs.append(pl.BlockSpec((1, nl), lambda i: (0, 0)))
        operands.append(w.astype(jnp.bfloat16))
        operands.append(b.astype(jnp.float32).reshape(1, nl))

    out = pl.pallas_call(
        functools.partial(_fused_mlp_kernel, relus=relus),
        out_shape=jax.ShapeDtypeStruct((Mp, n_out), out_dtype),
        grid_spec=pltpu.PrefetchScalarGridSpec(
            num_scalar_prefetch=0,
            grid=(Mp // TM,),
            in_specs=in_specs,
            out_specs=pl.BlockSpec((TM, n_out), lambda i: (i, 0)),
        ),
        compiler_params=pltpu.CompilerParams(
            dimension_semantics=("parallel",),
            vmem_limit_bytes=VMEM_LIMIT_BYTES),
    )(*operands)
    return out[:M] if Mp != M else out


def pallas_linear(x, w_bf16, b_f32, relu=False, out_dtype=jnp.float32,
                  tm=TM_CONV):
    """y = act(x @ w + b) as a single-layer fused_mlp call."""
    return fused_mlp(x, [(w_bf16, b_f32, relu)], out_dtype=out_dtype, tm=tm)


# ----------------------------------------------------------------------------
# Conv2d = im2col (glue, bf16) + Pallas matmul (hot path).
# ----------------------------------------------------------------------------
def _im2col(x, kh, kw, stride, padding):
    N, H, W, Cin = x.shape
    Ho = (H + 2 * padding - kh) // stride + 1
    Wo = (W + 2 * padding - kw) // stride + 1
    if kh == 1 and kw == 1 and stride == 1 and padding == 0:
        return x.reshape(N * H * W, Cin), Ho, Wo          # 1x1: no im2col copy
    xp = jnp.pad(x, ((0, 0), (padding, padding), (padding, padding), (0, 0)))
    cols = []
    for i in range(kh):
        for j in range(kw):
            cols.append(xp[:, i:i + stride * (Ho - 1) + 1:stride,
                           j:j + stride * (Wo - 1) + 1:stride, :])
    patches = jnp.concatenate(cols, axis=-1).reshape(N * Ho * Wo, kh * kw * Cin)
    return patches, Ho, Wo


def conv2d(x, cp, stride=1, padding=0, relu=False, out_dtype=jnp.bfloat16):
    """x: (N,H,W,Cin) NHWC;  cp['w']: (kh,kw,Cin,Cout) bf16, cp['b']: f32."""
    w, b = cp["w"], cp["b"]
    kh, kw, Cin, Cout = w.shape
    N = x.shape[0]
    patches, Ho, Wo = _im2col(x, kh, kw, stride, padding)
    out = pallas_linear(patches, w.reshape(kh * kw * Cin, Cout), b,
                        relu=relu, out_dtype=out_dtype)
    return out.reshape(N, Ho, Wo, Cout)


# ----------------------------------------------------------------------------
# Mini Faster R-CNN pieces (structure mirrors torchvision, reduced width).
# ----------------------------------------------------------------------------
NUM_CLASSES = 2
FPN_CH = 32
ANCHOR_SIZES = [[32.0], [64.0]]                # 2 FPN levels in the mini model
ASPECT_RATIOS = [[0.5, 1.0, 2.0]] * 2
NUM_ANCHORS = 3                                # per spatial location
POOL = 7
REP_SIZE = 64
PRE_TOPK = 64
POST_TOPK = 32
HEAD_OUT = NUM_CLASSES * 5                     # [cls logits | box deltas]
HEAD_OUT_PAD = 128                             # lane-dense ROI head output
RPN_HEAD_OUT = NUM_ANCHORS * 5                 # [obj (A) | deltas (A*4)]
RPN_HEAD_PAD = 128                             # lane-dense RPN head output
BBOX_XFORM_CLIP = math.log(1000.0 / 16.0)


def init_params(key):
    def nrm(k, shape, scale=0.05):
        return scale * jax.random.normal(k, shape, dtype=jnp.float32)

    def conv_param(k, kh, kw, cin, cout):
        return {"w": nrm(k, (kh, kw, cin, cout)).astype(jnp.bfloat16),
                "b": jnp.zeros((cout,), jnp.float32)}

    ks = list(jax.random.split(key, 16))
    p = {}
    p["stem1"] = conv_param(ks[0], 3, 3, 3, 16)
    p["stem2"] = conv_param(ks[1], 3, 3, 16, 32)
    p["stem3"] = conv_param(ks[2], 3, 3, 32, 64)
    p["lat2"] = conv_param(ks[3], 1, 1, 32, FPN_CH)
    p["lat3"] = conv_param(ks[4], 1, 1, 64, FPN_CH)
    p["out2"] = conv_param(ks[5], 3, 3, FPN_CH, FPN_CH)
    p["out3"] = conv_param(ks[6], 3, 3, FPN_CH, FPN_CH)
    p["rpn_conv"] = conv_param(ks[7], 3, 3, FPN_CH, FPN_CH)

    # Fused + lane-dense RPN prediction head: [cls (A) | bbox (A*4)] then
    # zero-pad Cout 15 -> 128 so the fused RPN kernel's output slab is 128-wide.
    rpn_cls_w = nrm(ks[8], (1, 1, FPN_CH, NUM_ANCHORS))
    rpn_box_w = nrm(ks[9], (1, 1, FPN_CH, NUM_ANCHORS * 4))
    rpn_head_w = jnp.concatenate([rpn_cls_w, rpn_box_w],
                                 axis=-1).reshape(FPN_CH, RPN_HEAD_OUT)
    rpn_head_w = jnp.pad(rpn_head_w, ((0, 0), (0, RPN_HEAD_PAD - RPN_HEAD_OUT)))
    p["rpn_head_w"] = rpn_head_w.astype(jnp.bfloat16)
    p["rpn_head_b"] = jnp.zeros((RPN_HEAD_PAD,), jnp.float32)

    # Fused ROI box head weights (pre-cast bf16, last layer pre-padded to 128).
    p["fc1_w"] = nrm(ks[10], (POOL * POOL * FPN_CH, REP_SIZE)).astype(jnp.bfloat16)
    p["fc1_b"] = jnp.zeros((REP_SIZE,), jnp.float32)
    p["fc2_w"] = nrm(ks[11], (REP_SIZE, REP_SIZE)).astype(jnp.bfloat16)
    p["fc2_b"] = jnp.zeros((REP_SIZE,), jnp.float32)
    cls_w = nrm(ks[12], (REP_SIZE, NUM_CLASSES))
    box_w = nrm(ks[13], (REP_SIZE, NUM_CLASSES * 4))
    head_w = jnp.concatenate([cls_w, box_w], axis=-1)               # (REP, 10)
    head_w = jnp.pad(head_w, ((0, 0), (0, HEAD_OUT_PAD - HEAD_OUT)))
    p["head_w"] = head_w.astype(jnp.bfloat16)
    p["head_b"] = jnp.zeros((HEAD_OUT_PAD,), jnp.float32)
    return p


def generate_anchors(feature_shapes, strides):
    """torchvision AnchorGenerator semantics; ordering (H, W, A) per level."""
    per_level = []
    for (Hf, Wf), stride, sizes, ratios in zip(
            feature_shapes, strides, ANCHOR_SIZES, ASPECT_RATIOS):
        scales = jnp.asarray(sizes, jnp.float32)
        ratios = jnp.asarray(ratios, jnp.float32)
        h_r = jnp.sqrt(ratios)
        w_r = 1.0 / h_r
        ws = (w_r[:, None] * scales[None, :]).reshape(-1)
        hs = (h_r[:, None] * scales[None, :]).reshape(-1)
        base = jnp.stack([-ws, -hs, ws, hs], axis=1) / 2.0          # (A,4)
        sx = jnp.arange(Wf, dtype=jnp.float32) * stride
        sy = jnp.arange(Hf, dtype=jnp.float32) * stride
        gy, gx = jnp.meshgrid(sy, sx, indexing="ij")
        shifts = jnp.stack([gx.ravel(), gy.ravel(), gx.ravel(), gy.ravel()], 1)
        per_level.append((shifts[:, None, :] + base[None, :, :]).reshape(-1, 4))
    return jnp.concatenate(per_level, axis=0)


def decode_boxes(deltas, boxes, weights):
    """Batched box decoding; deltas (..., 4), boxes broadcastable (..., 4)."""
    wx, wy, ww, wh = weights
    w = boxes[..., 2] - boxes[..., 0]
    h = boxes[..., 3] - boxes[..., 1]
    cx = boxes[..., 0] + 0.5 * w
    cy = boxes[..., 1] + 0.5 * h
    dx = deltas[..., 0] / wx
    dy = deltas[..., 1] / wy
    dw = jnp.minimum(deltas[..., 2] / ww, BBOX_XFORM_CLIP)
    dh = jnp.minimum(deltas[..., 3] / wh, BBOX_XFORM_CLIP)
    pcx = dx * w + cx
    pcy = dy * h + cy
    pw = jnp.exp(dw) * w
    ph = jnp.exp(dh) * h
    return jnp.stack([pcx - 0.5 * pw, pcy - 0.5 * ph,
                      pcx + 0.5 * pw, pcy + 0.5 * ph], axis=-1)


def clip_boxes(boxes, hw):
    h, w = hw
    return jnp.stack([jnp.clip(boxes[..., 0], 0.0, w),
                      jnp.clip(boxes[..., 1], 0.0, h),
                      jnp.clip(boxes[..., 2], 0.0, w),
                      jnp.clip(boxes[..., 3], 0.0, h)], axis=-1)


def roi_align(feat, boxes, spatial_scale, out_size=POOL):
    """Batched RoIAlign (sampling_ratio=1, aligned=False) via bilinear
    interpolation matrices + two einsum matmuls (no XLA gather)."""
    # TODO(synk): at torchvision scale replace with a Pallas DMA-gather kernel
    #             (scalar-prefetched box bins) or fuse into the ROI box head.
    _, H, W, _ = feat.shape
    b = boxes * spatial_scale
    x1, y1 = b[..., 0], b[..., 1]
    bw = jnp.maximum(b[..., 2] - x1, 1e-6)
    bh = jnp.maximum(b[..., 3] - y1, 1e-6)
    grid = (jnp.arange(out_size, dtype=jnp.float32) + 0.5) / out_size
    xs = jnp.clip(x1[..., None] + grid * bw[..., None], 0.0, W - 1.0)   # (N,R,S)
    ys = jnp.clip(y1[..., None] + grid * bh[..., None], 0.0, H - 1.0)   # (N,R,S)
    wy = jnp.maximum(0.0, 1.0 - jnp.abs(
        ys[..., None] - jnp.arange(H, dtype=jnp.float32)))              # (N,R,S,H)
    wx = jnp.maximum(0.0, 1.0 - jnp.abs(
        xs[..., None] - jnp.arange(W, dtype=jnp.float32)))              # (N,R,S,W)
    tmp = jnp.einsum("nrph,nhwc->nrpwc", wy, feat)
    return jnp.einsum("nrpwc,nrqw->nrpqc", tmp, wx)                     # (N,R,S,S,C)


def faster_rcnn_eval_forward(params, images_nchw):
    """Mirrors FasterRCNN.eval_forward(images): returns list of dicts per image."""
    p = params
    Nimg, _, H, W = images_nchw.shape
    # GeneralizedRCNNTransform: per-channel normalization.
    # TODO(synk): torchvision also resizes to min/max size; skipped (fixed size).
    mean = jnp.array([0.485, 0.456, 0.406], jnp.float32).reshape(1, 3, 1, 1)
    std = jnp.array([0.229, 0.224, 0.225], jnp.float32).reshape(1, 3, 1, 1)
    x = (images_nchw.astype(jnp.float32) - mean) / std
    x = jnp.transpose(x, (0, 2, 3, 1)).astype(jnp.bfloat16)             # NHWC bf16

    # ---- backbone stem (stands in for ResNet-50); bf16 intermediates ------
    c1 = conv2d(x, p["stem1"], stride=2, padding=1, relu=True)
    c2 = conv2d(c1, p["stem2"], stride=2, padding=1, relu=True)
    c3 = conv2d(c2, p["stem3"], stride=2, padding=1, relu=True)

    # ---- FPN (2 levels) ----------------------------------------------------
    p3_in = conv2d(c3, p["lat3"])
    p2_in = conv2d(c2, p["lat2"])
    p2_in = p2_in + jnp.repeat(jnp.repeat(p3_in, 2, axis=1), 2, axis=2)
    p2 = conv2d(p2_in, p["out2"], padding=1)
    p3 = conv2d(p3_in, p["out3"], padding=1)
    feats = [p2, p3]
    strides = [H // p2.shape[1], H // p3.shape[1]]

    # ---- RPN head: 3x3 conv (+ReLU) and 1x1 cls/box head fused into ONE
    # pallas_call per level; intermediate never hits HBM, output is a
    # lane-dense 128-wide f32 slab.
    rpn_conv_w = p["rpn_conv"]["w"].reshape(9 * FPN_CH, FPN_CH)
    obj_all, delta_all = [], []
    for f in feats:
        Hf, Wf = f.shape[1], f.shape[2]
        patches, _, _ = _im2col(f, 3, 3, stride=1, padding=1)
        head = fused_mlp(
            patches,
            [(rpn_conv_w, p["rpn_conv"]["b"], True),
             (p["rpn_head_w"], p["rpn_head_b"], False)],
            out_dtype=jnp.float32, tm=256)
        head = head.reshape(Nimg, Hf, Wf, RPN_HEAD_PAD)
        obj_all.append(head[..., :NUM_ANCHORS].reshape(Nimg, -1))       # (H,W,A)
        delta_all.append(
            head[..., NUM_ANCHORS:RPN_HEAD_OUT].reshape(Nimg, -1, 4))
    objectness = jnp.concatenate(obj_all, axis=1)             # (N, A_tot)
    rpn_deltas = jnp.concatenate(delta_all, axis=1)           # (N, A_tot, 4)
    anchors = generate_anchors([f.shape[1:3] for f in feats], strides)

    # ---- proposals: batched decode + top-k (no per-image Python loop) ------
    boxes = clip_boxes(decode_boxes(rpn_deltas, anchors, (1.0, 1.0, 1.0, 1.0)),
                       (H, W))                                # (N, A_tot, 4)
    scores = jax.nn.sigmoid(objectness)
    k = min(PRE_TOPK, scores.shape[1])
    _, idx = jax.lax.top_k(scores, k)                         # (N, k)
    # TODO(synk): RPN NMS (batched_nms) has no clean Pallas equivalent; top-k only.
    proposals = jnp.take_along_axis(boxes, idx[..., None], axis=1)[:, :POST_TOPK]

    # ---- ROI heads, batched across images ----------------------------------
    # TODO(synk): multi-level FPN ROI assignment; all ROIs pooled from p2.
    pooled = roi_align(feats[0], proposals, 1.0 / strides[0])  # (N,R,7,7,C)
    R = proposals.shape[1]
    flat = pooled.reshape(Nimg * R, -1)
    head_out = fused_mlp(
        flat,
        [(p["fc1_w"], p["fc1_b"], True),
         (p["fc2_w"], p["fc2_b"], True),
         (p["head_w"], p["head_b"], False)],
        out_dtype=jnp.float32, tm=TM_HEAD)                     # (N*R, 128)
    cls_logits = head_out[:, :NUM_CLASSES]
    box_deltas = head_out[:, NUM_CLASSES:NUM_CLASSES + NUM_CLASSES * 4]

    probs = jax.nn.softmax(cls_logits, axis=-1)
    fg_scores = probs[:, 1].reshape(Nimg, R)                   # class 1 (non-bg)
    fg_deltas = box_deltas[:, 4:8].reshape(Nimg, R, 4)
    det_boxes = clip_boxes(decode_boxes(fg_deltas, proposals,
                                        (10.0, 10.0, 5.0, 5.0)), (H, W))
    # TODO(synk): score threshold + per-class NMS omitted; all detections kept.
    results = []
    for n in range(Nimg):
        results.append({
            "boxes": det_boxes[n],
            "labels": jnp.ones((R,), jnp.int32),
            "scores": fg_scores[n],
        })
    return results


if __name__ == "__main__":
    key = jax.random.PRNGKey(0)
    pkey, ikey = jax.random.split(key)
    params = init_params(pkey)
    images = jax.random.uniform(ikey, (2, 3, 32, 32), dtype=jnp.float32)  # NCHW

    fwd = jax.jit(faster_rcnn_eval_forward)
    preds = fwd(params, images)
    jax.block_until_ready(jax.tree_util.tree_leaves(preds))

    assert len(preds) == 2
    assert preds[0]["boxes"].shape == (POST_TOPK, 4)
    assert preds[0]["scores"].shape == (POST_TOPK,)
    assert preds[0]["labels"].dtype == jnp.int32
    print("KERNEL_OK")
</pallas_src>

<mosaic_0001>
module attributes {stable_mosaic.version = 11 : i64} {
  func.func @_fused_mlp_kernel(%arg0: i32, %arg1: memref<512x27xbf16, #tpu.memory_space<vmem>>, %arg2: memref<27x16xbf16, #tpu.memory_space<vmem>>, %arg3: memref<1x16xf32, #tpu.memory_space<vmem>>, %arg4: memref<512x16xbf16, #tpu.memory_space<vmem>>) attributes {dimension_semantics = [#tpu.dimension_semantics<parallel>], iteration_bounds = array<i64: 1>, scalar_prefetch = 0 : i64, scratch_operands = 0 : i64, tpu.core_type = #tpu.core_type<tc>, window_params = [{transform_indices = @transform_0, window_bounds = array<i64: 512, 27>}, {pipeline_mode = #tpu.pipeline_mode<synchronous>, transform_indices = @transform_1, window_bounds = array<i64: 27, 16>}, {pipeline_mode = #tpu.pipeline_mode<synchronous>, transform_indices = @transform_2, window_bounds = array<i64: 1, 16>}, {transform_indices = @transform_3, window_bounds = array<i64: 512, 16>}]} {
    %c0 = arith.constant 0 : index
    %c0_0 = arith.constant 0 : index
    %0 = vector.load %arg1[%c0, %c0_0] : memref<512x27xbf16, #tpu.memory_space<vmem>>, vector<512x27xbf16>
    %c0_1 = arith.constant 0 : index
    %c0_2 = arith.constant 0 : index
    %1 = vector.load %arg2[%c0_1, %c0_2] : memref<27x16xbf16, #tpu.memory_space<vmem>>, vector<27x16xbf16>
    %cst = arith.constant dense<0.000000e+00> : vector<512x16xf32>
    %2 = tpu.matmul %0, %1, %cst {dimension_numbers = #tpu.dot_dimension_numbers<[1], [0], [0], [1], [0, 0, 1, 1], [], []>} : vector<512x27xbf16>, vector<27x16xbf16>, vector<512x16xf32> -> vector<512x16xf32>
    %c0_3 = arith.constant 0 : index
    %c0_4 = arith.constant 0 : index
    %3 = vector.load %arg3[%c0_3, %c0_4] : memref<1x16xf32, #tpu.memory_space<vmem>>, vector<1x16xf32>
    %4 = vector.broadcast %3 : vector<1x16xf32> to vector<512x16xf32>
    %5 = arith.addf %2, %4 : vector<512x16xf32>
    %cst_5 = arith.constant 0.000000e+00 : f32
    %6 = vector.broadcast %cst_5 : f32 to vector<512x16xf32>
    %7 = arith.maximumf %5, %6 : vector<512x16xf32>
    %8 = arith.truncf %7 : vector<512x16xf32> to vector<512x16xbf16>
    %c0_6 = arith.constant 0 : index
    %c0_7 = arith.constant 0 : index
    %9 = vector.load %arg4[%c0_6, %c0_7] : memref<512x16xbf16, #tpu.memory_space<vmem>>, vector<512x16xbf16>
    tpu.vector_store %arg4[%c0_6, %c0_7], %8 {strides = array<i32>} : memref<512x16xbf16, #tpu.memory_space<vmem>>, vector<512x16xbf16>,
    return
  }
  func.func @transform_0(%arg0: i32) -> (i32, i32) {
    %c0_i32 = arith.constant 0 : i32
    %c0_i32_0 = arith.constant 0 : i32
    return %arg0, %c0_i32 : i32, i32
  }
  func.func @transform_1(%arg0: i32) -> (i32, i32) {
    %c0_i32 = arith.constant 0 : i32
    %c0_i32_0 = arith.constant 0 : i32
    %c0_i32_1 = arith.constant 0 : i32
    return %c0_i32, %c0_i32_0 : i32, i32
  }
  func.func @transform_2(%arg0: i32) -> (i32, i32) {
    %c0_i32 = arith.constant 0 : i32
    %c0_i32_0 = arith.constant 0 : i32
    %c0_i32_1 = arith.constant 0 : i32
    return %c0_i32, %c0_i32_0 : i32, i32
  }
  func.func @transform_3(%arg0: i32) -> (i32, i32) {
    %c0_i32 = arith.constant 0 : i32
    %c0_i32_0 = arith.constant 0 : i32
    return %arg0, %c0_i32 : i32, i32
  }
}

module attributes {stable_mosaic.version = 11 : i64} {
  func.func @_fused_mlp_kernel(%arg0: i32, %arg1: memref<128x144xbf16, #tpu.memory_space<vmem>>, %arg2: memref<144x32xbf16, #tpu.memory_space<vmem>>, %arg3: memref<1x32xf32, #tpu.memory_space<vmem>>, %arg4: memref<128x32xbf16, #tpu.memory_space<vmem>>) attributes {dimension_semantics = [#tpu.dimension_semantics<parallel>], iteration_bounds = array<i64: 1>, scalar_prefetch = 0 : i64, scratch_operands = 0 : i64, tpu.core_type = #tpu.core_type<tc>, window_params = [{transform_indices = @transform_0, window_bounds = array<i64: 128, 144>}, {pipeline_mode = #tpu.pipeline_mode<synchronous>, transform_indices = @transform_1, window_bounds = array<i64: 144, 32>}, {pipeline_mode = #tpu.pipeline_mode<synchronous>, transform_indices = @transform_2, window_bounds = array<i64: 1, 32>}, {transform_indices = @transform_3, window_bounds = array<i64: 128, 32>}]} {
    %c0 = arith.constant 0 : index
    %c0_0 = arith.constant 0 : index
    %0 = vector.load %arg1[%c0, %c0_0] : memref<128x144xbf16, #tpu.memory_space<vmem>>, vector<128x144xbf16>
    %c0_1 = arith.constant 0 : index
    %c0_2 = arith.constant 0 : index
    %1 = vector.load %arg2[%c0_1, %c0_2] : memref<144x32xbf16, #tpu.memory_space<vmem>>, vector<144x32xbf16>
    %cst = arith.constant dense<0.000000e+00> : vector<128x32xf32>
    %2 = tpu.matmul %0, %1, %cst {dimension_numbers = #tpu.dot_dimension_numbers<[1], [0], [0], [1], [0, 0, 1, 1], [], []>} : vector<128x144xbf16>, vector<144x32xbf16>, vector<128x32xf32> -> vector<128x32xf32>
    %c0_3 = arith.constant 0 : index
    %c0_4 = arith.constant 0 : index
    %3 = vector.load %arg3[%c0_3, %c0_4] : memref<1x32xf32, #tpu.memory_space<vmem>>, vector<1x32xf32>
    %4 = vector.broadcast %3 : vector<1x32xf32> to vector<128x32xf32>
    %5 = arith.addf %2, %4 : vector<128x32xf32>
    %cst_5 = arith.constant 0.000000e+00 : f32
    %6 = vector.broadcast %cst_5 : f32 to vector<128x32xf32>
    %7 = arith.maximumf %5, %6 : vector<128x32xf32>
    %8 = arith.truncf %7 : vector<128x32xf32> to vector<128x32xbf16>
    %c0_6 = arith.constant 0 : index
    %c0_7 = arith.constant 0 : index
    %9 = vector.load %arg4[%c0_6, %c0_7] : memref<128x32xbf16, #tpu.memory_space<vmem>>, vector<128x32xbf16>
    tpu.vector_store %arg4[%c0_6, %c0_7], %8 {strides = array<i32>} : memref<128x32xbf16, #tpu.memory_space<vmem>>, vector<128x32xbf16>,
    return
  }
  func.func @transform_0(%arg0: i32) -> (i32, i32) {
    %c0_i32 = arith.constant 0 : i32
    %c0_i32_0 = arith.constant 0 : i32
    return %arg0, %c0_i32 : i32, i32
  }
  func.func @transform_1(%arg0: i32) -> (i32, i32) {
    %c0_i32 = arith.constant 0 : i32
    %c0_i32_0 = arith.constant 0 : i32
    %c0_i32_1 = arith.constant 0 : i32
    return %c0_i32, %c0_i32_0 : i32, i32
  }
  func.func @transform_2(%arg0: i32) -> (i32, i32) {
    %c0_i32 = arith.constant 0 : i32
    %c0_i32_0 = arith.constant 0 : i32
    %c0_i32_1 = arith.constant 0 : i32
    return %c0_i32, %c0_i32_0 : i32, i32
  }
  func.func @transform_3(%arg0: i32) -> (i32, i32) {
    %c0_i32 = arith.constant 0 : i32
    %c0_i32_0 = arith.constant 0 : i32
    return %arg0, %c0_i32 : i32, i32
  }
}

module attributes {stable_mosaic.version = 11 : i64} {
  func.func @_fused_mlp_kernel(%arg0: i32, %arg1: memref<32x288xbf16, #tpu.memory_space<vmem>>, %arg2: memref<288x64xbf16, #tpu.memory_space<vmem>>, %arg3: memref<1x64xf32, #tpu.memory_space<vmem>>, %arg4: memref<32x64xbf16, #tpu.memory_space<vmem>>) attributes {dimension_semantics = [#tpu.dimension_semantics<parallel>], iteration_bounds = array<i64: 1>, scalar_prefetch = 0 : i64, scratch_operands = 0 : i64, tpu.core_type = #tpu.core_type<tc>, window_params = [{transform_indices = @transform_0, window_bounds = array<i64: 32, 288>}, {pipeline_mode = #tpu.pipeline_mode<synchronous>, transform_indices = @transform_1, window_bounds = array<i64: 288, 64>}, {pipeline_mode = #tpu.pipeline_mode<synchronous>, transform_indices = @transform_2, window_bounds = array<i64: 1, 64>}, {transform_indices = @transform_3, window_bounds = array<i64: 32, 64>}]} {
    %c0 = arith.constant 0 : index
    %c0_0 = arith.constant 0 : index
    %0 = vector.load %arg1[%c0, %c0_0] : memref<32x288xbf16, #tpu.memory_space<vmem>>, vector<32x288xbf16>
    %c0_1 = arith.constant 0 : index
    %c0_2 = arith.constant 0 : index
    %1 = vector.load %arg2[%c0_1, %c0_2] : memref<288x64xbf16, #tpu.memory_space<vmem>>, vector<288x64xbf16>
    %cst = arith.constant dense<0.000000e+00> : vector<32x64xf32>
    %2 = tpu.matmul %0, %1, %cst {dimension_numbers = #tpu.dot_dimension_numbers<[1], [0], [0], [1], [0, 0, 1, 1], [], []>} : vector<32x288xbf16>, vector<288x64xbf16>, vector<32x64xf32> -> vector<32x64xf32>
    %c0_3 = arith.constant 0 : index
    %c0_4 = arith.constant 0 : index
    %3 = vector.load %arg3[%c0_3, %c0_4] : memref<1x64xf32, #tpu.memory_space<vmem>>, vector<1x64xf32>
    %4 = vector.broadcast %3 : vector<1x64xf32> to vector<32x64xf32>
    %5 = arith.addf %2, %4 : vector<32x64xf32>
    %cst_5 = arith.constant 0.000000e+00 : f32
    %6 = vector.broadcast %cst_5 : f32 to vector<32x64xf32>
    %7 = arith.maximumf %5, %6 : vector<32x64xf32>
    %8 = arith.truncf %7 : vector<32x64xf32> to vector<32x64xbf16>
    %c0_6 = arith.constant 0 : index
    %c0_7 = arith.constant 0 : index
    %9 = vector.load %arg4[%c0_6, %c0_7] : memref<32x64xbf16, #tpu.memory_space<vmem>>, vector<32x64xbf16>
    tpu.vector_store %arg4[%c0_6, %c0_7], %8 {strides = array<i32>} : memref<32x64xbf16, #tpu.memory_space<vmem>>, vector<32x64xbf16>,
    return
  }
  func.func @transform_0(%arg0: i32) -> (i32, i32) {
    %c0_i32 = arith.constant 0 : i32
    %c0_i32_0 = arith.constant 0 : i32
    return %arg0, %c0_i32 : i32, i32
  }
  func.func @transform_1(%arg0: i32) -> (i32, i32) {
    %c0_i32 = arith.constant 0 : i32
    %c0_i32_0 = arith.constant 0 : i32
    %c0_i32_1 = arith.constant 0 : i32
    return %c0_i32, %c0_i32_0 : i32, i32
  }
  func.func @transform_2(%arg0: i32) -> (i32, i32) {
    %c0_i32 = arith.constant 0 : i32
    %c0_i32_0 = arith.constant 0 : i32
    %c0_i32_1 = arith.constant 0 : i32
    return %c0_i32, %c0_i32_0 : i32, i32
  }
  func.func @transform_3(%arg0: i32) -> (i32, i32) {
    %c0_i32 = arith.constant 0 : i32
    %c0_i32_0 = arith.constant 0 : i32
    return %arg0, %c0_i32 : i32, i32
  }
}

module attributes {stable_mosaic.version = 11 : i64} {
  func.func @_fused_mlp_kernel(%arg0: i32, %arg1: memref<32x64xbf16, #tpu.memory_space<vmem>>, %arg2: memref<64x32xbf16, #tpu.memory_space<vmem>>, %arg3: memref<1x32xf32, #tpu.memory_space<vmem>>, %arg4: memref<32x32xbf16, #tpu.memory_space<vmem>>) attributes {dimension_semantics = [#tpu.dimension_semantics<parallel>], iteration_bounds = array<i64: 1>, scalar_prefetch = 0 : i64, scratch_operands = 0 : i64, tpu.core_type = #tpu.core_type<tc>, window_params = [{transform_indices = @transform_0, window_bounds = array<i64: 32, 64>}, {pipeline_mode = #tpu.pipeline_mode<synchronous>, transform_indices = @transform_1, window_bounds = array<i64: 64, 32>}, {pipeline_mode = #tpu.pipeline_mode<synchronous>, transform_indices = @transform_2, window_bounds = array<i64: 1, 32>}, {transform_indices = @transform_3, window_bounds = array<i64: 32, 32>}]} {
    %c0 = arith.constant 0 : index
    %c0_0 = arith.constant 0 : index
    %0 = vector.load %arg1[%c0, %c0_0] : memref<32x64xbf16, #tpu.memory_space<vmem>>, vector<32x64xbf16>
    %c0_1 = arith.constant 0 : index
    %c0_2 = arith.constant 0 : index
    %1 = vector.load %arg2[%c0_1, %c0_2] : memref<64x32xbf16, #tpu.memory_space<vmem>>, vector<64x32xbf16>
    %cst = arith.constant dense<0.000000e+00> : vector<32x32xf32>
    %2 = tpu.matmul %0, %1, %cst {dimension_numbers = #tpu.dot_dimension_numbers<[1], [0], [0], [1], [0, 0, 1, 1], [], []>} : vector<32x64xbf16>, vector<64x32xbf16>, vector<32x32xf32> -> vector<32x32xf32>
    %c0_3 = arith.constant 0 : index
    %c0_4 = arith.constant 0 : index
    %3 = vector.load %arg3[%c0_3, %c0_4] : memref<1x32xf32, #tpu.memory_space<vmem>>, vector<1x32xf32>
    %4 = vector.broadcast %3 : vector<1x32xf32> to vector<32x32xf32>
    %5 = arith.addf %2, %4 : vector<32x32xf32>
    %6 = arith.truncf %5 : vector<32x32xf32> to vector<32x32xbf16>
    %c0_5 = arith.constant 0 : index
    %c0_6 = arith.constant 0 : index
    %7 = vector.load %arg4[%c0_5, %c0_6] : memref<32x32xbf16, #tpu.memory_space<vmem>>, vector<32x32xbf16>
    tpu.vector_store %arg4[%c0_5, %c0_6], %6 {strides = array<i32>} : memref<32x32xbf16, #tpu.memory_space<vmem>>, vector<32x32xbf16>,
    return
  }
  func.func @transform_0(%arg0: i32) -> (i32, i32) {
    %c0_i32 = arith.constant 0 : i32
    %c0_i32_0 = arith.constant 0 : i32
    return %arg0, %c0_i32 : i32, i32
  }
  func.func @transform_1(%arg0: i32) -> (i32, i32) {
    %c0_i32 = arith.constant 0 : i32
    %c0_i32_0 = arith.constant 0 : i32
    %c0_i32_1 = arith.constant 0 : i32
    return %c0_i32, %c0_i32_0 : i32, i32
  }
  func.func @transform_2(%arg0: i32) -> (i32, i32) {
    %c0_i32 = arith.constant 0 : i32
    %c0_i32_0 = arith.constant 0 : i32
    %c0_i32_1 = arith.constant 0 : i32
    return %c0_i32, %c0_i32_0 : i32, i32
  }
  func.func @transform_3(%arg0: i32) -> (i32, i32) {
    %c0_i32 = arith.constant 0 : i32
    %c0_i32_0 = arith.constant 0 : i32
    return %arg0, %c0_i32 : i32, i32
  }
}

module attributes {stable_mosaic.version = 11 : i64} {
  func.func @_fused_mlp_kernel(%arg0: i32, %arg1: memref<128x32xbf16, #tpu.memory_space<vmem>>, %arg2: memref<32x32xbf16, #tpu.memory_space<vmem>>, %arg3: memref<1x32xf32, #tpu.memory_space<vmem>>, %arg4: memref<128x32xbf16, #tpu.memory_space<vmem>>) attributes {dimension_semantics = [#tpu.dimension_semantics<parallel>], iteration_bounds = array<i64: 1>, scalar_prefetch = 0 : i64, scratch_operands = 0 : i64, tpu.core_type = #tpu.core_type<tc>, window_params = [{transform_indices = @transform_0, window_bounds = array<i64: 128, 32>}, {pipeline_mode = #tpu.pipeline_mode<synchronous>, transform_indices = @transform_1, window_bounds = array<i64: 32, 32>}, {pipeline_mode = #tpu.pipeline_mode<synchronous>, transform_indices = @transform_2, window_bounds = array<i64: 1, 32>}, {transform_indices = @transform_3, window_bounds = array<i64: 128, 32>}]} {
    %c0 = arith.constant 0 : index
    %c0_0 = arith.constant 0 : index
    %0 = vector.load %arg1[%c0, %c0_0] : memref<128x32xbf16, #tpu.memory_space<vmem>>, vector<128x32xbf16>
    %c0_1 = arith.constant 0 : index
    %c0_2 = arith.constant 0 : index
    %1 = vector.load %arg2[%c0_1, %c0_2] : memref<32x32xbf16, #tpu.memory_space<vmem>>, vector<32x32xbf16>
    %cst = arith.constant dense<0.000000e+00> : vector<128x32xf32>
    %2 = tpu.matmul %0, %1, %cst {dimension_numbers = #tpu.dot_dimension_numbers<[1], [0], [0], [1], [0, 0, 1, 1], [], []>} : vector<128x32xbf16>, vector<32x32xbf16>, vector<128x32xf32> -> vector<128x32xf32>
    %c0_3 = arith.constant 0 : index
    %c0_4 = arith.constant 0 : index
    %3 = vector.load %arg3[%c0_3, %c0_4] : memref<1x32xf32, #tpu.memory_space<vmem>>, vector<1x32xf32>
    %4 = vector.broadcast %3 : vector<1x32xf32> to vector<128x32xf32>
    %5 = arith.addf %2, %4 : vector<128x32xf32>
    %6 = arith.truncf %5 : vector<128x32xf32> to vector<128x32xbf16>
    %c0_5 = arith.constant 0 : index
    %c0_6 = arith.constant 0 : index
    %7 = vector.load %arg4[%c0_5, %c0_6] : memref<128x32xbf16, #tpu.memory_space<vmem>>, vector<128x32xbf16>
    tpu.vector_store %arg4[%c0_5, %c0_6], %6 {strides = array<i32>} : memref<128x32xbf16, #tpu.memory_space<vmem>>, vector<128x32xbf16>,
    return
  }
  func.func @transform_0(%arg0: i32) -> (i32, i32) {
    %c0_i32 = arith.constant 0 : i32
    %c0_i32_0 = arith.constant 0 : i32
    return %arg0, %c0_i32 : i32, i32
  }
  func.func @transform_1(%arg0: i32) -> (i32, i32) {
    %c0_i32 = arith.constant 0 : i32
    %c0_i32_0 = arith.constant 0 : i32
    %c0_i32_1 = arith.constant 0 : i32
    return %c0_i32, %c0_i32_0 : i32, i32
  }
  func.func @transform_2(%arg0: i32) -> (i32, i32) {
    %c0_i32 = arith.constant 0 : i32
    %c0_i32_0 = arith.constant 0 : i32
    %c0_i32_1 = arith.constant 0 : i32
    return %c0_i32, %c0_i32_0 : i32, i32
  }
  func.func @transform_3(%arg0: i32) -> (i32, i32) {
    %c0_i32 = arith.constant 0 : i32
    %c0_i32_0 = arith.constant 0 : i32
    return %arg0, %c0_i32 : i32, i32
  }
}

module attributes {stable_mosaic.version = 11 : i64} {
  func.func @_fused_mlp_kernel(%arg0: i32, %arg1: memref<128x288xbf16, #tpu.memory_space<vmem>>, %arg2: memref<288x32xbf16, #tpu.memory_space<vmem>>, %arg3: memref<1x32xf32, #tpu.memory_space<vmem>>, %arg4: memref<128x32xbf16, #tpu.memory_space<vmem>>) attributes {dimension_semantics = [#tpu.dimension_semantics<parallel>], iteration_bounds = array<i64: 1>, scalar_prefetch = 0 : i64, scratch_operands = 0 : i64, tpu.core_type = #tpu.core_type<tc>, window_params = [{transform_indices = @transform_0, window_bounds = array<i64: 128, 288>}, {pipeline_mode = #tpu.pipeline_mode<synchronous>, transform_indices = @transform_1, window_bounds = array<i64: 288, 32>}, {pipeline_mode = #tpu.pipeline_mode<synchronous>, transform_indices = @transform_2, window_bounds = array<i64: 1, 32>}, {transform_indices = @transform_3, window_bounds = array<i64: 128, 32>}]} {
    %c0 = arith.constant 0 : index
    %c0_0 = arith.constant 0 : index
    %0 = vector.load %arg1[%c0, %c0_0] : memref<128x288xbf16, #tpu.memory_space<vmem>>, vector<128x288xbf16>
    %c0_1 = arith.constant 0 : index
    %c0_2 = arith.constant 0 : index
    %1 = vector.load %arg2[%c0_1, %c0_2] : memref<288x32xbf16, #tpu.memory_space<vmem>>, vector<288x32xbf16>
    %cst = arith.constant dense<0.000000e+00> : vector<128x32xf32>
    %2 = tpu.matmul %0, %1, %cst {dimension_numbers = #tpu.dot_dimension_numbers<[1], [0], [0], [1], [0, 0, 1, 1], [], []>} : vector<128x288xbf16>, vector<288x32xbf16>, vector<128x32xf32> -> vector<128x32xf32>
    %c0_3 = arith.constant 0 : index
    %c0_4 = arith.constant 0 : index
    %3 = vector.load %arg3[%c0_3, %c0_4] : memref<1x32xf32, #tpu.memory_space<vmem>>, vector<1x32xf32>
    %4 = vector.broadcast %3 : vector<1x32xf32> to vector<128x32xf32>
    %5 = arith.addf %2, %4 : vector<128x32xf32>
    %6 = arith.truncf %5 : vector<128x32xf32> to vector<128x32xbf16>
    %c0_5 = arith.constant 0 : index
    %c0_6 = arith.constant 0 : index
    %7 = vector.load %arg4[%c0_5, %c0_6] : memref<128x32xbf16, #tpu.memory_space<vmem>>, vector<128x32xbf16>
    tpu.vector_store %arg4[%c0_5, %c0_6], %6 {strides = array<i32>} : memref<128x32xbf16, #tpu.memory_space<vmem>>, vector<128x32xbf16>,
    return
  }
  func.func @transform_0(%arg0: i32) -> (i32, i32) {
    %c0_i32 = arith.constant 0 : i32
    %c0_i32_0 = arith.constant 0 : i32
    return %arg0, %c0_i32 : i32, i32
  }
  func.func @transform_1(%arg0: i32) -> (i32, i32) {
    %c0_i32 = arith.constant 0 : i32
    %c0_i32_0 = arith.constant 0 : i32
    %c0_i32_1 = arith.constant 0 : i32
    return %c0_i32, %c0_i32_0 : i32, i32
  }
  func.func @transform_2(%arg0: i32) -> (i32, i32) {
    %c0_i32 = arith.constant 0 : i32
    %c0_i32_0 = arith.constant 0 : i32
    %c0_i32_1 = arith.constant 0 : i32
    return %c0_i32, %c0_i32_0 : i32, i32
  }
  func.func @transform_3(%arg0: i32) -> (i32, i32) {
    %c0_i32 = arith.constant 0 : i32
    %c0_i32_0 = arith.constant 0 : i32
    return %arg0, %c0_i32 : i32, i32
  }
}

module attributes {stable_mosaic.version = 11 : i64} {
  func.func @_fused_mlp_kernel(%arg0: i32, %arg1: memref<128x288xbf16, #tpu.memory_space<vmem>>, %arg2: memref<288x32xbf16, #tpu.memory_space<vmem>>, %arg3: memref<1x32xf32, #tpu.memory_space<vmem>>, %arg4: memref<32x128xbf16, #tpu.memory_space<vmem>>, %arg5: memref<1x128xf32, #tpu.memory_space<vmem>>, %arg6: memref<128x128xf32, #tpu.memory_space<vmem>>) attributes {dimension_semantics = [#tpu.dimension_semantics<parallel>], iteration_bounds = array<i64: 1>, scalar_prefetch = 0 : i64, scratch_operands = 0 : i64, tpu.core_type = #tpu.core_type<tc>, window_params = [{transform_indices = @transform_0, window_bounds = array<i64: 128, 288>}, {pipeline_mode = #tpu.pipeline_mode<synchronous>, transform_indices = @transform_1, window_bounds = array<i64: 288, 32>}, {pipeline_mode = #tpu.pipeline_mode<synchronous>, transform_indices = @transform_2, window_bounds = array<i64: 1, 32>}, {pipeline_mode = #tpu.pipeline_mode<synchronous>, transform_indices = @transform_3, window_bounds = array<i64: 32, 128>}, {pipeline_mode = #tpu.pipeline_mode<synchronous>, transform_indices = @transform_4, window_bounds = array<i64: 1, 128>}, {transform_indices = @transform_5, window_bounds = array<i64: 128, 128>}]} {
    %c0 = arith.constant 0 : index
    %c0_0 = arith.constant 0 : index
    %0 = vector.load %arg1[%c0, %c0_0] : memref<128x288xbf16, #tpu.memory_space<vmem>>, vector<128x288xbf16>
    %c0_1 = arith.constant 0 : index
    %c0_2 = arith.constant 0 : index
    %1 = vector.load %arg2[%c0_1, %c0_2] : memref<288x32xbf16, #tpu.memory_space<vmem>>, vector<288x32xbf16>
    %cst = arith.constant dense<0.000000e+00> : vector<128x32xf32>
    %2 = tpu.matmul %0, %1, %cst {dimension_numbers = #tpu.dot_dimension_numbers<[1], [0], [0], [1], [0, 0, 1, 1], [], []>} : vector<128x288xbf16>, vector<288x32xbf16>, vector<128x32xf32> -> vector<128x32xf32>
    %c0_3 = arith.constant 0 : index
    %c0_4 = arith.constant 0 : index
    %3 = vector.load %arg3[%c0_3, %c0_4] : memref<1x32xf32, #tpu.memory_space<vmem>>, vector<1x32xf32>
    %4 = vector.broadcast %3 : vector<1x32xf32> to vector<128x32xf32>
    %5 = arith.addf %2, %4 : vector<128x32xf32>
    %cst_5 = arith.constant 0.000000e+00 : f32
    %6 = vector.broadcast %cst_5 : f32 to vector<128x32xf32>
    %7 = arith.maximumf %5, %6 : vector<128x32xf32>
    %8 = arith.truncf %7 : vector<128x32xf32> to vector<128x32xbf16>
    %c0_6 = arith.constant 0 : index
    %c0_7 = arith.constant 0 : index
    %9 = vector.load %arg4[%c0_6, %c0_7] : memref<32x128xbf16, #tpu.memory_space<vmem>>, vector<32x128xbf16>
    %cst_8 = arith.constant dense<0.000000e+00> : vector<128x128xf32>
    %10 = tpu.matmul %8, %9, %cst_8 {dimension_numbers = #tpu.dot_dimension_numbers<[1], [0], [0], [1], [0, 0, 1, 1], [], []>} : vector<128x32xbf16>, vector<32x128xbf16>, vector<128x128xf32> -> vector<128x128xf32>
    %c0_9 = arith.constant 0 : index
    %c0_10 = arith.constant 0 : index
    %11 = vector.load %arg5[%c0_9, %c0_10] : memref<1x128xf32, #tpu.memory_space<vmem>>, vector<1x128xf32>
    %12 = vector.broadcast %11 : vector<1x128xf32> to vector<128x128xf32>
    %13 = arith.addf %10, %12 : vector<128x128xf32>
    %c0_11 = arith.constant 0 : index
    %c0_12 = arith.constant 0 : index
    %14 = vector.load %arg6[%c0_11, %c0_12] : memref<128x128xf32, #tpu.memory_space<vmem>>, vector<128x128xf32>
    tpu.vector_store %arg6[%c0_11, %c0_12], %13 {strides = array<i32>} : memref<128x128xf32, #tpu.memory_space<vmem>>, vector<128x128xf32>,
    return
  }
  func.func @transform_0(%arg0: i32) -> (i32, i32) {
    %c0_i32 = arith.constant 0 : i32
    %c0_i32_0 = arith.constant 0 : i32
    return %arg0, %c0_i32 : i32, i32
  }
  func.func @transform_1(%arg0: i32) -> (i32, i32) {
    %c0_i32 = arith.constant 0 : i32
    %c0_i32_0 = arith.constant 0 : i32
    %c0_i32_1 = arith.constant 0 : i32
    return %c0_i32, %c0_i32_0 : i32, i32
  }
  func.func @transform_2(%arg0: i32) -> (i32, i32) {
    %c0_i32 = arith.constant 0 : i32
    %c0_i32_0 = arith.constant 0 : i32
    %c0_i32_1 = arith.constant 0 : i32
    return %c0_i32, %c0_i32_0 : i32, i32
  }
  func.func @transform_3(%arg0: i32) -> (i32, i32) {
    %c0_i32 = arith.constant 0 : i32
    %c0_i32_0 = arith.constant 0 : i32
    %c0_i32_1 = arith.constant 0 : i32
    return %c0_i32, %c0_i32_0 : i32, i32
  }
  func.func @transform_4(%arg0: i32) -> (i32, i32) {
    %c0_i32 = arith.constant 0 : i32
    %c0_i32_0 = arith.constant 0 : i32
    %c0_i32_1 = arith.constant 0 : i32
    return %c0_i32, %c0_i32_0 : i32, i32
  }
  func.func @transform_5(%arg0: i32) -> (i32, i32) {
    %c0_i32 = arith.constant 0 : i32
    %c0_i32_0 = arith.constant 0 : i32
    return %arg0, %c0_i32 : i32, i32
  }
}

module attributes {stable_mosaic.version = 11 : i64} {
  func.func @_fused_mlp_kernel(%arg0: i32, %arg1: memref<32x288xbf16, #tpu.memory_space<vmem>>, %arg2: memref<288x32xbf16, #tpu.memory_space<vmem>>, %arg3: memref<1x32xf32, #tpu.memory_space<vmem>>, %arg4: memref<32x128xbf16, #tpu.memory_space<vmem>>, %arg5: memref<1x128xf32, #tpu.memory_space<vmem>>, %arg6: memref<32x128xf32, #tpu.memory_space<vmem>>) attributes {dimension_semantics = [#tpu.dimension_semantics<parallel>], iteration_bounds = array<i64: 1>, scalar_prefetch = 0 : i64, scratch_operands = 0 : i64, tpu.core_type = #tpu.core_type<tc>, window_params = [{transform_indices = @transform_0, window_bounds = array<i64: 32, 288>}, {pipeline_mode = #tpu.pipeline_mode<synchronous>, transform_indices = @transform_1, window_bounds = array<i64: 288, 32>}, {pipeline_mode = #tpu.pipeline_mode<synchronous>, transform_indices = @transform_2, window_bounds = array<i64: 1, 32>}, {pipeline_mode = #tpu.pipeline_mode<synchronous>, transform_indices = @transform_3, window_bounds = array<i64: 32, 128>}, {pipeline_mode = #tpu.pipeline_mode<synchronous>, transform_indices = @transform_4, window_bounds = array<i64: 1, 128>}, {transform_indices = @transform_5, window_bounds = array<i64: 32, 128>}]} {
    %c0 = arith.constant 0 : index
    %c0_0 = arith.constant 0 : index
    %0 = vector.load %arg1[%c0, %c0_0] : memref<32x288xbf16, #tpu.memory_space<vmem>>, vector<32x288xbf16>
    %c0_1 = arith.constant 0 : index
    %c0_2 = arith.constant 0 : index
    %1 = vector.load %arg2[%c0_1, %c0_2] : memref<288x32xbf16, #tpu.memory_space<vmem>>, vector<288x32xbf16>
    %cst = arith.constant dense<0.000000e+00> : vector<32x32xf32>
    %2 = tpu.matmul %0, %1, %cst {dimension_numbers = #tpu.dot_dimension_numbers<[1], [0], [0], [1], [0, 0, 1, 1], [], []>} : vector<32x288xbf16>, vector<288x32xbf16>, vector<32x32xf32> -> vector<32x32xf32>
    %c0_3 = arith.constant 0 : index
    %c0_4 = arith.constant 0 : index
    %3 = vector.load %arg3[%c0_3, %c0_4] : memref<1x32xf32, #tpu.memory_space<vmem>>, vector<1x32xf32>
    %4 = vector.broadcast %3 : vector<1x32xf32> to vector<32x32xf32>
    %5 = arith.addf %2, %4 : vector<32x32xf32>
    %cst_5 = arith.constant 0.000000e+00 : f32
    %6 = vector.broadcast %cst_5 : f32 to vector<32x32xf32>
    %7 = arith.maximumf %5, %6 : vector<32x32xf32>
    %8 = arith.truncf %7 : vector<32x32xf32> to vector<32x32xbf16>
    %c0_6 = arith.constant 0 : index
    %c0_7 = arith.constant 0 : index
    %9 = vector.load %arg4[%c0_6, %c0_7] : memref<32x128xbf16, #tpu.memory_space<vmem>>, vector<32x128xbf16>
    %cst_8 = arith.constant dense<0.000000e+00> : vector<32x128xf32>
    %10 = tpu.matmul %8, %9, %cst_8 {dimension_numbers = #tpu.dot_dimension_numbers<[1], [0], [0], [1], [0, 0, 1, 1], [], []>} : vector<32x32xbf16>, vector<32x128xbf16>, vector<32x128xf32> -> vector<32x128xf32>
    %c0_9 = arith.constant 0 : index
    %c0_10 = arith.constant 0 : index
    %11 = vector.load %arg5[%c0_9, %c0_10] : memref<1x128xf32, #tpu.memory_space<vmem>>, vector<1x128xf32>
    %12 = vector.broadcast %11 : vector<1x128xf32> to vector<32x128xf32>
    %13 = arith.addf %10, %12 : vector<32x128xf32>
    %c0_11 = arith.constant 0 : index
    %c0_12 = arith.constant 0 : index
    %14 = vector.load %arg6[%c0_11, %c0_12] : memref<32x128xf32, #tpu.memory_space<vmem>>, vector<32x128xf32>
    tpu.vector_store %arg6[%c0_11, %c0_12], %13 {strides = array<i32>} : memref<32x128xf32, #tpu.memory_space<vmem>>, vector<32x128xf32>,
    return
  }
  func.func @transform_0(%arg0: i32) -> (i32, i32) {
    %c0_i32 = arith.constant 0 : i32
    %c0_i32_0 = arith.constant 0 : i32
    return %arg0, %c0_i32 : i32, i32
  }
  func.func @transform_1(%arg0: i32) -> (i32, i32) {
    %c0_i32 = arith.constant 0 : i32
    %c0_i32_0 = arith.constant 0 : i32
    %c0_i32_1 = arith.constant 0 : i32
    return %c0_i32, %c0_i32_0 : i32, i32
  }
  func.func @transform_2(%arg0: i32) -> (i32, i32) {
    %c0_i32 = arith.constant 0 : i32
    %c0_i32_0 = arith.constant 0 : i32
    %c0_i32_1 = arith.constant 0 : i32
    return %c0_i32, %c0_i32_0 : i32, i32
  }
  func.func @transform_3(%arg0: i32) -> (i32, i32) {
    %c0_i32 = arith.constant 0 : i32
    %c0_i32_0 = arith.constant 0 : i32
    %c0_i32_1 = arith.constant 0 : i32
    return %c0_i32, %c0_i32_0 : i32, i32
  }
  func.func @transform_4(%arg0: i32) -> (i32, i32) {
    %c0_i32 = arith.constant 0 : i32
    %c0_i32_0 = arith.constant 0 : i32
    %c0_i32_1 = arith.constant 0 : i32
    return %c0_i32, %c0_i32_0 : i32, i32
  }
  func.func @transform_5(%arg0: i32) -> (i32, i32) {
    %c0_i32 = arith.constant 0 : i32
    %c0_i32_0 = arith.constant 0 : i32
    return %arg0, %c0_i32 : i32, i32
  }
}

module attributes {stable_mosaic.version = 11 : i64} {
  func.func @_fused_mlp_kernel(%arg0: i32, %arg1: memref<32x288xbf16, #tpu.memory_space<vmem>>, %arg2: memref<288x32xbf16, #tpu.memory_space<vmem>>, %arg3: memref<1x32xf32, #tpu.memory_space<vmem>>, %arg4: memref<32x32xbf16, #tpu.memory_space<vmem>>) attributes {dimension_semantics = [#tpu.dimension_semantics<parallel>], iteration_bounds = array<i64: 1>, scalar_prefetch = 0 : i64, scratch_operands = 0 : i64, tpu.core_type = #tpu.core_type<tc>, window_params = [{transform_indices = @transform_0, window_bounds = array<i64: 32, 288>}, {pipeline_mode = #tpu.pipeline_mode<synchronous>, transform_indices = @transform_1, window_bounds = array<i64: 288, 32>}, {pipeline_mode = #tpu.pipeline_mode<synchronous>, transform_indices = @transform_2, window_bounds = array<i64: 1, 32>}, {transform_indices = @transform_3, window_bounds = array<i64: 32, 32>}]} {
    %c0 = arith.constant 0 : index
    %c0_0 = arith.constant 0 : index
    %0 = vector.load %arg1[%c0, %c0_0] : memref<32x288xbf16, #tpu.memory_space<vmem>>, vector<32x288xbf16>
    %c0_1 = arith.constant 0 : index
    %c0_2 = arith.constant 0 : index
    %1 = vector.load %arg2[%c0_1, %c0_2] : memref<288x32xbf16, #tpu.memory_space<vmem>>, vector<288x32xbf16>
    %cst = arith.constant dense<0.000000e+00> : vector<32x32xf32>
    %2 = tpu.matmul %0, %1, %cst {dimension_numbers = #tpu.dot_dimension_numbers<[1], [0], [0], [1], [0, 0, 1, 1], [], []>} : vector<32x288xbf16>, vector<288x32xbf16>, vector<32x32xf32> -> vector<32x32xf32>
    %c0_3 = arith.constant 0 : index
    %c0_4 = arith.constant 0 : index
    %3 = vector.load %arg3[%c0_3, %c0_4] : memref<1x32xf32, #tpu.memory_space<vmem>>, vector<1x32xf32>
    %4 = vector.broadcast %3 : vector<1x32xf32> to vector<32x32xf32>
    %5 = arith.addf %2, %4 : vector<32x32xf32>
    %6 = arith.truncf %5 : vector<32x32xf32> to vector<32x32xbf16>
    %c0_5 = arith.constant 0 : index
    %c0_6 = arith.constant 0 : index
    %7 = vector.load %arg4[%c0_5, %c0_6] : memref<32x32xbf16, #tpu.memory_space<vmem>>, vector<32x32xbf16>
    tpu.vector_store %arg4[%c0_5, %c0_6], %6 {strides = array<i32>} : memref<32x32xbf16, #tpu.memory_space<vmem>>, vector<32x32xbf16>,
    return
  }
  func.func @transform_0(%arg0: i32) -> (i32, i32) {
    %c0_i32 = arith.constant 0 : i32
    %c0_i32_0 = arith.constant 0 : i32
    return %arg0, %c0_i32 : i32, i32
  }
  func.func @transform_1(%arg0: i32) -> (i32, i32) {
    %c0_i32 = arith.constant 0 : i32
    %c0_i32_0 = arith.constant 0 : i32
    %c0_i32_1 = arith.constant 0 : i32
    return %c0_i32, %c0_i32_0 : i32, i32
  }
  func.func @transform_2(%arg0: i32) -> (i32, i32) {
    %c0_i32 = arith.constant 0 : i32
    %c0_i32_0 = arith.constant 0 : i32
    %c0_i32_1 = arith.constant 0 : i32
    return %c0_i32, %c0_i32_0 : i32, i32
  }
  func.func @transform_3(%arg0: i32) -> (i32, i32) {
    %c0_i32 = arith.constant 0 : i32
    %c0_i32_0 = arith.constant 0 : i32
    return %arg0, %c0_i32 : i32, i32
  }
}

module attributes {stable_mosaic.version = 11 : i64} {
  func.func @_fused_mlp_kernel(%arg0: i32, %arg1: memref<64x1568xbf16, #tpu.memory_space<vmem>>, %arg2: memref<1568x64xbf16, #tpu.memory_space<vmem>>, %arg3: memref<1x64xf32, #tpu.memory_space<vmem>>, %arg4: memref<64x64xbf16, #tpu.memory_space<vmem>>, %arg5: memref<1x64xf32, #tpu.memory_space<vmem>>, %arg6: memref<64x128xbf16, #tpu.memory_space<vmem>>, %arg7: memref<1x128xf32, #tpu.memory_space<vmem>>, %arg8: memref<64x128xf32, #tpu.memory_space<vmem>>) attributes {dimension_semantics = [#tpu.dimension_semantics<parallel>], iteration_bounds = array<i64: 1>, scalar_prefetch = 0 : i64, scratch_operands = 0 : i64, tpu.core_type = #tpu.core_type<tc>, window_params = [{transform_indices = @transform_0, window_bounds = array<i64: 64, 1568>}, {pipeline_mode = #tpu.pipeline_mode<synchronous>, transform_indices = @transform_1, window_bounds = array<i64: 1568, 64>}, {pipeline_mode = #tpu.pipeline_mode<synchronous>, transform_indices = @transform_2, window_bounds = array<i64: 1, 64>}, {pipeline_mode = #tpu.pipeline_mode<synchronous>, transform_indices = @transform_3, window_bounds = array<i64: 64, 64>}, {pipeline_mode = #tpu.pipeline_mode<synchronous>, transform_indices = @transform_4, window_bounds = array<i64: 1, 64>}, {pipeline_mode = #tpu.pipeline_mode<synchronous>, transform_indices = @transform_5, window_bounds = array<i64: 64, 128>}, {pipeline_mode = #tpu.pipeline_mode<synchronous>, transform_indices = @transform_6, window_bounds = array<i64: 1, 128>}, {transform_indices = @transform_7, window_bounds = array<i64: 64, 128>}]} {
    %c0 = arith.constant 0 : index
    %c0_0 = arith.constant 0 : index
    %0 = vector.load %arg1[%c0, %c0_0] : memref<64x1568xbf16, #tpu.memory_space<vmem>>, vector<64x1568xbf16>
    %c0_1 = arith.constant 0 : index
    %c0_2 = arith.constant 0 : index
    %1 = vector.load %arg2[%c0_1, %c0_2] : memref<1568x64xbf16, #tpu.memory_space<vmem>>, vector<1568x64xbf16>
    %cst = arith.constant dense<0.000000e+00> : vector<64x64xf32>
    %2 = tpu.matmul %0, %1, %cst {dimension_numbers = #tpu.dot_dimension_numbers<[1], [0], [0], [1], [0, 0, 1, 1], [], []>} : vector<64x1568xbf16>, vector<1568x64xbf16>, vector<64x64xf32> -> vector<64x64xf32>
    %c0_3 = arith.constant 0 : index
    %c0_4 = arith.constant 0 : index
    %3 = vector.load %arg3[%c0_3, %c0_4] : memref<1x64xf32, #tpu.memory_space<vmem>>, vector<1x64xf32>
    %4 = vector.broadcast %3 : vector<1x64xf32> to vector<64x64xf32>
    %5 = arith.addf %2, %4 : vector<64x64xf32>
    %cst_5 = arith.constant 0.000000e+00 : f32
    %6 = vector.broadcast %cst_5 : f32 to vector<64x64xf32>
    %7 = arith.maximumf %5, %6 : vector<64x64xf32>
    %8 = arith.truncf %7 : vector<64x64xf32> to vector<64x64xbf16>
    %c0_6 = arith.constant 0 : index
    %c0_7 = arith.constant 0 : index
    %9 = vector.load %arg4[%c0_6, %c0_7] : memref<64x64xbf16, #tpu.memory_space<vmem>>, vector<64x64xbf16>
    %cst_8 = arith.constant dense<0.000000e+00> : vector<64x64xf32>
    %10 = tpu.matmul %8, %9, %cst_8 {dimension_numbers = #tpu.dot_dimension_numbers<[1], [0], [0], [1], [0, 0, 1, 1], [], []>} : vector<64x64xbf16>, vector<64x64xbf16>, vector<64x64xf32> -> vector<64x64xf32>
    %c0_9 = arith.constant 0 : index
    %c0_10 = arith.constant 0 : index
    %11 = vector.load %arg5[%c0_9, %c0_10] : memref<1x64xf32, #tpu.memory_space<vmem>>, vector<1x64xf32>
    %12 = vector.broadcast %11 : vector<1x64xf32> to vector<64x64xf32>
    %13 = arith.addf %10, %12 : vector<64x64xf32>
    %cst_11 = arith.constant 0.000000e+00 : f32
    %14 = vector.broadcast %cst_11 : f32 to vector<64x64xf32>
    %15 = arith.maximumf %13, %14 : vector<64x64xf32>
    %16 = arith.truncf %15 : vector<64x64xf32> to vector<64x64xbf16>
    %c0_12 = arith.constant 0 : index
    %c0_13 = arith.constant 0 : index
    %17 = vector.load %arg6[%c0_12, %c0_13] : memref<64x128xbf16, #tpu.memory_space<vmem>>, vector<64x128xbf16>
    %cst_14 = arith.constant dense<0.000000e+00> : vector<64x128xf32>
    %18 = tpu.matmul %16, %17, %cst_14 {dimension_numbers = #tpu.dot_dimension_numbers<[1], [0], [0], [1], [0, 0, 1, 1], [], []>} : vector<64x64xbf16>, vector<64x128xbf16>, vector<64x128xf32> -> vector<64x128xf32>
    %c0_15 = arith.constant 0 : index
    %c0_16 = arith.constant 0 : index
    %19 = vector.load %arg7[%c0_15, %c0_16] : memref<1x128xf32, #tpu.memory_space<vmem>>, vector<1x128xf32>
    %20 = vector.broadcast %19 : vector<1x128xf32> to vector<64x128xf32>
    %21 = arith.addf %18, %20 : vector<64x128xf32>
    %c0_17 = arith.constant 0 : index
    %c0_18 = arith.constant 0 : index
    %22 = vector.load %arg8[%c0_17, %c0_18] : memref<64x128xf32, #tpu.memory_space<vmem>>, vector<64x128xf32>
    tpu.vector_store %arg8[%c0_17, %c0_18], %21 {strides = array<i32>} : memref<64x128xf32, #tpu.memory_space<vmem>>, vector<64x128xf32>,
    return
  }
  func.func @transform_0(%arg0: i32) -> (i32, i32) {
    %c0_i32 = arith.constant 0 : i32
    %c0_i32_0 = arith.constant 0 : i32
    return %arg0, %c0_i32 : i32, i32
  }
  func.func @transform_1(%arg0: i32) -> (i32, i32) {
    %c0_i32 = arith.constant 0 : i32
    %c0_i32_0 = arith.constant 0 : i32
    %c0_i32_1 = arith.constant 0 : i32
    return %c0_i32, %c0_i32_0 : i32, i32
  }
  func.func @transform_2(%arg0: i32) -> (i32, i32) {
    %c0_i32 = arith.constant 0 : i32
    %c0_i32_0 = arith.constant 0 : i32
    %c0_i32_1 = arith.constant 0 : i32
    return %c0_i32, %c0_i32_0 : i32, i32
  }
  func.func @transform_3(%arg0: i32) -> (i32, i32) {
    %c0_i32 = arith.constant 0 : i32
    %c0_i32_0 = arith.constant 0 : i32
    %c0_i32_1 = arith.constant 0 : i32
    return %c0_i32, %c0_i32_0 : i32, i32
  }
  func.func @transform_4(%arg0: i32) -> (i32, i32) {
    %c0_i32 = arith.constant 0 : i32
    %c0_i32_0 = arith.constant 0 : i32
    %c0_i32_1 = arith.constant 0 : i32
    return %c0_i32, %c0_i32_0 : i32, i32
  }
  func.func @transform_5(%arg0: i32) -> (i32, i32) {
    %c0_i32 = arith.constant 0 : i32
    %c0_i32_0 = arith.constant 0 : i32
    %c0_i32_1 = arith.constant 0 : i32
    return %c0_i32, %c0_i32_0 : i32, i32
  }
  func.func @transform_6(%arg0: i32) -> (i32, i32) {
    %c0_i32 = arith.constant 0 : i32
    %c0_i32_0 = arith.constant 0 : i32
    %c0_i32_1 = arith.constant 0 : i32
    return %c0_i32, %c0_i32_0 : i32, i32
  }
  func.func @transform_7(%arg0: i32) -> (i32, i32) {
    %c0_i32 = arith.constant 0 : i32
    %c0_i32_0 = arith.constant 0 : i32
    return %arg0, %c0_i32 : i32, i32
  }
}

</mosaic_0001>

<bundles_post_ra>
// kernel: faster_rcnn_eval_forward.10
= control target key start
LH: loop header
LB: loop body
LE: loop exit
PB: predicated region body
PF: predicated region fallthrough
CT: control target
= control target key end

     0   :  { %vm358_vm0 = vcmask 1044480   ;;  %vm359_vm1 = vcmask 1045504   ;;  %vm261_vm2 = vcmask 220160   ;;  %v1379_v1 = vmov 65535   ;;  %s1859_s1 = inlined_call_operand.vmem [shape: bf16[27,16], index: 1, kind: input, shape index: {}]   ;;  %s1860_s0 = inlined_call_operand.vmem [shape: bf16[512,27], index: 0, kind: input, shape index: {}]   ;;  %s1861_s2 = inlined_call_operand.vmem [shape: f32[1,16], index: 2, kind: input, shape index: {}]   ;;  %s1862_s3 = inlined_call_operand.vmem [shape: bf16[512,16], index: 3, kind: output, shape index: {}]  }
   0x1   :  { %v1345_v0 = vld [vmem:[%s1859_s1] sm:$0xff]   ;;  %v360_v2 = vsel %vm358_vm0, 4294967295, %v1379_v1  ;;  %v1346_v3 = vld [vmem:[%s1859_s1 + $0x8] sm:$0x3f]   ;;  %v1351_v10 = vld [vmem:[%s1860_s0 + $0x10] sm:$0xff]   ;;  %vm974_vm3 = vcmask 125952  }
   0x2   :  { %1272 = vmatprep.subr.bf16.mxu0 %v1345_v0  ;;  %1340 = vmatprep.subr.bf16.mxu1 %v1345_v0  ;;  %v361_v4 = vsel %vm359_vm1, %v360_v2, 0  ;;  %v1347_v5 = vld [vmem:[%s1860_s0] sm:$0xff]   ;;  %v1349_v8 = vld [vmem:[%s1860_s0 + $0x8] sm:$0xff]   ;;  %v1352_v11 = vld [vmem:[%s1860_s0 + $0x90] sm:$0xff]  }
   0x3   :  { %1273 = vmatpush3.bf16.msra.mxu0 %v1345_v0  ;;  %1342 = vmatpush3.bf16.msra.mxu1 %v1345_v0  ;;  %v363_v6 = vand.u32 %v1346_v3, %v361_v4  ;;  %v1348_v7 = vld [vmem:[%s1860_s0 + $0x80] sm:$0xff]   ;;  %v1350_v9 = vld [vmem:[%s1860_s0 + $0x88] sm:$0xff]   ;;  %v1353_v12 = vld [vmem:[%s1860_s0 + $0x18] sm:$0xff]  }
   0x4   :  { %1276 = vmatprep.mubr.msk.bf16.mxu0 %vm261_vm2, %v1347_v5  ;;  %1308 = vmatprep.mubr.msk.bf16.mxu1 %vm261_vm2, %v1348_v7  ;;  %v1354_v13 = vld [vmem:[%s1860_s0 + $0x98] sm:$0xff]   ;;  %v1355_v14 = vld [vmem:[%s1860_s0 + $0x20] sm:$0xff]   ;;  %v1357_v16 = vld [vmem:[%s1860_s0 + $0x28] sm:$0xff]  }
   0x5   :  { %1274 = vmatprep.subr.bf16.mxu0 %v363_v6  ;;  %1341 = vmatprep.subr.bf16.mxu1 %v363_v6  ;;  %v1356_v15 = vld [vmem:[%s1860_s0 + $0xa0] sm:$0xff]   ;;  %v1358_v17 = vld [vmem:[%s1860_s0 + $0xa8] sm:$0xff]   ;;  %v1359_v18 = vld [vmem:[%s1860_s0 + $0x30] sm:$0xff]  }
   0x6   :  { %v1360_v19 = vld [vmem:[%s1860_s0 + $0xb0] sm:$0xff]   ;;  %v1361_v20 = vld [vmem:[%s1860_s0 + $0x38] sm:$0xff]   ;;  %v1363_v22 = vld [vmem:[%s1860_s0 + $0x40] sm:$0xff]  }
   0x7   :  { %1275 = vmatpush3.bf16.msra.mxu0 %v363_v6  ;;  %1343 = vmatpush3.bf16.msra.mxu1 %v363_v6  ;;  %v1362_v21 = vld [vmem:[%s1860_s0 + $0xb8] sm:$0xff]   ;;  %v1364_v23 = vld [vmem:[%s1860_s0 + $0xc0] sm:$0xff]   ;;  %v1365_v24 = vld [vmem:[%s1860_s0 + $0x48] sm:$0xff]  }
   0x8   :  { %v1366_v25 = vld [vmem:[%s1860_s0 + $0xc8] sm:$0xff]   ;;  %v1367_v26 = vld [vmem:[%s1860_s0 + $0x50] sm:$0xff]   ;;  %v1369_v28 = vld [vmem:[%s1860_s0 + $0x58] sm:$0xff]  }
   0x9   :  { %v1368_v27 = vld [vmem:[%s1860_s0 + $0xd0] sm:$0xff]   ;;  %v1370_v29 = vld [vmem:[%s1860_s0 + $0xd8] sm:$0xff]   ;;  %v1371_v30 = vld [vmem:[%s1860_s0 + $0x60] sm:$0xff]  }
   0xa   :  { %1277 = vmatmul.mubr.msk.bf16.vlgmr.msra.gmra.mrb[0].mxu0 %vm261_vm2, %v1349_v8  ;;  %1309 = vmatmul.mubr.msk.bf16.vlgmr.msra.gmra.mrb[0].mxu1 %vm261_vm2, %v1350_v9  ;;  %v1372_v31 = vld [vmem:[%s1860_s0 + $0xe0] sm:$0xff]   ;;  %v1373_v32 = vld [vmem:[%s1860_s0 + $0x68] sm:$0xff]   ;;  %v1375_v34 = vld [vmem:[%s1860_s0 + $0x70] sm:$0xff]  }
   0xb   :  { %1280 = vmatprep.mubr.msk.bf16.mxu0 %vm261_vm2, %v1351_v10  ;;  %1312 = vmatprep.mubr.msk.bf16.mxu1 %vm261_vm2, %v1352_v11  ;;  %v1374_v33 = vld [vmem:[%s1860_s0 + $0xe8] sm:$0xff]   ;;  %v1376_v35 = vld [vmem:[%s1860_s0 + $0xf0] sm:$0xff]   ;;  %v1377_v36 = vld [vmem:[%s1860_s0 + $0x78] sm:$0xff]  }
   0xc   :  { %v1378_v37 = vld [vmem:[%s1860_s0 + $0xf8] sm:$0xff]   ;;  %v1537_v38 = vld [vmem:[%s1861_s2] ss:$0 sm:$0xff] }
  0x12   :  { %1281 = vmatmul.mubr.msk.bf16.gmra.mrb[4].mxu0 %vm261_vm2, %v1353_v12  ;;  %1313 = vmatmul.mubr.msk.bf16.gmra.mrb[4].mxu1 %vm261_vm2, %v1354_v13 }
  0x13   :  { %1284 = vmatprep.mubr.msk.bf16.mxu0 %vm261_vm2, %v1355_v14  ;;  %1316 = vmatprep.mubr.msk.bf16.mxu1 %vm261_vm2, %v1356_v15 }
  0x1a   :  { %1285 = vmatmul.mubr.msk.bf16.gmra.mrb[8].mxu0 %vm261_vm2, %v1357_v16  ;;  %1317 = vmatmul.mubr.msk.bf16.gmra.mrb[8].mxu1 %vm261_vm2, %v1358_v17 }
  0x1b   :  { %1288 = vmatprep.mubr.msk.bf16.mxu0 %vm261_vm2, %v1359_v18  ;;  %1320 = vmatprep.mubr.msk.bf16.mxu1 %vm261_vm2, %v1360_v19 }
  0x22   :  { %1289 = vmatmul.mubr.msk.bf16.gmra.mrb[12].mxu0 %vm261_vm2, %v1361_v20  ;;  %1321 = vmatmul.mubr.msk.bf16.gmra.mrb[12].mxu1 %vm261_vm2, %v1362_v21 }
  0x23   :  { %1292 = vmatprep.mubr.msk.bf16.mxu0 %vm261_vm2, %v1363_v22  ;;  %1324 = vmatprep.mubr.msk.bf16.mxu1 %vm261_vm2, %v1364_v23 }
  0x2a   :  { %1293 = vmatmul.mubr.msk.bf16.gmra.mrb[16].mxu0 %vm261_vm2, %v1365_v24  ;;  %1325 = vmatmul.mubr.msk.bf16.gmra.mrb[16].mxu1 %vm261_vm2, %v1366_v25 }
  0x2b   :  { %1296 = vmatprep.mubr.msk.bf16.mxu0 %vm261_vm2, %v1367_v26  ;;  %1328 = vmatprep.mubr.msk.bf16.mxu1 %vm261_vm2, %v1368_v27 }
  0x32   :  { %1297 = vmatmul.mubr.msk.bf16.gmra.mrb[20].mxu0 %vm261_vm2, %v1369_v28  ;;  %1329 = vmatmul.mubr.msk.bf16.gmra.mrb[20].mxu1 %vm261_vm2, %v1370_v29 }
  0x33   :  { %1300 = vmatprep.mubr.msk.bf16.mxu0 %vm261_vm2, %v1371_v30  ;;  %1332 = vmatprep.mubr.msk.bf16.mxu1 %vm261_vm2, %v1372_v31 }
  0x3a   :  { %1301 = vmatmul.mubr.msk.bf16.gmra.mrb[24].mxu0 %vm261_vm2, %v1373_v32  ;;  %1333 = vmatmul.mubr.msk.bf16.gmra.mrb[24].mxu1 %vm261_vm2, %v1374_v33 }
  0x3b   :  { %1304 = vmatprep.mubr.msk.bf16.mxu0 %vm261_vm2, %v1375_v34  ;;  %1336 = vmatprep.mubr.msk.bf16.mxu1 %vm261_vm2, %v1376_v35 }
  0x42   :  { %1305 = vmatmul.mubr.msk.bf16.gmra.mrb[28].mxu0 %vm261_vm2, %v1377_v36  ;;  %1337 = vmatmul.mubr.msk.bf16.gmra.mrb[28].mxu1 %vm261_vm2, %v1378_v37 }
  0xdd   :  { %v1278_v39 = vpop.f32.mrb[0].mxu0  ;;  %v1310_v40 = vpop.f32.mrb[0].mxu1 }
  0xde   :  { %v408_v41 = vadd.f32 %v1278_v39, %v1537_v38  ;;  %v536_v42 = vadd.f32 %v1310_v40, %v1537_v38  ;;  %v399_v43 = vpop.f32.mrb[1].mxu0  ;;  %v527_v44 = vpop.f32.mrb[1].mxu1 }
  0xdf   :  { %v400_v45 = vadd.f32 %v1537_v38, %v399_v43  ;;  %v528_v46 = vadd.f32 %v1537_v38, %v527_v44  ;;  %v1279_v47 = vpop.f32.mrb[2].mxu0  ;;  %v1311_v48 = vpop.f32.mrb[2].mxu1 }
  0xe0   :  { %v656_v49 = vmax.f32 %v408_v41, 0.0  ;;  %v688_v50 = vmax.f32 %v536_v42, 0.0  ;;  %v411_v51 = vadd.f32 %v1279_v47, %v1537_v38  ;;  %v539_v52 = vadd.f32 %v1311_v48, %v1537_v38  ;;  %v402_v53 = vpop.f32.mrb[3].mxu0  ;;  %v530_v54 = vpop.f32.mrb[3].mxu1 }
  0xe1   :  { %v654_v55 = vmax.f32 %v400_v45, 0.0  ;;  %v686_v56 = vmax.f32 %v528_v46, 0.0  ;;  %v403_v57 = vadd.f32 %v1537_v38, %v402_v53  ;;  %v531_v58 = vadd.f32 %v1537_v38, %v530_v54 }
  0xe2   :  { %v1176_v59 = vpack.c.bf16 %v656_v49, %v656_v49  ;;  %v1208_v60 = vpack.c.bf16 %v688_v50, %v688_v50  ;;  %v657_v61 = vmax.f32 %v411_v51, 0.0  ;;  %v689_v62 = vmax.f32 %v539_v52, 0.0 }
  0xe3   :  { %v1174_v63 = vpack.c.bf16 %v654_v55, %v654_v55  ;;  %v1206_v0 = vpack.c.bf16 %v686_v56, %v686_v56  ;;  %v655_v1 = vmax.f32 %v403_v57, 0.0  ;;  %v687_v2 = vmax.f32 %v531_v58, 0.0 }
  0xe4   :  { %977 = vst.msk [vmem:[%s1862_s3 + $0x8] sm:$0xf] %vm974_vm3, %v1176_v59  ;;  %1009 = vst.msk [vmem:[%s1862_s3 + $0x88] sm:$0xf] %vm974_vm3, %v1208_v60  ;;  %v1177_v3 = vpack.c.bf16 %v657_v61, %v657_v61  ;;  %v1209_v4 = vpack.c.bf16 %v689_v62, %v689_v62 }
  0xe5   :  { %975 = vst.msk [vmem:[%s1862_s3] sm:$0xf] %vm974_vm3, %v1174_v63  ;;  %1007 = vst.msk [vmem:[%s1862_s3 + $0x80] sm:$0xf] %vm974_vm3, %v1206_v0  ;;  %v1175_v5 = vpack.c.bf16 %v655_v1, %v655_v1  ;;  %v1207_v6 = vpack.c.bf16 %v687_v2, %v687_v2  ;;  %v1282_v7 = vpop.f32.mrb[4].mxu0  ;;  %v1314_v8 = vpop.f32.mrb[4].mxu1 }
  0xe6   :  { %978 = vst.msk [vmem:[%s1862_s3 + $0xc] sm:$0xf] %vm974_vm3, %v1177_v3  ;;  %1010 = vst.msk [vmem:[%s1862_s3 + $0x8c] sm:$0xf] %vm974_vm3, %v1209_v4  ;;  %v424_v9 = vadd.f32 %v1282_v7, %v1537_v38  ;;  %v552_v10 = vadd.f32 %v1314_v8, %v1537_v38  ;;  %v415_v11 = vpop.f32.mrb[5].mxu0  ;;  %v543_v12 = vpop.f32.mrb[5].mxu1 }
  0xe7   :  { %976 = vst.msk [vmem:[%s1862_s3 + $0x4] sm:$0xf] %vm974_vm3, %v1175_v5  ;;  %1008 = vst.msk [vmem:[%s1862_s3 + $0x84] sm:$0xf] %vm974_vm3, %v1207_v6  ;;  %v416_v13 = vadd.f32 %v1537_v38, %v415_v11  ;;  %v544_v14 = vadd.f32 %v1537_v38, %v543_v12  ;;  %v1283_v15 = vpop.f32.mrb[6].mxu0  ;;  %v1315_v16 = vpop.f32.mrb[6].mxu1 }
  0xe8   :  { %v660_v17 = vmax.f32 %v424_v9, 0.0  ;;  %v692_v18 = vmax.f32 %v552_v10, 0.0  ;;  %v427_v19 = vadd.f32 %v1283_v15, %v1537_v38  ;;  %v555_v20 = vadd.f32 %v1315_v16, %v1537_v38  ;;  %v418_v21 = vpop.f32.mrb[7].mxu0  ;;  %v546_v22 = vpop.f32.mrb[7].mxu1 }
  0xe9   :  { %v658_v23 = vmax.f32 %v416_v13, 0.0  ;;  %v690_v24 = vmax.f32 %v544_v14, 0.0  ;;  %v419_v25 = vadd.f32 %v1537_v38, %v418_v21  ;;  %v547_v26 = vadd.f32 %v1537_v38, %v546_v22 }
  0xea   :  { %v1180_v27 = vpack.c.bf16 %v660_v17, %v660_v17  ;;  %v1212_v28 = vpack.c.bf16 %v692_v18, %v692_v18  ;;  %v661_v29 = vmax.f32 %v427_v19, 0.0  ;;  %v693_v30 = vmax.f32 %v555_v20, 0.0 }
  0xeb   :  { %v1178_v31 = vpack.c.bf16 %v658_v23, %v658_v23  ;;  %v1210_v32 = vpack.c.bf16 %v690_v24, %v690_v24  ;;  %v659_v33 = vmax.f32 %v419_v25, 0.0  ;;  %v691_v34 = vmax.f32 %v547_v26, 0.0 }
  0xec   :  { %981 = vst.msk [vmem:[%s1862_s3 + $0x18] sm:$0xf] %vm974_vm3, %v1180_v27  ;;  %1013 = vst.msk [vmem:[%s1862_s3 + $0x98] sm:$0xf] %vm974_vm3, %v1212_v28  ;;  %v1181_v35 = vpack.c.bf16 %v661_v29, %v661_v29  ;;  %v1213_v36 = vpack.c.bf16 %v693_v30, %v693_v30 }
  0xed   :  { %979 = vst.msk [vmem:[%s1862_s3 + $0x10] sm:$0xf] %vm974_vm3, %v1178_v31  ;;  %1011 = vst.msk [vmem:[%s1862_s3 + $0x90] sm:$0xf] %vm974_vm3, %v1210_v32  ;;  %v1179_v37 = vpack.c.bf16 %v659_v33, %v659_v33  ;;  %v1211_v39 = vpack.c.bf16 %v691_v34, %v691_v34  ;;  %v1286_v40 = vpop.f32.mrb[8].mxu0  ;;  %v1318_v41 = vpop.f32.mrb[8].mxu1 }
  0xee   :  { %982 = vst.msk [vmem:[%s1862_s3 + $0x1c] sm:$0xf] %vm974_vm3, %v1181_v35  ;;  %1014 = vst.msk [vmem:[%s1862_s3 + $0x9c] sm:$0xf] %vm974_vm3, %v1213_v36  ;;  %v440_v42 = vadd.f32 %v1286_v40, %v1537_v38  ;;  %v568_v43 = vadd.f32 %v1318_v41, %v1537_v38  ;;  %v431_v44 = vpop.f32.mrb[9].mxu0  ;;  %v559_v45 = vpop.f32.mrb[9].mxu1 }
  0xef   :  { %980 = vst.msk [vmem:[%s1862_s3 + $0x14] sm:$0xf] %vm974_vm3, %v1179_v37  ;;  %1012 = vst.msk [vmem:[%s1862_s3 + $0x94] sm:$0xf] %vm974_vm3, %v1211_v39  ;;  %v432_v46 = vadd.f32 %v1537_v38, %v431_v44  ;;  %v560_v47 = vadd.f32 %v1537_v38, %v559_v45  ;;  %v1287_v48 = vpop.f32.mrb[10].mxu0  ;;  %v1319_v49 = vpop.f32.mrb[10].mxu1 }
  0xf0   :  { %v664_v50 = vmax.f32 %v440_v42, 0.0  ;;  %v696_v51 = vmax.f32 %v568_v43, 0.0  ;;  %v443_v52 = vadd.f32 %v1287_v48, %v1537_v38  ;;  %v571_v53 = vadd.f32 %v1319_v49, %v1537_v38  ;;  %v434_v54 = vpop.f32.mrb[11].mxu0  ;;  %v562_v55 = vpop.f32.mrb[11].mxu1 }
  0xf1   :  { %v662_v56 = vmax.f32 %v432_v46, 0.0  ;;  %v694_v57 = vmax.f32 %v560_v47, 0.0  ;;  %v435_v58 = vadd.f32 %v1537_v38, %v434_v54  ;;  %v563_v59 = vadd.f32 %v1537_v38, %v562_v55 }
  0xf2   :  { %v1184_v60 = vpack.c.bf16 %v664_v50, %v664_v50  ;;  %v1216_v61 = vpack.c.bf16 %v696_v51, %v696_v51  ;;  %v665_v62 = vmax.f32 %v443_v52, 0.0  ;;  %v697_v63 = vmax.f32 %v571_v53, 0.0 }
  0xf3   :  { %v1182_v0 = vpack.c.bf16 %v662_v56, %v662_v56  ;;  %v1214_v1 = vpack.c.bf16 %v694_v57, %v694_v57  ;;  %v663_v2 = vmax.f32 %v435_v58, 0.0  ;;  %v695_v3 = vmax.f32 %v563_v59, 0.0 }
  0xf4   :  { %985 = vst.msk [vmem:[%s1862_s3 + $0x28] sm:$0xf] %vm974_vm3, %v1184_v60  ;;  %1017 = vst.msk [vmem:[%s1862_s3 + $0xa8] sm:$0xf] %vm974_vm3, %v1216_v61  ;;  %v1185_v4 = vpack.c.bf16 %v665_v62, %v665_v62  ;;  %v1217_v5 = vpack.c.bf16 %v697_v63, %v697_v63 }
  0xf5   :  { %983 = vst.msk [vmem:[%s1862_s3 + $0x20] sm:$0xf] %vm974_vm3, %v1182_v0  ;;  %1015 = vst.msk [vmem:[%s1862_s3 + $0xa0] sm:$0xf] %vm974_vm3, %v1214_v1  ;;  %v1183_v6 = vpack.c.bf16 %v663_v2, %v663_v2  ;;  %v1215_v7 = vpack.c.bf16 %v695_v3, %v695_v3  ;;  %v1290_v8 = vpop.f32.mrb[12].mxu0  ;;  %v1322_v9 = vpop.f32.mrb[12].mxu1 }
  0xf6   :  { %986 = vst.msk [vmem:[%s1862_s3 + $0x2c] sm:$0xf] %vm974_vm3, %v1185_v4  ;;  %1018 = vst.msk [vmem:[%s1862_s3 + $0xac] sm:$0xf] %vm974_vm3, %v1217_v5  ;;  %v456_v10 = vadd.f32 %v1290_v8, %v1537_v38  ;;  %v584_v11 = vadd.f32 %v1322_v9, %v1537_v38  ;;  %v447_v12 = vpop.f32.mrb[13].mxu0  ;;  %v575_v13 = vpop.f32.mrb[13].mxu1 }
  0xf7   :  { %984 = vst.msk [vmem:[%s1862_s3 + $0x24] sm:$0xf] %vm974_vm3, %v1183_v6  ;;  %1016 = vst.msk [vmem:[%s1862_s3 + $0xa4] sm:$0xf] %vm974_vm3, %v1215_v7  ;;  %v448_v14 = vadd.f32 %v1537_v38, %v447_v12  ;;  %v576_v15 = vadd.f32 %v1537_v38, %v575_v13  ;;  %v1291_v16 = vpop.f32.mrb[14].mxu0  ;;  %v1323_v17 = vpop.f32.mrb[14].mxu1 }
  0xf8   :  { %v668_v18 = vmax.f32 %v456_v10, 0.0  ;;  %v700_v19 = vmax.f32 %v584_v11, 0.0  ;;  %v459_v20 = vadd.f32 %v1291_v16, %v1537_v38  ;;  %v587_v21 = vadd.f32 %v1323_v17, %v1537_v38  ;;  %v450_v22 = vpop.f32.mrb[15].mxu0  ;;  %v578_v23 = vpop.f32.mrb[15].mxu1 }
  0xf9   :  { %v666_v24 = vmax.f32 %v448_v14, 0.0  ;;  %v698_v25 = vmax.f32 %v576_v15, 0.0  ;;  %v451_v26 = vadd.f32 %v1537_v38, %v450_v22  ;;  %v579_v27 = vadd.f32 %v1537_v38, %v578_v23 }
  0xfa   :  { %v1188_v28 = vpack.c.bf16 %v668_v18, %v668_v18  ;;  %v1220_v29 = vpack.c.bf16 %v700_v19, %v700_v19  ;;  %v669_v30 = vmax.f32 %v459_v20, 0.0  ;;  %v701_v31 = vmax.f32 %v587_v21, 0.0 }
  0xfb   :  { %v1186_v32 = vpack.c.bf16 %v666_v24, %v666_v24  ;;  %v1218_v33 = vpack.c.bf16 %v698_v25, %v698_v25  ;;  %v667_v34 = vmax.f32 %v451_v26, 0.0  ;;  %v699_v35 = vmax.f32 %v579_v27, 0.0 }
  0xfc   :  { %989 = vst.msk [vmem:[%s1862_s3 + $0x38] sm:$0xf] %vm974_vm3, %v1188_v28  ;;  %1021 = vst.msk [vmem:[%s1862_s3 + $0xb8] sm:$0xf] %vm974_vm3, %v1220_v29  ;;  %v1189_v36 = vpack.c.bf16 %v669_v30, %v669_v30  ;;  %v1221_v37 = vpack.c.bf16 %v701_v31, %v701_v31 }
  0xfd   :  { %987 = vst.msk [vmem:[%s1862_s3 + $0x30] sm:$0xf] %vm974_vm3, %v1186_v32  ;;  %1019 = vst.msk [vmem:[%s1862_s3 + $0xb0] sm:$0xf] %vm974_vm3, %v1218_v33  ;;  %v1187_v39 = vpack.c.bf16 %v667_v34, %v667_v34  ;;  %v1219_v40 = vpack.c.bf16 %v699_v35, %v699_v35  ;;  %v1294_v41 = vpop.f32.mrb[16].mxu0  ;;  %v1326_v42 = vpop.f32.mrb[16].mxu1 }
  0xfe   :  { %990 = vst.msk [vmem:[%s1862_s3 + $0x3c] sm:$0xf] %vm974_vm3, %v1189_v36  ;;  %1022 = vst.msk [vmem:[%s1862_s3 + $0xbc] sm:$0xf] %vm974_vm3, %v1221_v37  ;;  %v472_v43 = vadd.f32 %v1294_v41, %v1537_v38  ;;  %v600_v44 = vadd.f32 %v1326_v42, %v1537_v38  ;;  %v463_v45 = vpop.f32.mrb[17].mxu0  ;;  %v591_v46 = vpop.f32.mrb[17].mxu1 }
  0xff   :  { %988 = vst.msk [vmem:[%s1862_s3 + $0x34] sm:$0xf] %vm974_vm3, %v1187_v39  ;;  %1020 = vst.msk [vmem:[%s1862_s3 + $0xb4] sm:$0xf] %vm974_vm3, %v1219_v40  ;;  %v464_v47 = vadd.f32 %v1537_v38, %v463_v45  ;;  %v592_v48 = vadd.f32 %v1537_v38, %v591_v46  ;;  %v1295_v49 = vpop.f32.mrb[18].mxu0  ;;  %v1327_v50 = vpop.f32.mrb[18].mxu1 }
 0x100   :  { %v672_v51 = vmax.f32 %v472_v43, 0.0  ;;  %v704_v52 = vmax.f32 %v600_v44, 0.0  ;;  %v475_v53 = vadd.f32 %v1295_v49, %v1537_v38  ;;  %v603_v54 = vadd.f32 %v1327_v50, %v1537_v38  ;;  %v466_v55 = vpop.f32.mrb[19].mxu0  ;;  %v594_v56 = vpop.f32.mrb[19].mxu1 }
 0x101   :  { %v670_v57 = vmax.f32 %v464_v47, 0.0  ;;  %v702_v58 = vmax.f32 %v592_v48, 0.0  ;;  %v467_v59 = vadd.f32 %v1537_v38, %v466_v55  ;;  %v595_v60 = vadd.f32 %v1537_v38, %v594_v56 }
 0x102   :  { %v1192_v61 = vpack.c.bf16 %v672_v51, %v672_v51  ;;  %v1224_v62 = vpack.c.bf16 %v704_v52, %v704_v52  ;;  %v673_v63 = vmax.f32 %v475_v53, 0.0  ;;  %v705_v0 = vmax.f32 %v603_v54, 0.0 }
 0x103   :  { %v1190_v1 = vpack.c.bf16 %v670_v57, %v670_v57  ;;  %v1222_v2 = vpack.c.bf16 %v702_v58, %v702_v58  ;;  %v671_v3 = vmax.f32 %v467_v59, 0.0  ;;  %v703_v4 = vmax.f32 %v595_v60, 0.0 }
 0x104   :  { %993 = vst.msk [vmem:[%s1862_s3 + $0x48] sm:$0xf] %vm974_vm3, %v1192_v61  ;;  %1025 = vst.msk [vmem:[%s1862_s3 + $0xc8] sm:$0xf] %vm974_vm3, %v1224_v62  ;;  %v1193_v5 = vpack.c.bf16 %v673_v63, %v673_v63  ;;  %v1225_v6 = vpack.c.bf16 %v705_v0, %v705_v0 }
 0x105   :  { %991 = vst.msk [vmem:[%s1862_s3 + $0x40] sm:$0xf] %vm974_vm3, %v1190_v1  ;;  %1023 = vst.msk [vmem:[%s1862_s3 + $0xc0] sm:$0xf] %vm974_vm3, %v1222_v2  ;;  %v1191_v7 = vpack.c.bf16 %v671_v3, %v671_v3  ;;  %v1223_v8 = vpack.c.bf16 %v703_v4, %v703_v4  ;;  %v1298_v9 = vpop.f32.mrb[20].mxu0  ;;  %v1330_v10 = vpop.f32.mrb[20].mxu1 }
 0x106   :  { %994 = vst.msk [vmem:[%s1862_s3 + $0x4c] sm:$0xf] %vm974_vm3, %v1193_v5  ;;  %1026 = vst.msk [vmem:[%s1862_s3 + $0xcc] sm:$0xf] %vm974_vm3, %v1225_v6  ;;  %v488_v11 = vadd.f32 %v1298_v9, %v1537_v38  ;;  %v616_v12 = vadd.f32 %v1330_v10, %v1537_v38  ;;  %v479_v13 = vpop.f32.mrb[21].mxu0  ;;  %v607_v14 = vpop.f32.mrb[21].mxu1 }
 0x107   :  { %992 = vst.msk [vmem:[%s1862_s3 + $0x44] sm:$0xf] %vm974_vm3, %v1191_v7  ;;  %1024 = vst.msk [vmem:[%s1862_s3 + $0xc4] sm:$0xf] %vm974_vm3, %v1223_v8  ;;  %v480_v15 = vadd.f32 %v1537_v38, %v479_v13  ;;  %v608_v16 = vadd.f32 %v1537_v38, %v607_v14  ;;  %v1299_v17 = vpop.f32.mrb[22].mxu0  ;;  %v1331_v18 = vpop.f32.mrb[22].mxu1 }
 0x108   :  { %v676_v19 = vmax.f32 %v488_v11, 0.0  ;;  %v708_v20 = vmax.f32 %v616_v12, 0.0  ;;  %v491_v21 = vadd.f32 %v1299_v17, %v1537_v38  ;;  %v619_v22 = vadd.f32 %v1331_v18, %v1537_v38  ;;  %v482_v23 = vpop.f32.mrb[23].mxu0  ;;  %v610_v24 = vpop.f32.mrb[23].mxu1 }
 0x109   :  { %v674_v25 = vmax.f32 %v480_v15, 0.0  ;;  %v706_v26 = vmax.f32 %v608_v16, 0.0  ;;  %v483_v27 = vadd.f32 %v1537_v38, %v482_v23  ;;  %v611_v28 = vadd.f32 %v1537_v38, %v610_v24 }
 0x10a   :  { %v1196_v29 = vpack.c.bf16 %v676_v19, %v676_v19  ;;  %v1228_v30 = vpack.c.bf16 %v708_v20, %v708_v20  ;;  %v677_v31 = vmax.f32 %v491_v21, 0.0  ;;  %v709_v32 = vmax.f32 %v619_v22, 0.0 }
 0x10b   :  { %v1194_v33 = vpack.c.bf16 %v674_v25, %v674_v25  ;;  %v1226_v34 = vpack.c.bf16 %v706_v26, %v706_v26  ;;  %v675_v35 = vmax.f32 %v483_v27, 0.0  ;;  %v707_v36 = vmax.f32 %v611_v28, 0.0 }
 0x10c   :  { %997 = vst.msk [vmem:[%s1862_s3 + $0x58] sm:$0xf] %vm974_vm3, %v1196_v29  ;;  %1029 = vst.msk [vmem:[%s1862_s3 + $0xd8] sm:$0xf] %vm974_vm3, %v1228_v30  ;;  %v1197_v37 = vpack.c.bf16 %v677_v31, %v677_v31  ;;  %v1229_v39 = vpack.c.bf16 %v709_v32, %v709_v32 }
 0x10d   :  { %995 = vst.msk [vmem:[%s1862_s3 + $0x50] sm:$0xf] %vm974_vm3, %v1194_v33  ;;  %1027 = vst.msk [vmem:[%s1862_s3 + $0xd0] sm:$0xf] %vm974_vm3, %v1226_v34  ;;  %v1195_v40 = vpack.c.bf16 %v675_v35, %v675_v35  ;;  %v1227_v41 = vpack.c.bf16 %v707_v36, %v707_v36  ;;  %v1302_v42 = vpop.f32.mrb[24].mxu0  ;;  %v1334_v43 = vpop.f32.mrb[24].mxu1 }
 0x10e   :  { %998 = vst.msk [vmem:[%s1862_s3 + $0x5c] sm:$0xf] %vm974_vm3, %v1197_v37  ;;  %1030 = vst.msk [vmem:[%s1862_s3 + $0xdc] sm:$0xf] %vm974_vm3, %v1229_v39  ;;  %v504_v44 = vadd.f32 %v1302_v42, %v1537_v38  ;;  %v632_v45 = vadd.f32 %v1334_v43, %v1537_v38  ;;  %v495_v46 = vpop.f32.mrb[25].mxu0  ;;  %v623_v47 = vpop.f32.mrb[25].mxu1 }
 0x10f   :  { %996 = vst.msk [vmem:[%s1862_s3 + $0x54] sm:$0xf] %vm974_vm3, %v1195_v40  ;;  %1028 = vst.msk [vmem:[%s1862_s3 + $0xd4] sm:$0xf] %vm974_vm3, %v1227_v41  ;;  %v496_v48 = vadd.f32 %v1537_v38, %v495_v46  ;;  %v624_v49 = vadd.f32 %v1537_v38, %v623_v47  ;;  %v1303_v50 = vpop.f32.mrb[26].mxu0  ;;  %v1335_v51 = vpop.f32.mrb[26].mxu1 }
 0x110   :  { %v680_v52 = vmax.f32 %v504_v44, 0.0  ;;  %v712_v53 = vmax.f32 %v632_v45, 0.0  ;;  %v507_v54 = vadd.f32 %v1303_v50, %v1537_v38  ;;  %v635_v55 = vadd.f32 %v1335_v51, %v1537_v38  ;;  %v498_v56 = vpop.f32.mrb[27].mxu0  ;;  %v626_v57 = vpop.f32.mrb[27].mxu1 }
 0x111   :  { %v678_v58 = vmax.f32 %v496_v48, 0.0  ;;  %v710_v59 = vmax.f32 %v624_v49, 0.0  ;;  %v499_v60 = vadd.f32 %v1537_v38, %v498_v56  ;;  %v627_v61 = vadd.f32 %v1537_v38, %v626_v57 }
 0x112   :  { %v1200_v62 = vpack.c.bf16 %v680_v52, %v680_v52  ;;  %v1232_v63 = vpack.c.bf16 %v712_v53, %v712_v53  ;;  %v681_v0 = vmax.f32 %v507_v54, 0.0  ;;  %v713_v1 = vmax.f32 %v635_v55, 0.0 }
 0x113   :  { %v1198_v2 = vpack.c.bf16 %v678_v58, %v678_v58  ;;  %v1230_v3 = vpack.c.bf16 %v710_v59, %v710_v59  ;;  %v679_v4 = vmax.f32 %v499_v60, 0.0  ;;  %v711_v5 = vmax.f32 %v627_v61, 0.0 }
 0x114   :  { %1001 = vst.msk [vmem:[%s1862_s3 + $0x68] sm:$0xf] %vm974_vm3, %v1200_v62  ;;  %1033 = vst.msk [vmem:[%s1862_s3 + $0xe8] sm:$0xf] %vm974_vm3, %v1232_v63  ;;  %v1201_v6 = vpack.c.bf16 %v681_v0, %v681_v0  ;;  %v1233_v7 = vpack.c.bf16 %v713_v1, %v713_v1 }
 0x115   :  { %999 = vst.msk [vmem:[%s1862_s3 + $0x60] sm:$0xf] %vm974_vm3, %v1198_v2  ;;  %1031 = vst.msk [vmem:[%s1862_s3 + $0xe0] sm:$0xf] %vm974_vm3, %v1230_v3  ;;  %v1199_v8 = vpack.c.bf16 %v679_v4, %v679_v4  ;;  %v1231_v9 = vpack.c.bf16 %v711_v5, %v711_v5  ;;  %v1306_v10 = vpop.f32.mrb[28].mxu0  ;;  %v1338_v11 = vpop.f32.mrb[28].mxu1 }
 0x116   :  { %1002 = vst.msk [vmem:[%s1862_s3 + $0x6c] sm:$0xf] %vm974_vm3, %v1201_v6  ;;  %1034 = vst.msk [vmem:[%s1862_s3 + $0xec] sm:$0xf] %vm974_vm3, %v1233_v7  ;;  %v520_v12 = vadd.f32 %v1306_v10, %v1537_v38  ;;  %v648_v13 = vadd.f32 %v1338_v11, %v1537_v38  ;;  %v511_v14 = vpop.f32.mrb[29].mxu0  ;;  %v639_v15 = vpop.f32.mrb[29].mxu1 }
 0x117   :  { %1000 = vst.msk [vmem:[%s1862_s3 + $0x64] sm:$0xf] %vm974_vm3, %v1199_v8  ;;  %1032 = vst.msk [vmem:[%s1862_s3 + $0xe4] sm:$0xf] %vm974_vm3, %v1231_v9  ;;  %v512_v16 = vadd.f32 %v1537_v38, %v511_v14  ;;  %v640_v17 = vadd.f32 %v1537_v38, %v639_v15  ;;  %v1307_v18 = vpop.f32.mrb[30].mxu0  ;;  %v1339_v19 = vpop.f32.mrb[30].mxu1 }
 0x118   :  { %v684_v20 = vmax.f32 %v520_v12, 0.0  ;;  %v716_v21 = vmax.f32 %v648_v13, 0.0  ;;  %v523_v22 = vadd.f32 %v1307_v18, %v1537_v38  ;;  %v651_v23 = vadd.f32 %v1339_v19, %v1537_v38  ;;  %v514_v24 = vpop.f32.mrb[31].mxu0  ;;  %v642_v25 = vpop.f32.mrb[31].mxu1 }
 0x119   :  { %v682_v26 = vmax.f32 %v512_v16, 0.0  ;;  %v714_v27 = vmax.f32 %v640_v17, 0.0  ;;  %v515_v28 = vadd.f32 %v1537_v38, %v514_v24  ;;  %v643_v29 = vadd.f32 %v1537_v38, %v642_v25 }
 0x11a   :  { %v1204_v30 = vpack.c.bf16 %v684_v20, %v684_v20  ;;  %v1236_v31 = vpack.c.bf16 %v716_v21, %v716_v21  ;;  %v685_v32 = vmax.f32 %v523_v22, 0.0  ;;  %v717_v33 = vmax.f32 %v651_v23, 0.0 }
 0x11b   :  { %v1202_v34 = vpack.c.bf16 %v682_v26, %v682_v26  ;;  %v1234_v35 = vpack.c.bf16 %v714_v27, %v714_v27  ;;  %v683_v36 = vmax.f32 %v515_v28, 0.0  ;;  %v715_v37 = vmax.f32 %v643_v29, 0.0 }
 0x11c   :  { %1005 = vst.msk [vmem:[%s1862_s3 + $0x78] sm:$0xf] %vm974_vm3, %v1204_v30  ;;  %1037 = vst.msk [vmem:[%s1862_s3 + $0xf8] sm:$0xf] %vm974_vm3, %v1236_v31  ;;  %v1205_v39 = vpack.c.bf16 %v685_v32, %v685_v32  ;;  %v1237_v38 = vpack.c.bf16 %v717_v33, %v717_v33 }
 0x11d   :  { %1003 = vst.msk [vmem:[%s1862_s3 + $0x70] sm:$0xf] %vm974_vm3, %v1202_v34  ;;  %1035 = vst.msk [vmem:[%s1862_s3 + $0xf0] sm:$0xf] %vm974_vm3, %v1234_v35  ;;  %v1203_v40 = vpack.c.bf16 %v683_v36, %v683_v36  ;;  %v1235_v41 = vpack.c.bf16 %v715_v37, %v715_v37 }
 0x11e   :  { %1006 = vst.msk [vmem:[%s1862_s3 + $0x7c] sm:$0xf] %vm974_vm3, %v1205_v39  ;;  %1038 = vst.msk [vmem:[%s1862_s3 + $0xfc] sm:$0xf] %vm974_vm3, %v1237_v38 }
 0x11f   :  { %1004 = vst.msk [vmem:[%s1862_s3 + $0x74] sm:$0xf] %vm974_vm3, %v1203_v40  ;;  %1036 = vst.msk [vmem:[%s1862_s3 + $0xf4] sm:$0xf] %vm974_vm3, %v1235_v41 }

// kernel: faster_rcnn_eval_forward.11
= control target key start
LH: loop header
LB: loop body
LE: loop exit
PB: predicated region body
PF: predicated region fallthrough
CT: control target
= control target key end

     0   :  { %v523_v0 = vmov 0   ;;  %vm182_vm0 = vcmask 130048   ;;  %vm384_vm1 = vcmask 257024   ;;  %s712_s1 = inlined_call_operand.vmem [shape: bf16[144,32], index: 1, kind: input, shape index: {}]   ;;  %s713_s0 = inlined_call_operand.vmem [shape: bf16[128,144], index: 0, kind: input, shape index: {}]   ;;  %s714_s2 = inlined_call_operand.vmem [shape: f32[1,32], index: 2, kind: input, shape index: {}]   ;;  %s715_s3 = inlined_call_operand.vmem [shape: bf16[128,32], index: 3, kind: output, shape index: {}]  }
   0x1   :  { %207 = vmatprep.subr.bf16.mxu0 %v523_v0  ;;  %471 = vmatprep.subr.bf16.mxu1 %v523_v0  ;;  %v490_v1 = vld [vmem:[%s712_s1] sm:$0xff]   ;;  %v491_v2 = vld [vmem:[%s712_s1 + $0x8] sm:$0xff]   ;;  %v492_v3 = vld [vmem:[%s712_s1 + $0x10] sm:$0xff]  }
   0x2   :  { %208 = vmatpush1.bf16.msra.mxu0 %v490_v1  ;;  %480 = vmatpush1.bf16.msra.mxu1 %v490_v1  ;;  %v493_v4 = vld [vmem:[%s712_s1 + $0x18] sm:$0xff]   ;;  %v501_v5 = vld [vmem:[%s713_s0 + $0x4] ss:$8 sps:$4 sm:$0xff]   ;;  %v496_v9 = vld [vmem:[%s712_s1 + $0x30] sm:$0xff]  }
   0x3   :  { %209 = vmatprep.subr.bf16.mxu0 %v523_v0  ;;  %472 = vmatprep.subr.bf16.mxu1 %v523_v0  ;;  %v504_v6 = vld [vmem:[%s713_s0 + $0x44] ss:$8 sps:$4 sm:$0xff]   ;;  %v497_v10 = vld [vmem:[%s712_s1 + $0x38] sm:$0xff]   ;;  %v499_v12 = vld [vmem:[%s713_s0] ss:$8 sps:$4 sm:$0xff]  }
   0x4   :  { %431 = vmatprep.mubr.msk.bf16.mxu0 %vm182_vm0, %v501_v5  ;;  %435 = vmatprep.mubr.msk.bf16.mxu1 %vm182_vm0, %v504_v6  ;;  %v494_v7 = vld [vmem:[%s712_s1 + $0x20] sm:$0xff]   ;;  %v495_v8 = vld [vmem:[%s712_s1 + $0x28] sm:$0xff]   ;;  %v505_v14 = vld [vmem:[%s713_s0 + $0x14] ss:$8 sps:$4 sm:$0xff]  }
   0x5   :  { %v498_v11 = vld [vmem:[%s712_s1 + $0x40] sm:$0xff]   ;;  %v507_v15 = vld [vmem:[%s713_s0 + $0x54] ss:$8 sps:$4 sm:$0xff]   ;;  %v509_v16 = vld [vmem:[%s713_s0 + $0x10] ss:$8 sps:$4 sm:$0xff]  }
   0x6   :  { %210 = vmatpush1.bf16.msra.mxu0 %v491_v2  ;;  %481 = vmatpush1.bf16.msra.mxu1 %v491_v2  ;;  %v502_v13 = vld [vmem:[%s713_s0 + $0x40] ss:$8 sps:$4 sm:$0xff]   ;;  %v510_v17 = vld [vmem:[%s713_s0 + $0x50] ss:$8 sps:$4 sm:$0xff]   ;;  %v511_v18 = vld [vmem:[%s713_s0 + $0x24] ss:$8 sps:$4 sm:$0xff]  }
   0x7   :  { %211 = vmatprep.subr.bf16.mxu0 %v523_v0  ;;  %473 = vmatprep.subr.bf16.mxu1 %v523_v0  ;;  %v513_v19 = vld [vmem:[%s713_s0 + $0x64] ss:$8 sps:$4 sm:$0xff]   ;;  %v515_v20 = vld [vmem:[%s713_s0 + $0x20] ss:$8 sps:$4 sm:$0xff]   ;;  %v517_v22 = vld [vmem:[%s713_s0 + $0x34] ss:$8 sps:$4 sm:$0xff]  }
   0x8   :  { %v516_v21 = vld [vmem:[%s713_s0 + $0x60] ss:$8 sps:$4 sm:$0xff]   ;;  %v519_v23 = vld [vmem:[%s713_s0 + $0x74] ss:$8 sps:$4 sm:$0xff]   ;;  %v521_v24 = vld [vmem:[%s713_s0 + $0x30] ss:$8 sps:$4 sm:$0xff]  }
   0x9   :  { %v522_v25 = vld [vmem:[%s713_s0 + $0x70] ss:$8 sps:$4 sm:$0xff]   ;;  %v630_v26 = vld [vmem:[%s714_s2] ss:$0 sm:$0xff] }
   0xa   :  { %212 = vmatpush1.bf16.msra.mxu0 %v492_v3  ;;  %482 = vmatpush1.bf16.msra.mxu1 %v492_v3 }
   0xb   :  { %213 = vmatprep.subr.bf16.mxu0 %v523_v0  ;;  %474 = vmatprep.subr.bf16.mxu1 %v523_v0 }
   0xe   :  { %214 = vmatpush1.bf16.msra.mxu0 %v493_v4  ;;  %483 = vmatpush1.bf16.msra.mxu1 %v493_v4 }
   0xf   :  { %215 = vmatprep.subr.bf16.mxu0 %v523_v0  ;;  %475 = vmatprep.subr.bf16.mxu1 %v523_v0 }
  0x12   :  { %216 = vmatpush1.bf16.msra.mxu0 %v494_v7  ;;  %484 = vmatpush1.bf16.msra.mxu1 %v494_v7 }
  0x13   :  { %217 = vmatprep.subr.bf16.mxu0 %v523_v0  ;;  %476 = vmatprep.subr.bf16.mxu1 %v523_v0 }
  0x16   :  { %218 = vmatpush1.bf16.msra.mxu0 %v495_v8  ;;  %485 = vmatpush1.bf16.msra.mxu1 %v495_v8 }
  0x17   :  { %219 = vmatprep.subr.bf16.mxu0 %v523_v0  ;;  %477 = vmatprep.subr.bf16.mxu1 %v523_v0 }
  0x1a   :  { %220 = vmatpush1.bf16.msra.mxu0 %v496_v9  ;;  %486 = vmatpush1.bf16.msra.mxu1 %v496_v9 }
  0x1b   :  { %221 = vmatprep.subr.bf16.mxu0 %v523_v0  ;;  %478 = vmatprep.subr.bf16.mxu1 %v523_v0 }
  0x1e   :  { %222 = vmatpush1.bf16.msra.mxu0 %v497_v10  ;;  %487 = vmatpush1.bf16.msra.mxu1 %v497_v10 }
  0x1f   :  { %223 = vmatprep.subr.bf16.mxu0 %v523_v0  ;;  %479 = vmatprep.subr.bf16.mxu1 %v523_v0 }
  0x22   :  { %224 = vmatpush1.bf16.msra.mxu0 %v498_v11  ;;  %488 = vmatpush1.bf16.msra.mxu1 %v498_v11 }
  0x25   :  { %240 = vmatmul.mubr.bf16.vlgmr.msra.gmra.mrb[0].mxu0 %v499_v12  ;;  %272 = vmatmul.mubr.bf16.vlgmr.msra.gmra.mrb[0].mxu1 %v502_v13 }
  0x26   :  { %432 = vmatprep.mubr.msk.bf16.mxu0 %vm182_vm0, %v505_v14  ;;  %436 = vmatprep.mubr.msk.bf16.mxu1 %vm182_vm0, %v507_v15 }
  0x2d   :  { %248 = vmatmul.mubr.bf16.gmra.mrb[4].mxu0 %v509_v16  ;;  %280 = vmatmul.mubr.bf16.gmra.mrb[4].mxu1 %v510_v17 }
  0x2e   :  { %433 = vmatprep.mubr.msk.bf16.mxu0 %vm182_vm0, %v511_v18  ;;  %437 = vmatprep.mubr.msk.bf16.mxu1 %vm182_vm0, %v513_v19 }
  0x35   :  { %256 = vmatmul.mubr.bf16.gmra.mrb[8].mxu0 %v515_v20  ;;  %288 = vmatmul.mubr.bf16.gmra.mrb[8].mxu1 %v516_v21 }
  0x36   :  { %434 = vmatprep.mubr.msk.bf16.mxu0 %vm182_vm0, %v517_v22  ;;  %438 = vmatprep.mubr.msk.bf16.mxu1 %vm182_vm0, %v519_v23 }
  0x3d   :  { %264 = vmatmul.mubr.bf16.gmra.mrb[12].mxu0 %v521_v24  ;;  %296 = vmatmul.mubr.bf16.gmra.mrb[12].mxu1 %v522_v25 }
  0xf8   :  { %v241_v27 = vpop.f32.mrb[0].mxu0  ;;  %v273_v28 = vpop.f32.mrb[0].mxu1 }
  0xf9   :  { %v242_v29 = vadd.f32 %v630_v26, %v241_v27  ;;  %v274_v30 = vadd.f32 %v630_v26, %v273_v28  ;;  %v243_v31 = vpop.f32.mrb[1].mxu0  ;;  %v275_v32 = vpop.f32.mrb[1].mxu1 }
  0xfa   :  { %v244_v33 = vpop.f32.mrb[2].mxu0  ;;  %v276_v34 = vpop.f32.mrb[2].mxu1 }
  0xfb   :  { %v304_v35 = vmax.f32 %v242_v29, 0.0  ;;  %v312_v36 = vmax.f32 %v274_v30, 0.0  ;;  %v245_v37 = vadd.f32 %v630_v26, %v244_v33  ;;  %v277_v38 = vadd.f32 %v630_v26, %v276_v34  ;;  %v246_v39 = vpop.f32.mrb[3].mxu0  ;;  %v278_v40 = vpop.f32.mrb[3].mxu1 }
  0xfd   :  { %v455_v41 = vpack.c.bf16 %v304_v35, %v304_v35  ;;  %v463_v42 = vpack.c.bf16 %v312_v36, %v312_v36  ;;  %v305_v43 = vmax.f32 %v245_v37, 0.0  ;;  %v313_v44 = vmax.f32 %v277_v38, 0.0 }
  0xff   :  { %385 = vst.msk [vmem:[%s715_s3] sm:$0xf] %vm384_vm1, %v455_v41  ;;  %393 = vst.msk [vmem:[%s715_s3 + $0x20] sm:$0xf] %vm384_vm1, %v463_v42  ;;  %v456_v45 = vpack.c.bf16 %v305_v43, %v305_v43  ;;  %v464_v46 = vpack.c.bf16 %v313_v44, %v313_v44 }
 0x100   :  { %v249_v47 = vpop.f32.mrb[4].mxu0  ;;  %v281_v48 = vpop.f32.mrb[4].mxu1 }
 0x101   :  { %386 = vst.msk [vmem:[%s715_s3 + $0x4] sm:$0xf] %vm384_vm1, %v456_v45  ;;  %394 = vst.msk [vmem:[%s715_s3 + $0x24] sm:$0xf] %vm384_vm1, %v464_v46  ;;  %v250_v49 = vadd.f32 %v630_v26, %v249_v47  ;;  %v282_v50 = vadd.f32 %v630_v26, %v281_v48  ;;  %v251_v51 = vpop.f32.mrb[5].mxu0  ;;  %v283_v52 = vpop.f32.mrb[5].mxu1 }
 0x102   :  { %v252_v53 = vpop.f32.mrb[6].mxu0  ;;  %v284_v54 = vpop.f32.mrb[6].mxu1 }
 0x103   :  { %v306_v55 = vmax.f32 %v250_v49, 0.0  ;;  %v314_v56 = vmax.f32 %v282_v50, 0.0  ;;  %v253_v57 = vadd.f32 %v630_v26, %v252_v53  ;;  %v285_v58 = vadd.f32 %v630_v26, %v284_v54  ;;  %v254_v59 = vpop.f32.mrb[7].mxu0  ;;  %v286_v60 = vpop.f32.mrb[7].mxu1 }
 0x105   :  { %v457_v61 = vpack.c.bf16 %v306_v55, %v306_v55  ;;  %v465_v62 = vpack.c.bf16 %v314_v56, %v314_v56  ;;  %v307_v63 = vmax.f32 %v253_v57, 0.0  ;;  %v315_v0 = vmax.f32 %v285_v58, 0.0 }
 0x107   :  { %387 = vst.msk [vmem:[%s715_s3 + $0x8] sm:$0xf] %vm384_vm1, %v457_v61  ;;  %395 = vst.msk [vmem:[%s715_s3 + $0x28] sm:$0xf] %vm384_vm1, %v465_v62  ;;  %v458_v1 = vpack.c.bf16 %v307_v63, %v307_v63  ;;  %v466_v2 = vpack.c.bf16 %v315_v0, %v315_v0 }
 0x108   :  { %v257_v3 = vpop.f32.mrb[8].mxu0  ;;  %v289_v4 = vpop.f32.mrb[8].mxu1 }
 0x109   :  { %388 = vst.msk [vmem:[%s715_s3 + $0xc] sm:$0xf] %vm384_vm1, %v458_v1  ;;  %396 = vst.msk [vmem:[%s715_s3 + $0x2c] sm:$0xf] %vm384_vm1, %v466_v2  ;;  %v258_v5 = vadd.f32 %v630_v26, %v257_v3  ;;  %v290_v6 = vadd.f32 %v630_v26, %v289_v4  ;;  %v259_v7 = vpop.f32.mrb[9].mxu0  ;;  %v291_v8 = vpop.f32.mrb[9].mxu1 }
 0x10a   :  { %v260_v9 = vpop.f32.mrb[10].mxu0  ;;  %v292_v10 = vpop.f32.mrb[10].mxu1 }
 0x10b   :  { %v308_v11 = vmax.f32 %v258_v5, 0.0  ;;  %v316_v12 = vmax.f32 %v290_v6, 0.0  ;;  %v261_v13 = vadd.f32 %v630_v26, %v260_v9  ;;  %v293_v14 = vadd.f32 %v630_v26, %v292_v10  ;;  %v262_v15 = vpop.f32.mrb[11].mxu0  ;;  %v294_v16 = vpop.f32.mrb[11].mxu1 }
 0x10d   :  { %v459_v17 = vpack.c.bf16 %v308_v11, %v308_v11  ;;  %v467_v18 = vpack.c.bf16 %v316_v12, %v316_v12  ;;  %v309_v19 = vmax.f32 %v261_v13, 0.0  ;;  %v317_v20 = vmax.f32 %v293_v14, 0.0 }
 0x10f   :  { %389 = vst.msk [vmem:[%s715_s3 + $0x10] sm:$0xf] %vm384_vm1, %v459_v17  ;;  %397 = vst.msk [vmem:[%s715_s3 + $0x30] sm:$0xf] %vm384_vm1, %v467_v18  ;;  %v460_v21 = vpack.c.bf16 %v309_v19, %v309_v19  ;;  %v468_v22 = vpack.c.bf16 %v317_v20, %v317_v20 }
 0x110   :  { %v265_v23 = vpop.f32.mrb[12].mxu0  ;;  %v297_v24 = vpop.f32.mrb[12].mxu1 }
 0x111   :  { %390 = vst.msk [vmem:[%s715_s3 + $0x14] sm:$0xf] %vm384_vm1, %v460_v21  ;;  %398 = vst.msk [vmem:[%s715_s3 + $0x34] sm:$0xf] %vm384_vm1, %v468_v22  ;;  %v266_v25 = vadd.f32 %v630_v26, %v265_v23  ;;  %v298_v27 = vadd.f32 %v630_v26, %v297_v24  ;;  %v267_v28 = vpop.f32.mrb[13].mxu0  ;;  %v299_v29 = vpop.f32.mrb[13].mxu1 }
 0x112   :  { %v268_v30 = vpop.f32.mrb[14].mxu0  ;;  %v300_v31 = vpop.f32.mrb[14].mxu1 }
 0x113   :  { %v310_v32 = vmax.f32 %v266_v25, 0.0  ;;  %v318_v33 = vmax.f32 %v298_v27, 0.0  ;;  %v269_v34 = vadd.f32 %v630_v26, %v268_v30  ;;  %v301_v35 = vadd.f32 %v630_v26, %v300_v31  ;;  %v270_v36 = vpop.f32.mrb[15].mxu0  ;;  %v302_v37 = vpop.f32.mrb[15].mxu1 }
 0x115   :  { %v461_v38 = vpack.c.bf16 %v310_v32, %v310_v32  ;;  %v469_v39 = vpack.c.bf16 %v318_v33, %v318_v33  ;;  %v311_v40 = vmax.f32 %v269_v34, 0.0  ;;  %v319_v41 = vmax.f32 %v301_v35, 0.0 }
 0x117   :  { %391 = vst.msk [vmem:[%s715_s3 + $0x18] sm:$0xf] %vm384_vm1, %v461_v38  ;;  %399 = vst.msk [vmem:[%s715_s3 + $0x38] sm:$0xf] %vm384_vm1, %v469_v39  ;;  %v462_v42 = vpack.c.bf16 %v311_v40, %v311_v40  ;;  %v470_v43 = vpack.c.bf16 %v319_v41, %v319_v41 }
 0x119   :  { %392 = vst.msk [vmem:[%s715_s3 + $0x1c] sm:$0xf] %vm384_vm1, %v462_v42  ;;  %400 = vst.msk [vmem:[%s715_s3 + $0x3c] sm:$0xf] %vm384_vm1, %v470_v43 }

// kernel: faster_rcnn_eval_forward.13
= control target key start
LH: loop header
LB: loop body
LE: loop exit
PB: predicated region body
PF: predicated region fallthrough
CT: control target
= control target key end

     0   :  { %vm68_vm0 = vcmask 523264   ;;  %vm140_vm1 = vcmask 257024   ;;  %s243_s1 = inlined_call_operand.vmem [shape: bf16[64,32], index: 1, kind: input, shape index: {}]   ;;  %s244_s0 = inlined_call_operand.vmem [shape: bf16[32,64], index: 0, kind: input, shape index: {}]   ;;  %s245_s2 = inlined_call_operand.vmem [shape: f32[1,32], index: 2, kind: input, shape index: {}]   ;;  %s246_s3 = inlined_call_operand.vmem [shape: bf16[32,32], index: 3, kind: output, shape index: {}]  }
   0x1   :  { %v184_v0 = vld [vmem:[%s243_s1] sm:$0xff]   ;;  %v185_v1 = vld [vmem:[%s243_s1 + $0x8] sm:$0xff]   ;;  %v186_v2 = vld [vmem:[%s243_s1 + $0x10] sm:$0xff]  }
   0x2   :  { %172 = vmatprep.subr.bf16.mxu0 %v184_v0  ;;  %v188_v3 = vld [vmem:[%s244_s0] sm:$0xff]   ;;  %v187_v4 = vld [vmem:[%s243_s1 + $0x18] sm:$0xff]   ;;  %v189_v5 = vld [vmem:[%s244_s0 + $0x8] sm:$0xff]  }
   0x3   :  { %173 = vmatpush3.bf16.msra.mxu0 %v184_v0  ;;  %180 = vmatprep.mubr.msk.bf16.mxu0 %vm68_vm0, %v188_v3  ;;  %v149_v6 = vld [vmem:[%s245_s2] ss:$0 sm:$0xff] }
   0x4   :  { %174 = vmatprep.subr.bf16.mxu0 %v185_v1 }
   0x7   :  { %175 = vmatpush3.bf16.msra.mxu0 %v185_v1 }
   0x8   :  { %176 = vmatprep.subr.bf16.mxu0 %v186_v2 }
   0xb   :  { %177 = vmatpush3.bf16.msra.mxu0 %v186_v2 }
   0xc   :  { %178 = vmatprep.subr.bf16.mxu0 %v187_v4 }
   0xf   :  { %179 = vmatpush3.bf16.msra.mxu0 %v187_v4 }
  0x12   :  { %181 = vmatmul.mubr.msk.bf16.vlgmr.msra.gmra.mrb[0].mxu0 %vm68_vm0, %v189_v5 }
  0xe5   :  { %v182_v7 = vpop.f32.mrb[0].mxu0 }
  0xe6   :  { %v118_v8 = vadd.f32 %v182_v7, %v149_v6  ;;  %v109_v9 = vpop.f32.mrb[1].mxu0 }
  0xe7   :  { %v110_v10 = vadd.f32 %v149_v6, %v109_v9  ;;  %v183_v11 = vpop.f32.mrb[2].mxu0 }
  0xe8   :  { %v164_v12 = vpack.c.bf16 %v118_v8, %v118_v8  ;;  %v121_v13 = vadd.f32 %v183_v11, %v149_v6  ;;  %v112_v14 = vpop.f32.mrb[3].mxu0 }
  0xe9   :  { %v162_v15 = vpack.c.bf16 %v110_v10, %v110_v10  ;;  %v113_v16 = vadd.f32 %v149_v6, %v112_v14 }
  0xea   :  { %143 = vst.msk [vmem:[%s246_s3 + $0x8] sm:$0xf] %vm140_vm1, %v164_v12  ;;  %v165_v17 = vpack.c.bf16 %v121_v13, %v121_v13 }
  0xeb   :  { %141 = vst.msk [vmem:[%s246_s3] sm:$0xf] %vm140_vm1, %v162_v15  ;;  %v163_v18 = vpack.c.bf16 %v113_v16, %v113_v16 }
  0xec   :  { %144 = vst.msk [vmem:[%s246_s3 + $0xc] sm:$0xf] %vm140_vm1, %v165_v17 }
  0xed   :  { %142 = vst.msk [vmem:[%s246_s3 + $0x4] sm:$0xf] %vm140_vm1, %v163_v18 }

// kernel: faster_rcnn_eval_forward.12
= control target key start
LH: loop header
LB: loop body
LE: loop exit
PB: predicated region body
PF: predicated region fallthrough
CT: control target
= control target key end

     0   :  { %vm204_vm0 = vcmask 261120   ;;  %vm329_vm1 = vcmask 519168   ;;  %s550_s1 = inlined_call_operand.vmem [shape: bf16[288,64], index: 1, kind: input, shape index: {}]   ;;  %s551_s0 = inlined_call_operand.vmem [shape: bf16[32,288], index: 0, kind: input, shape index: {}]   ;;  %s552_s2 = inlined_call_operand.vmem [shape: f32[1,64], index: 2, kind: input, shape index: {}]   ;;  %s553_s3 = inlined_call_operand.vmem [shape: bf16[32,64], index: 3, kind: output, shape index: {}]  }
   0x1   :  { %v413_v0 = vld [vmem:[%s550_s1 + $0x40] sm:$0xff]   ;;  %v415_v2 = vld [vmem:[%s550_s1 + $0x48] sm:$0xff]   ;;  %v417_v4 = vld [vmem:[%s550_s1 + $0x50] sm:$0xff]  }
   0x2   :  { %v414_v1 = vld [vmem:[%s550_s1] sm:$0xff]   ;;  %373 = vmatprep.subr.bf16.mxu0 %v413_v0  ;;  %v416_v3 = vld [vmem:[%s550_s1 + $0x8] sm:$0xff]   ;;  %v418_v5 = vld [vmem:[%s550_s1 + $0x10] sm:$0xff]  }
   0x3   :  { %374 = vmatpush3.bf16.msra.mxu0 %v414_v1  ;;  %v419_v6 = vld [vmem:[%s550_s1 + $0x58] sm:$0xff]   ;;  %v421_v8 = vld [vmem:[%s550_s1 + $0x60] sm:$0xff]   ;;  %v423_v11 = vld [vmem:[%s550_s1 + $0x68] sm:$0xff]  }
   0x4   :  { %375 = vmatprep.subr.bf16.mxu0 %v415_v2  ;;  %v420_v7 = vld [vmem:[%s550_s1 + $0x18] sm:$0xff]   ;;  %v422_v9 = vld [vmem:[%s550_s1 + $0x20] sm:$0xff]   ;;  %v424_v12 = vld [vmem:[%s550_s1 + $0x28] sm:$0xff]  }
   0x5   :  { %v428_v10 = vld [vmem:[%s550_s1 + $0x80] sm:$0xff]   ;;  %v425_v13 = vld [vmem:[%s550_s1 + $0x70] sm:$0xff]   ;;  %v433_v15 = vld [vmem:[%s550_s1 + $0x88] sm:$0xff]  }
   0x6   :  { %405 = vmatprep.subr.bf16.mxu1 %v428_v10  ;;  %v432_v14 = vld [vmem:[%s551_s0 + $0x4] ss:$12 sps:$4 sm:$0xff]   ;;  %v434_v16 = vld [vmem:[%s551_s0 + $0x8] ss:$12 sps:$4 sm:$0xff]   ;;  %v435_v17 = vld [vmem:[%s551_s0 + $0x20] ss:$12 sps:$4 sm:$0xff]  }
   0x7   :  { %376 = vmatpush3.bf16.msra.mxu0 %v416_v3  ;;  %406 = vmatpush3.bf16.msra.mxu1 %v428_v10  ;;  %v426_v18 = vld [vmem:[%s550_s1 + $0x30] sm:$0xff]   ;;  %v427_v19 = vld [vmem:[%s550_s1 + $0x78] sm:$0xff]   ;;  %v430_v21 = vld [vmem:[%s551_s0] ss:$12 sps:$4 sm:$0xff]  }
   0x8   :  { %377 = vmatprep.subr.bf16.mxu0 %v417_v4  ;;  %243 = vmatprep.mubr.bf16.mxu0 %v432_v14  ;;  %v429_v20 = vld [vmem:[%s550_s1 + $0x38] sm:$0xff]   ;;  %v338_v30 = vld [vmem:[%s552_s2] ss:$0 sm:$0xff] }
   0x9   :  { %407 = vmatprep.subr.bf16.mxu1 %v433_v15  ;;  %409 = vmatprep.mubr.msk.bf16.mxu1 %vm204_vm0, %v434_v16  ;;  %v436_v22 = vld [vmem:[%s551_s0 + $0x1c] ss:$12 sps:$4 sm:$0xff]   ;;  %v438_v23 = vld [vmem:[%s551_s0 + $0x18] ss:$12 sps:$4 sm:$0xff]  }
   0xb   :  { %378 = vmatpush3.bf16.msra.mxu0 %v418_v5  ;;  %408 = vmatpush3.bf16.msra.mxu1 %v433_v15 }
   0xc   :  { %379 = vmatprep.subr.bf16.mxu0 %v419_v6 }
   0xe   :  { %410 = vmatmul.mubr.msk.bf16.vlgmr.msra.gmra.mrb[0].mxu1 %vm204_vm0, %v435_v17 }
   0xf   :  { %380 = vmatpush3.bf16.msra.mxu0 %v420_v7 }
  0x10   :  { %381 = vmatprep.subr.bf16.mxu0 %v421_v8 }
  0x13   :  { %382 = vmatpush3.bf16.msra.mxu0 %v422_v9 }
  0x14   :  { %383 = vmatprep.subr.bf16.mxu0 %v423_v11 }
  0x17   :  { %384 = vmatpush3.bf16.msra.mxu0 %v424_v12 }
  0x18   :  { %385 = vmatprep.subr.bf16.mxu0 %v425_v13 }
  0x1b   :  { %386 = vmatpush3.bf16.msra.mxu0 %v426_v18 }
  0x1c   :  { %387 = vmatprep.subr.bf16.mxu0 %v427_v19 }
  0x1f   :  { %388 = vmatpush3.bf16.msra.mxu0 %v429_v20 }
  0x22   :  { %244 = vmatmul.mubr.bf16.vlgmr.msra.gmra.mrb[0].mxu0 %v430_v21 }
  0x23   :  { %251 = vmatprep.mubr.bf16.mxu0 %v436_v22 }
  0x2a   :  { %252 = vmatmul.mubr.bf16.gmra.mrb[4].mxu0 %v438_v23 }
  0xe1   :  { %v411_v24 = vpop.f32.mrb[0].mxu1 }
  0xe2   :  { %v294_v25 = vpop.f32.mrb[1].mxu1 }
  0xe3   :  { %v412_v26 = vpop.f32.mrb[2].mxu1 }
  0xe4   :  { %v297_v27 = vpop.f32.mrb[3].mxu1 }
  0xf5   :  { %v389_v28 = vpop.f32.mrb[0].mxu0 }
  0xf6   :  { %v390_v29 = vpop.f32.mrb[1].mxu0 }
  0xf7   :  { %v391_v31 = vadd.f32 %v390_v29, %v389_v28  ;;  %v392_v32 = vpop.f32.mrb[2].mxu0 }
  0xf8   :  { %v393_v33 = vpop.f32.mrb[3].mxu0 }
  0xf9   :  { %v394_v34 = vadd.f32 %v393_v33, %v392_v32  ;;  %v246_v35 = vadd.f32 %v391_v31, %v338_v30 }
  0xfb   :  { %v295_v36 = vadd.f32 %v294_v25, %v246_v35  ;;  %v249_v37 = vadd.f32 %v394_v34, %v338_v30 }
  0xfd   :  { %v309_v38 = vmax.f32 %v295_v36, 0.0  ;;  %v298_v39 = vadd.f32 %v297_v27, %v249_v37  ;;  %v395_v40 = vpop.f32.mrb[4].mxu0 }
  0xfe   :  { %v396_v41 = vpop.f32.mrb[5].mxu0 }
  0xff   :  { %v369_v42 = vpack.c.bf16 %v309_v38, %v309_v38  ;;  %v310_v43 = vmax.f32 %v298_v39, 0.0  ;;  %v397_v44 = vadd.f32 %v396_v41, %v395_v40  ;;  %v398_v45 = vpop.f32.mrb[6].mxu0 }
 0x100   :  { %v399_v46 = vpop.f32.mrb[7].mxu0 }
 0x101   :  { %330 = vst.msk [vmem:[%s553_s3] sm:$0xf] %vm329_vm1, %v369_v42  ;;  %v370_v47 = vpack.c.bf16 %v310_v43, %v310_v43  ;;  %v254_v48 = vadd.f32 %v397_v44, %v338_v30  ;;  %v400_v49 = vadd.f32 %v399_v46, %v398_v45 }
 0x103   :  { %331 = vst.msk [vmem:[%s553_s3 + $0x4] sm:$0xf] %vm329_vm1, %v370_v47  ;;  %v303_v50 = vadd.f32 %v411_v24, %v254_v48  ;;  %v257_v51 = vadd.f32 %v400_v49, %v338_v30 }
 0x105   :  { %v311_v52 = vmax.f32 %v303_v50, 0.0  ;;  %v306_v53 = vadd.f32 %v412_v26, %v257_v51 }
 0x107   :  { %v371_v54 = vpack.c.bf16 %v311_v52, %v311_v52  ;;  %v312_v55 = vmax.f32 %v306_v53, 0.0 }
 0x109   :  { %332 = vst.msk [vmem:[%s553_s3 + $0x8] sm:$0xf] %vm329_vm1, %v371_v54  ;;  %v372_v56 = vpack.c.bf16 %v312_v55, %v312_v55 }
 0x10b   :  { %333 = vst.msk [vmem:[%s553_s3 + $0xc] sm:$0xf] %vm329_vm1, %v372_v56 }

// kernel: faster_rcnn_eval_forward.14
= control target key start
LH: loop header
LB: loop body
LE: loop exit
PB: predicated region body
PF: predicated region fallthrough
CT: control target
= control target key end

     0   :  { %vm94_vm0 = vcmask 261120   ;;  %vm280_vm1 = vcmask 257024   ;;  %s521_s1 = inlined_call_operand.vmem [shape: bf16[32,32], index: 1, kind: input, shape index: {}]   ;;  %s522_s0 = inlined_call_operand.vmem [shape: bf16[128,32], index: 0, kind: input, shape index: {}]   ;;  %s523_s2 = inlined_call_operand.vmem [shape: f32[1,32], index: 2, kind: input, shape index: {}]   ;;  %s524_s3 = inlined_call_operand.vmem [shape: bf16[128,32], index: 3, kind: output, shape index: {}]  }
   0x1   :  { %v386_v0 = vld [vmem:[%s521_s1] sm:$0xff]   ;;  %v387_v1 = vld [vmem:[%s521_s1 + $0x8] sm:$0xff]   ;;  %v392_v6 = vld [vmem:[%s522_s0 + $0x10] sm:$0xff]  }
   0x2   :  { %362 = vmatprep.subr.bf16.mxu0 %v386_v0  ;;  %382 = vmatprep.subr.bf16.mxu1 %v386_v0  ;;  %v388_v2 = vld [vmem:[%s522_s0] sm:$0xff]   ;;  %v390_v4 = vld [vmem:[%s522_s0 + $0x8] sm:$0xff]   ;;  %v393_v7 = vld [vmem:[%s522_s0 + $0x30] sm:$0xff]  }
   0x3   :  { %363 = vmatpush3.bf16.msra.mxu0 %v386_v0  ;;  %384 = vmatpush3.bf16.msra.mxu1 %v386_v0  ;;  %v389_v3 = vld [vmem:[%s522_s0 + $0x20] sm:$0xff]   ;;  %v391_v5 = vld [vmem:[%s522_s0 + $0x28] sm:$0xff]   ;;  %v394_v8 = vld [vmem:[%s522_s0 + $0x18] sm:$0xff]  }
   0x4   :  { %364 = vmatprep.subr.bf16.mxu0 %v387_v1  ;;  %383 = vmatprep.subr.bf16.mxu1 %v387_v1  ;;  %v395_v9 = vld [vmem:[%s522_s0 + $0x38] sm:$0xff]   ;;  %v301_v10 = vld [vmem:[%s523_s2] ss:$0 sm:$0xff] }
   0x5   :  { %366 = vmatprep.mubr.msk.bf16.mxu0 %vm94_vm0, %v388_v2  ;;  %374 = vmatprep.mubr.msk.bf16.mxu1 %vm94_vm0, %v389_v3 }
   0x7   :  { %365 = vmatpush3.bf16.msra.mxu0 %v387_v1  ;;  %385 = vmatpush3.bf16.msra.mxu1 %v387_v1 }
   0xa   :  { %367 = vmatmul.mubr.msk.bf16.vlgmr.msra.gmra.mrb[0].mxu0 %vm94_vm0, %v390_v4  ;;  %375 = vmatmul.mubr.msk.bf16.vlgmr.msra.gmra.mrb[0].mxu1 %vm94_vm0, %v391_v5 }
   0xb   :  { %370 = vmatprep.mubr.msk.bf16.mxu0 %vm94_vm0, %v392_v6  ;;  %378 = vmatprep.mubr.msk.bf16.mxu1 %vm94_vm0, %v393_v7 }
  0x12   :  { %371 = vmatmul.mubr.msk.bf16.gmra.mrb[4].mxu0 %vm94_vm0, %v394_v8  ;;  %379 = vmatmul.mubr.msk.bf16.gmra.mrb[4].mxu1 %vm94_vm0, %v395_v9 }
  0xdd   :  { %v368_v11 = vpop.f32.mrb[0].mxu0  ;;  %v376_v12 = vpop.f32.mrb[0].mxu1 }
  0xde   :  { %v162_v13 = vadd.f32 %v368_v11, %v301_v10  ;;  %v194_v14 = vadd.f32 %v376_v12, %v301_v10  ;;  %v153_v15 = vpop.f32.mrb[1].mxu0  ;;  %v185_v16 = vpop.f32.mrb[1].mxu1 }
  0xdf   :  { %v154_v17 = vadd.f32 %v301_v10, %v153_v15  ;;  %v186_v18 = vadd.f32 %v301_v10, %v185_v16  ;;  %v369_v19 = vpop.f32.mrb[2].mxu0  ;;  %v377_v20 = vpop.f32.mrb[2].mxu1 }
  0xe0   :  { %v338_v21 = vpack.c.bf16 %v162_v13, %v162_v13  ;;  %v346_v22 = vpack.c.bf16 %v194_v14, %v194_v14  ;;  %v165_v23 = vadd.f32 %v369_v19, %v301_v10  ;;  %v197_v24 = vadd.f32 %v377_v20, %v301_v10  ;;  %v156_v25 = vpop.f32.mrb[3].mxu0  ;;  %v188_v26 = vpop.f32.mrb[3].mxu1 }
  0xe1   :  { %v336_v27 = vpack.c.bf16 %v154_v17, %v154_v17  ;;  %v344_v28 = vpack.c.bf16 %v186_v18, %v186_v18  ;;  %v157_v29 = vadd.f32 %v301_v10, %v156_v25  ;;  %v189_v30 = vadd.f32 %v301_v10, %v188_v26 }
  0xe2   :  { %283 = vst.msk [vmem:[%s524_s3 + $0x8] sm:$0xf] %vm280_vm1, %v338_v21  ;;  %291 = vst.msk [vmem:[%s524_s3 + $0x28] sm:$0xf] %vm280_vm1, %v346_v22  ;;  %v339_v31 = vpack.c.bf16 %v165_v23, %v165_v23  ;;  %v347_v32 = vpack.c.bf16 %v197_v24, %v197_v24 }
  0xe3   :  { %281 = vst.msk [vmem:[%s524_s3] sm:$0xf] %vm280_vm1, %v336_v27  ;;  %289 = vst.msk [vmem:[%s524_s3 + $0x20] sm:$0xf] %vm280_vm1, %v344_v28  ;;  %v337_v33 = vpack.c.bf16 %v157_v29, %v157_v29  ;;  %v345_v34 = vpack.c.bf16 %v189_v30, %v189_v30 }
  0xe4   :  { %284 = vst.msk [vmem:[%s524_s3 + $0xc] sm:$0xf] %vm280_vm1, %v339_v31  ;;  %292 = vst.msk [vmem:[%s524_s3 + $0x2c] sm:$0xf] %vm280_vm1, %v347_v32 }
  0xe5   :  { %282 = vst.msk [vmem:[%s524_s3 + $0x4] sm:$0xf] %vm280_vm1, %v337_v33  ;;  %290 = vst.msk [vmem:[%s524_s3 + $0x24] sm:$0xf] %vm280_vm1, %v345_v34  ;;  %v372_v35 = vpop.f32.mrb[4].mxu0  ;;  %v380_v36 = vpop.f32.mrb[4].mxu1 }
  0xe6   :  { %v178_v37 = vadd.f32 %v372_v35, %v301_v10  ;;  %v210_v38 = vadd.f32 %v380_v36, %v301_v10  ;;  %v169_v39 = vpop.f32.mrb[5].mxu0  ;;  %v201_v40 = vpop.f32.mrb[5].mxu1 }
  0xe7   :  { %v170_v41 = vadd.f32 %v301_v10, %v169_v39  ;;  %v202_v42 = vadd.f32 %v301_v10, %v201_v40  ;;  %v373_v43 = vpop.f32.mrb[6].mxu0  ;;  %v381_v44 = vpop.f32.mrb[6].mxu1 }
  0xe8   :  { %v342_v45 = vpack.c.bf16 %v178_v37, %v178_v37  ;;  %v350_v46 = vpack.c.bf16 %v210_v38, %v210_v38  ;;  %v181_v47 = vadd.f32 %v373_v43, %v301_v10  ;;  %v213_v48 = vadd.f32 %v381_v44, %v301_v10  ;;  %v172_v49 = vpop.f32.mrb[7].mxu0  ;;  %v204_v50 = vpop.f32.mrb[7].mxu1 }
  0xe9   :  { %v340_v51 = vpack.c.bf16 %v170_v41, %v170_v41  ;;  %v348_v52 = vpack.c.bf16 %v202_v42, %v202_v42  ;;  %v173_v53 = vadd.f32 %v301_v10, %v172_v49  ;;  %v205_v54 = vadd.f32 %v301_v10, %v204_v50 }
  0xea   :  { %287 = vst.msk [vmem:[%s524_s3 + $0x18] sm:$0xf] %vm280_vm1, %v342_v45  ;;  %295 = vst.msk [vmem:[%s524_s3 + $0x38] sm:$0xf] %vm280_vm1, %v350_v46  ;;  %v343_v55 = vpack.c.bf16 %v181_v47, %v181_v47  ;;  %v351_v56 = vpack.c.bf16 %v213_v48, %v213_v48 }
  0xeb   :  { %285 = vst.msk [vmem:[%s524_s3 + $0x10] sm:$0xf] %vm280_vm1, %v340_v51  ;;  %293 = vst.msk [vmem:[%s524_s3 + $0x30] sm:$0xf] %vm280_vm1, %v348_v52  ;;  %v341_v57 = vpack.c.bf16 %v173_v53, %v173_v53  ;;  %v349_v58 = vpack.c.bf16 %v205_v54, %v205_v54 }
  0xec   :  { %288 = vst.msk [vmem:[%s524_s3 + $0x1c] sm:$0xf] %vm280_vm1, %v343_v55  ;;  %296 = vst.msk [vmem:[%s524_s3 + $0x3c] sm:$0xf] %vm280_vm1, %v351_v56 }
  0xed   :  { %286 = vst.msk [vmem:[%s524_s3 + $0x14] sm:$0xf] %vm280_vm1, %v341_v57  ;;  %294 = vst.msk [vmem:[%s524_s3 + $0x34] sm:$0xf] %vm280_vm1, %v349_v58 }

// kernel: faster_rcnn_eval_forward.15
= control target key start
LH: loop header
LB: loop body
LE: loop exit
PB: predicated region body
PF: predicated region fallthrough
CT: control target
= control target key end

     0   :  { %vm318_vm0 = vcmask 261120   ;;  %vm601_vm1 = vcmask 257024   ;;  %s1116_s1 = inlined_call_operand.vmem [shape: bf16[288,32], index: 1, kind: input, shape index: {}]   ;;  %s1117_s0 = inlined_call_operand.vmem [shape: bf16[128,288], index: 0, kind: input, shape index: {}]   ;;  %s1118_s2 = inlined_call_operand.vmem [shape: f32[1,32], index: 2, kind: input, shape index: {}]   ;;  %s1119_s3 = inlined_call_operand.vmem [shape: bf16[128,32], index: 3, kind: output, shape index: {}]  }
   0x1   :  { %v815_v0 = vld [vmem:[%s1116_s1 + $0x40] sm:$0xff]   ;;  %v817_v2 = vld [vmem:[%s1116_s1 + $0x48] sm:$0xff]   ;;  %v819_v4 = vld [vmem:[%s1116_s1 + $0x50] sm:$0xff]  }
   0x2   :  { %v816_v1 = vld [vmem:[%s1116_s1] sm:$0xff]   ;;  %705 = vmatprep.subr.bf16.mxu0 %v815_v0  ;;  %799 = vmatprep.subr.bf16.mxu1 %v815_v0  ;;  %v818_v3 = vld [vmem:[%s1116_s1 + $0x8] sm:$0xff]   ;;  %v820_v5 = vld [vmem:[%s1116_s1 + $0x10] sm:$0xff]  }
   0x3   :  { %706 = vmatpush3.bf16.msra.mxu0 %v816_v1  ;;  %807 = vmatpush3.bf16.msra.mxu1 %v816_v1  ;;  %v821_v6 = vld [vmem:[%s1116_s1 + $0x58] sm:$0xff]   ;;  %v823_v8 = vld [vmem:[%s1116_s1 + $0x60] sm:$0xff]   ;;  %v825_v10 = vld [vmem:[%s1116_s1 + $0x68] sm:$0xff]  }
   0x4   :  { %707 = vmatprep.subr.bf16.mxu0 %v817_v2  ;;  %800 = vmatprep.subr.bf16.mxu1 %v817_v2  ;;  %v822_v7 = vld [vmem:[%s1116_s1 + $0x18] sm:$0xff]   ;;  %v824_v9 = vld [vmem:[%s1116_s1 + $0x20] sm:$0xff]   ;;  %v826_v13 = vld [vmem:[%s1116_s1 + $0x28] sm:$0xff]  }
   0x5   :  { %v833_v11 = vld [vmem:[%s1117_s0 + $0x4] ss:$12 sps:$4 sm:$0xff]   ;;  %v836_v12 = vld [vmem:[%s1117_s0 + $0x94] ss:$12 sps:$4 sm:$0xff]   ;;  %v829_v16 = vld [vmem:[%s1116_s1 + $0x78] sm:$0xff]  }
   0x6   :  { %v827_v14 = vld [vmem:[%s1116_s1 + $0x70] sm:$0xff]   ;;  %375 = vmatprep.mubr.bf16.mxu0 %v833_v11  ;;  %423 = vmatprep.mubr.bf16.mxu1 %v836_v12  ;;  %v830_v17 = vld [vmem:[%s1116_s1 + $0x38] sm:$0xff]   ;;  %v831_v18 = vld [vmem:[%s1117_s0] ss:$12 sps:$4 sm:$0xff]  }
   0x7   :  { %708 = vmatpush3.bf16.msra.mxu0 %v818_v3  ;;  %808 = vmatpush3.bf16.msra.mxu1 %v818_v3  ;;  %v828_v15 = vld [vmem:[%s1116_s1 + $0x30] sm:$0xff]   ;;  %v837_v19 = vld [vmem:[%s1116_s1 + $0x80] sm:$0xff]   ;;  %v838_v21 = vld [vmem:[%s1117_s0 + $0x1c] ss:$12 sps:$4 sm:$0xff]  }
   0x8   :  { %709 = vmatprep.subr.bf16.mxu0 %v819_v4  ;;  %801 = vmatprep.subr.bf16.mxu1 %v819_v4  ;;  %v834_v20 = vld [vmem:[%s1117_s0 + $0x90] ss:$12 sps:$4 sm:$0xff]   ;;  %v840_v22 = vld [vmem:[%s1117_s0 + $0xac] ss:$12 sps:$4 sm:$0xff]   ;;  %v843_v25 = vld [vmem:[%s1117_s0 + $0xa8] ss:$12 sps:$4 sm:$0xff]  }
   0x9   :  { %v844_v23 = vld [vmem:[%s1116_s1 + $0x88] sm:$0xff]   ;;  %v842_v24 = vld [vmem:[%s1117_s0 + $0x18] ss:$12 sps:$4 sm:$0xff]   ;;  %v845_v26 = vld [vmem:[%s1117_s0 + $0x34] ss:$12 sps:$4 sm:$0xff]  }
   0xa   :  { %v847_v27 = vld [vmem:[%s1117_s0 + $0x8] ss:$12 sps:$4 sm:$0xff]   ;;  %v848_v28 = vld [vmem:[%s1117_s0 + $0x30] ss:$12 sps:$4 sm:$0xff]   ;;  %v849_v29 = vld [vmem:[%s1117_s0 + $0x20] ss:$12 sps:$4 sm:$0xff]  }
   0xb   :  { %710 = vmatpush3.bf16.msra.mxu0 %v820_v5  ;;  %809 = vmatpush3.bf16.msra.mxu1 %v820_v5  ;;  %v850_v30 = vld [vmem:[%s1117_s0 + $0x4c] ss:$12 sps:$4 sm:$0xff]   ;;  %v853_v32 = vld [vmem:[%s1117_s0 + $0x48] ss:$12 sps:$4 sm:$0xff]   ;;  %v854_v33 = vld [vmem:[%s1117_s0 + $0x50] ss:$12 sps:$4 sm:$0xff]  }
   0xc   :  { %711 = vmatprep.subr.bf16.mxu0 %v821_v6  ;;  %802 = vmatprep.subr.bf16.mxu1 %v821_v6  ;;  %v852_v31 = vld [vmem:[%s1117_s0 + $0x38] ss:$12 sps:$4 sm:$0xff]   ;;  %v857_v35 = vld [vmem:[%s1117_s0 + $0x68] ss:$12 sps:$4 sm:$0xff]   ;;  %v858_v36 = vld [vmem:[%s1117_s0 + $0x60] ss:$12 sps:$4 sm:$0xff]  }
   0xd   :  { %v855_v34 = vld [vmem:[%s1117_s0 + $0x64] ss:$12 sps:$4 sm:$0xff]   ;;  %v859_v37 = vld [vmem:[%s1117_s0 + $0x80] ss:$12 sps:$4 sm:$0xff]   ;;  %v860_v38 = vld [vmem:[%s1117_s0 + $0x7c] ss:$12 sps:$4 sm:$0xff]  }
   0xe   :  { %v862_v39 = vld [vmem:[%s1117_s0 + $0x98] ss:$12 sps:$4 sm:$0xff]   ;;  %v864_v41 = vld [vmem:[%s1117_s0 + $0xb0] ss:$12 sps:$4 sm:$0xff]   ;;  %v1030_v2 = vld [vmem:[%s1118_s2] ss:$0 sm:$0xff] }
   0xf   :  { %712 = vmatpush3.bf16.msra.mxu0 %v822_v7  ;;  %810 = vmatpush3.bf16.msra.mxu1 %v822_v7  ;;  %v863_v40 = vld [vmem:[%s1117_s0 + $0x78] ss:$12 sps:$4 sm:$0xff]  }
  0x10   :  { %713 = vmatprep.subr.bf16.mxu0 %v823_v8  ;;  %803 = vmatprep.subr.bf16.mxu1 %v823_v8 }
  0x13   :  { %714 = vmatpush3.bf16.msra.mxu0 %v824_v9  ;;  %811 = vmatpush3.bf16.msra.mxu1 %v824_v9 }
  0x14   :  { %715 = vmatprep.subr.bf16.mxu0 %v825_v10  ;;  %804 = vmatprep.subr.bf16.mxu1 %v825_v10 }
  0x17   :  { %716 = vmatpush3.bf16.msra.mxu0 %v826_v13  ;;  %812 = vmatpush3.bf16.msra.mxu1 %v826_v13 }
  0x18   :  { %717 = vmatprep.subr.bf16.mxu0 %v827_v14  ;;  %805 = vmatprep.subr.bf16.mxu1 %v827_v14 }
  0x1b   :  { %718 = vmatpush3.bf16.msra.mxu0 %v828_v15  ;;  %813 = vmatpush3.bf16.msra.mxu1 %v828_v15 }
  0x1c   :  { %719 = vmatprep.subr.bf16.mxu0 %v829_v16  ;;  %806 = vmatprep.subr.bf16.mxu1 %v829_v16 }
  0x1f   :  { %720 = vmatpush3.bf16.msra.mxu0 %v830_v17  ;;  %814 = vmatpush3.bf16.msra.mxu1 %v830_v17 }
  0x20   :  { %779 = vmatprep.subr.bf16.mxu1 %v837_v19 }
  0x22   :  { %376 = vmatmul.mubr.bf16.vlgmr.msra.gmra.mrb[0].mxu0 %v831_v18  ;;  %424 = vmatmul.mubr.bf16.vlgmr.msra.gmra.mrb[0].mxu1 %v834_v20 }
  0x23   :  { %780 = vmatpush3.bf16.msra.mxu1 %v837_v19  ;;  %383 = vmatprep.mubr.bf16.mxu0 %v838_v21 }
  0x24   :  { %431 = vmatprep.mubr.bf16.mxu1 %v840_v22  ;;  %781 = vmatprep.subr.bf16.mxu1 %v844_v23 }
  0x27   :  { %782 = vmatpush3.bf16.msra.mxu1 %v844_v23 }
  0x2a   :  { %384 = vmatmul.mubr.bf16.gmra.mrb[4].mxu0 %v842_v24  ;;  %432 = vmatmul.mubr.bf16.gmra.mrb[4].mxu1 %v843_v25 }
  0x2b   :  { %391 = vmatprep.mubr.bf16.mxu0 %v845_v26  ;;  %783 = vmatprep.mubr.msk.bf16.mxu1 %vm318_vm0, %v847_v27 }
  0x32   :  { %392 = vmatmul.mubr.bf16.gmra.mrb[8].mxu0 %v848_v28  ;;  %784 = vmatmul.mubr.msk.bf16.vlgmr.msra.gmra.mrb[8].mxu1 %vm318_vm0, %v849_v29 }
  0x33   :  { %399 = vmatprep.mubr.bf16.mxu0 %v850_v30  ;;  %787 = vmatprep.mubr.msk.bf16.mxu1 %vm318_vm0, %v852_v31 }
  0x3a   :  { %400 = vmatmul.mubr.bf16.gmra.mrb[12].mxu0 %v853_v32  ;;  %788 = vmatmul.mubr.msk.bf16.gmra.mrb[12].mxu1 %vm318_vm0, %v854_v33 }
  0x3b   :  { %407 = vmatprep.mubr.bf16.mxu0 %v855_v34  ;;  %791 = vmatprep.mubr.msk.bf16.mxu1 %vm318_vm0, %v857_v35 }
  0x42   :  { %408 = vmatmul.mubr.bf16.gmra.mrb[16].mxu0 %v858_v36  ;;  %792 = vmatmul.mubr.msk.bf16.gmra.mrb[16].mxu1 %vm318_vm0, %v859_v37 }
  0x43   :  { %415 = vmatprep.mubr.bf16.mxu0 %v860_v38  ;;  %795 = vmatprep.mubr.msk.bf16.mxu1 %vm318_vm0, %v862_v39 }
  0x4a   :  { %416 = vmatmul.mubr.bf16.gmra.mrb[20].mxu0 %v863_v40  ;;  %796 = vmatmul.mubr.msk.bf16.gmra.mrb[20].mxu1 %vm318_vm0, %v864_v41 }
  0xf5   :  { %v721_v42 = vpop.f32.mrb[0].mxu0  ;;  %v757_v43 = vpop.f32.mrb[0].mxu1 }
  0xf6   :  { %v722_v44 = vpop.f32.mrb[1].mxu0  ;;  %v758_v45 = vpop.f32.mrb[1].mxu1 }
  0xf7   :  { %v723_v46 = vadd.f32 %v722_v44, %v721_v42  ;;  %v724_v47 = vpop.f32.mrb[2].mxu0  ;;  %v1019_v48 = vadd.f32 %v758_v45, %v757_v43  ;;  %v760_v49 = vpop.f32.mrb[2].mxu1 }
  0xf8   :  { %v725_v50 = vpop.f32.mrb[3].mxu0  ;;  %v761_v51 = vpop.f32.mrb[3].mxu1 }
  0xf9   :  { %v726_v52 = vadd.f32 %v725_v50, %v724_v47  ;;  %v1021_v53 = vadd.f32 %v761_v51, %v760_v49  ;;  %v378_v6 = vadd.f32 %v723_v46, %v1030_v2 }
  0xfb   :  { %v381_v15 = vadd.f32 %v726_v52, %v1030_v2 }
  0xfd   :  { %v727_v54 = vpop.f32.mrb[4].mxu0  ;;  %v763_v55 = vpop.f32.mrb[4].mxu1 }
  0xfe   :  { %v728_v56 = vpop.f32.mrb[5].mxu0  ;;  %v764_v57 = vpop.f32.mrb[5].mxu1 }
  0xff   :  { %v729_v58 = vadd.f32 %v728_v56, %v727_v54  ;;  %v730_v59 = vpop.f32.mrb[6].mxu0  ;;  %v1023_v60 = vadd.f32 %v764_v57, %v763_v55  ;;  %v766_v61 = vpop.f32.mrb[6].mxu1 }
 0x100   :  { %v731_v62 = vpop.f32.mrb[7].mxu0  ;;  %v767_v63 = vpop.f32.mrb[7].mxu1 }
 0x101   :  { %v732_v0 = vadd.f32 %v731_v62, %v730_v59  ;;  %v1025_v1 = vadd.f32 %v767_v63, %v766_v61  ;;  %v386_v3 = vadd.f32 %v729_v58, %v1030_v2  ;;  %v434_v63 = vadd.f32 %v1023_v60, %v1030_v2 }
 0x103   :  { %v389_v10 = vadd.f32 %v732_v0, %v1030_v2 }
 0x105   :  { %v733_v4 = vpop.f32.mrb[8].mxu0  ;;  %v785_v5 = vpop.f32.mrb[8].mxu1 }
 0x106   :  { %v483_v7 = vadd.f32 %v785_v5, %v386_v3  ;;  %v734_v8 = vpop.f32.mrb[9].mxu0  ;;  %v474_v9 = vpop.f32.mrb[9].mxu1 }
 0x107   :  { %v735_v11 = vadd.f32 %v734_v8, %v733_v4  ;;  %v475_v12 = vadd.f32 %v474_v9, %v378_v6  ;;  %v736_v13 = vpop.f32.mrb[10].mxu0  ;;  %v786_v14 = vpop.f32.mrb[10].mxu1  ;;  %v426_v6 = vadd.f32 %v1019_v48, %v1030_v2 }
 0x108   :  { %v691_v16 = vpack.c.bf16 %v483_v7, %v483_v7  ;;  %v486_v17 = vadd.f32 %v786_v14, %v389_v10  ;;  %v737_v18 = vpop.f32.mrb[11].mxu0  ;;  %v477_v19 = vpop.f32.mrb[11].mxu1  ;;  %v437_v10 = vadd.f32 %v1025_v1, %v1030_v2 }
 0x109   :  { %v689_v20 = vpack.c.bf16 %v475_v12, %v475_v12  ;;  %v738_v21 = vadd.f32 %v737_v18, %v736_v13  ;;  %v478_v22 = vadd.f32 %v477_v19, %v381_v15  ;;  %v394_v27 = vadd.f32 %v735_v11, %v1030_v2 }
 0x10a   :  { %604 = vst.msk [vmem:[%s1119_s3 + $0x8] sm:$0xf] %vm601_vm1, %v691_v16  ;;  %v692_v23 = vpack.c.bf16 %v486_v17, %v486_v17  ;;  %v429_v15 = vadd.f32 %v1021_v53, %v1030_v2 }
 0x10b   :  { %602 = vst.msk [vmem:[%s1119_s3] sm:$0xf] %vm601_vm1, %v689_v20  ;;  %v690_v24 = vpack.c.bf16 %v478_v22, %v478_v22  ;;  %v397_v34 = vadd.f32 %v738_v21, %v1030_v2 }
 0x10c   :  { %605 = vst.msk [vmem:[%s1119_s3 + $0xc] sm:$0xf] %vm601_vm1, %v692_v23 }
 0x10d   :  { %603 = vst.msk [vmem:[%s1119_s3 + $0x4] sm:$0xf] %vm601_vm1, %v690_v24  ;;  %v739_v25 = vpop.f32.mrb[12].mxu0  ;;  %v789_v26 = vpop.f32.mrb[12].mxu1 }
 0x10e   :  { %v740_v28 = vpop.f32.mrb[13].mxu0  ;;  %v490_v29 = vpop.f32.mrb[13].mxu1 }
 0x10f   :  { %v741_v30 = vadd.f32 %v740_v28, %v739_v25  ;;  %v491_v31 = vadd.f32 %v490_v29, %v394_v27  ;;  %v742_v32 = vpop.f32.mrb[14].mxu0  ;;  %v790_v33 = vpop.f32.mrb[14].mxu1 }
 0x110   :  { %v743_v35 = vpop.f32.mrb[15].mxu0  ;;  %v493_v36 = vpop.f32.mrb[15].mxu1 }
 0x111   :  { %v402_v37 = vadd.f32 %v741_v30, %v1030_v2  ;;  %v693_v38 = vpack.c.bf16 %v491_v31, %v491_v31  ;;  %v744_v39 = vadd.f32 %v743_v35, %v742_v32  ;;  %v494_v40 = vadd.f32 %v493_v36, %v397_v34 }
 0x113   :  { %v499_v41 = vadd.f32 %v789_v26, %v402_v37  ;;  %606 = vst.msk [vmem:[%s1119_s3 + $0x10] sm:$0xf] %vm601_vm1, %v693_v38  ;;  %v405_v42 = vadd.f32 %v744_v39, %v1030_v2  ;;  %v694_v43 = vpack.c.bf16 %v494_v40, %v494_v40 }
 0x115   :  { %v695_v44 = vpack.c.bf16 %v499_v41, %v499_v41  ;;  %v502_v45 = vadd.f32 %v790_v33, %v405_v42  ;;  %607 = vst.msk [vmem:[%s1119_s3 + $0x14] sm:$0xf] %vm601_vm1, %v694_v43  ;;  %v745_v46 = vpop.f32.mrb[16].mxu0  ;;  %v793_v47 = vpop.f32.mrb[16].mxu1 }
 0x116   :  { %v746_v49 = vpop.f32.mrb[17].mxu0  ;;  %v506_v50 = vpop.f32.mrb[17].mxu1 }
 0x117   :  { %608 = vst.msk [vmem:[%s1119_s3 + $0x18] sm:$0xf] %vm601_vm1, %v695_v44  ;;  %v696_v51 = vpack.c.bf16 %v502_v45, %v502_v45  ;;  %v747_v52 = vadd.f32 %v746_v49, %v745_v46  ;;  %v748_v54 = vpop.f32.mrb[18].mxu0  ;;  %v794_v55 = vpop.f32.mrb[18].mxu1 }
 0x118   :  { %v749_v56 = vpop.f32.mrb[19].mxu0  ;;  %v509_v57 = vpop.f32.mrb[19].mxu1 }
 0x119   :  { %609 = vst.msk [vmem:[%s1119_s3 + $0x1c] sm:$0xf] %vm601_vm1, %v696_v51  ;;  %v410_v58 = vadd.f32 %v747_v52, %v1030_v2  ;;  %v750_v59 = vadd.f32 %v749_v56, %v748_v54 }
 0x11b   :  { %v507_v61 = vadd.f32 %v506_v50, %v410_v58  ;;  %v413_v62 = vadd.f32 %v750_v59, %v1030_v2 }
 0x11d   :  { %v697_v0 = vpack.c.bf16 %v507_v61, %v507_v61  ;;  %v510_v3 = vadd.f32 %v509_v57, %v413_v62  ;;  %v751_v4 = vpop.f32.mrb[20].mxu0  ;;  %v797_v5 = vpop.f32.mrb[20].mxu1 }
 0x11e   :  { %v531_v7 = vadd.f32 %v797_v5, %v434_v63  ;;  %v752_v8 = vpop.f32.mrb[21].mxu0  ;;  %v522_v9 = vpop.f32.mrb[21].mxu1 }
 0x11f   :  { %610 = vst.msk [vmem:[%s1119_s3 + $0x20] sm:$0xf] %vm601_vm1, %v697_v0  ;;  %v698_v11 = vpack.c.bf16 %v510_v3, %v510_v3  ;;  %v753_v60 = vadd.f32 %v752_v8, %v751_v4  ;;  %v523_v12 = vadd.f32 %v522_v9, %v426_v6  ;;  %v754_v13 = vpop.f32.mrb[22].mxu0  ;;  %v798_v14 = vpop.f32.mrb[22].mxu1 }
 0x120   :  { %v703_v48 = vpack.c.bf16 %v531_v7, %v531_v7  ;;  %v534_v16 = vadd.f32 %v798_v14, %v437_v10  ;;  %v755_v17 = vpop.f32.mrb[23].mxu0  ;;  %v525_v18 = vpop.f32.mrb[23].mxu1 }
 0x121   :  { %611 = vst.msk [vmem:[%s1119_s3 + $0x24] sm:$0xf] %vm601_vm1, %v698_v11  ;;  %v418_v1 = vadd.f32 %v753_v60, %v1030_v2  ;;  %v701_v19 = vpack.c.bf16 %v523_v12, %v523_v12  ;;  %v756_v20 = vadd.f32 %v755_v17, %v754_v13  ;;  %v526_v21 = vadd.f32 %v525_v18, %v429_v15 }
 0x122   :  { %616 = vst.msk [vmem:[%s1119_s3 + $0x38] sm:$0xf] %vm601_vm1, %v703_v48  ;;  %v704_v53 = vpack.c.bf16 %v534_v16, %v534_v16 }
 0x123   :  { %v515_v22 = vadd.f32 %v793_v47, %v418_v1  ;;  %614 = vst.msk [vmem:[%s1119_s3 + $0x30] sm:$0xf] %vm601_vm1, %v701_v19  ;;  %v421_v23 = vadd.f32 %v756_v20, %v1030_v2  ;;  %v702_v24 = vpack.c.bf16 %v526_v21, %v526_v21 }
 0x124   :  { %617 = vst.msk [vmem:[%s1119_s3 + $0x3c] sm:$0xf] %vm601_vm1, %v704_v53 }
 0x125   :  { %v699_v25 = vpack.c.bf16 %v515_v22, %v515_v22  ;;  %v518_v26 = vadd.f32 %v794_v55, %v421_v23  ;;  %615 = vst.msk [vmem:[%s1119_s3 + $0x34] sm:$0xf] %vm601_vm1, %v702_v24 }
 0x127   :  { %612 = vst.msk [vmem:[%s1119_s3 + $0x28] sm:$0xf] %vm601_vm1, %v699_v25  ;;  %v700_v27 = vpack.c.bf16 %v518_v26, %v518_v26 }
 0x129   :  { %613 = vst.msk [vmem:[%s1119_s3 + $0x2c] sm:$0xf] %vm601_vm1, %v700_v27 }

// kernel: faster_rcnn_eval_forward.17
= control target key start
LH: loop header
LB: loop body
LE: loop exit
PB: predicated region body
PF: predicated region fallthrough
CT: control target
= control target key end

     0   :  { %vm324_vm0 = vcmask 261120   ;;  %s1237_s1 = inlined_call_operand.vmem [shape: bf16[288,32], index: 1, kind: input, shape index: {}]   ;;  %s1238_s0 = inlined_call_operand.vmem [shape: bf16[128,288], index: 0, kind: input, shape index: {}]   ;;  %s1239_s3 = inlined_call_operand.vmem [shape: bf16[32,128], index: 3, kind: input, shape index: {}]   ;;  %s1240_s2 = inlined_call_operand.vmem [shape: f32[1,32], index: 2, kind: input, shape index: {}]   ;;  %s1241_s4 = inlined_call_operand.vmem [shape: f32[1,128], index: 4, kind: input, shape index: {}]   ;;  %s1242_s5 = inlined_call_operand.vmem [shape: f32[128,128], index: 5, kind: output, shape index: {}]  }
   0x1   :  { %v917_v0 = vld [vmem:[%s1237_s1 + $0x40] sm:$0xff]   ;;  %v919_v2 = vld [vmem:[%s1237_s1 + $0x48] sm:$0xff]   ;;  %v921_v4 = vld [vmem:[%s1237_s1 + $0x50] sm:$0xff]  }
   0x2   :  { %v918_v1 = vld [vmem:[%s1237_s1] sm:$0xff]   ;;  %793 = vmatprep.subr.bf16.mxu0 %v917_v0  ;;  %v920_v3 = vld [vmem:[%s1237_s1 + $0x8] sm:$0xff]   ;;  %v922_v5 = vld [vmem:[%s1237_s1 + $0x10] sm:$0xff]  }
   0x3   :  { %794 = vmatpush3.bf16.msra.mxu0 %v918_v1  ;;  %v923_v6 = vld [vmem:[%s1237_s1 + $0x58] sm:$0xff]   ;;  %v925_v8 = vld [vmem:[%s1237_s1 + $0x60] sm:$0xff]   ;;  %v927_v11 = vld [vmem:[%s1237_s1 + $0x68] sm:$0xff]  }
   0x4   :  { %795 = vmatprep.subr.bf16.mxu0 %v919_v2  ;;  %v924_v7 = vld [vmem:[%s1237_s1 + $0x18] sm:$0xff]   ;;  %v926_v9 = vld [vmem:[%s1237_s1 + $0x20] sm:$0xff]   ;;  %v928_v12 = vld [vmem:[%s1237_s1 + $0x28] sm:$0xff]  }
   0x5   :  { %v932_v10 = vld [vmem:[%s1237_s1 + $0x80] sm:$0xff]   ;;  %v929_v13 = vld [vmem:[%s1237_s1 + $0x70] sm:$0xff]   ;;  %v937_v15 = vld [vmem:[%s1237_s1 + $0x88] sm:$0xff]  }
   0x6   :  { %877 = vmatprep.subr.bf16.mxu1 %v932_v10  ;;  %v936_v14 = vld [vmem:[%s1238_s0 + $0x4] ss:$12 sps:$4 sm:$0xff]   ;;  %v938_v16 = vld [vmem:[%s1238_s0 + $0x8] ss:$12 sps:$4 sm:$0xff]   ;;  %v939_v17 = vld [vmem:[%s1238_s0 + $0x20] ss:$12 sps:$4 sm:$0xff]  }
   0x7   :  { %796 = vmatpush3.bf16.msra.mxu0 %v920_v3  ;;  %878 = vmatpush3.bf16.msra.mxu1 %v932_v10  ;;  %v930_v18 = vld [vmem:[%s1237_s1 + $0x30] sm:$0xff]   ;;  %v931_v19 = vld [vmem:[%s1237_s1 + $0x78] sm:$0xff]   ;;  %v934_v22 = vld [vmem:[%s1238_s0] ss:$12 sps:$4 sm:$0xff]  }
   0x8   :  { %797 = vmatprep.subr.bf16.mxu0 %v921_v4  ;;  %381 = vmatprep.mubr.bf16.mxu0 %v936_v14  ;;  %v946_v20 = vld [vmem:[%s1238_s0 + $0x38] ss:$12 sps:$4 sm:$0xff]   ;;  %v947_v23 = vld [vmem:[%s1238_s0 + $0x50] ss:$12 sps:$4 sm:$0xff]   ;;  %v954_v24 = vld [vmem:[%s1238_s0 + $0x68] ss:$12 sps:$4 sm:$0xff]  }
   0x9   :  { %879 = vmatprep.subr.bf16.mxu1 %v937_v15  ;;  %881 = vmatprep.mubr.msk.bf16.mxu1 %vm324_vm0, %v938_v16  ;;  %v933_v21 = vld [vmem:[%s1237_s1 + $0x38] sm:$0xff]   ;;  %v955_v26 = vld [vmem:[%s1238_s0 + $0x80] ss:$12 sps:$4 sm:$0xff]   ;;  %v950_v33 = vld [vmem:[%s1238_s0 + $0x48] ss:$12 sps:$4 sm:$0xff]  }
   0xa   :  { %v940_v25 = vld [vmem:[%s1238_s0 + $0x1c] ss:$12 sps:$4 sm:$0xff]   ;;  %v942_v27 = vld [vmem:[%s1238_s0 + $0x18] ss:$12 sps:$4 sm:$0xff]   ;;  %v943_v29 = vld [vmem:[%s1238_s0 + $0x34] ss:$12 sps:$4 sm:$0xff]  }
   0xb   :  { %798 = vmatpush3.bf16.msra.mxu0 %v922_v5  ;;  %880 = vmatpush3.bf16.msra.mxu1 %v937_v15  ;;  %v962_v28 = vld [vmem:[%s1238_s0 + $0x98] ss:$12 sps:$4 sm:$0xff]   ;;  %v963_v30 = vld [vmem:[%s1238_s0 + $0xb0] ss:$12 sps:$4 sm:$0xff]   ;;  %v953_v35 = vld [vmem:[%s1238_s0 + $0x60] ss:$12 sps:$4 sm:$0xff]  }
   0xc   :  { %799 = vmatprep.subr.bf16.mxu0 %v923_v6  ;;  %v945_v31 = vld [vmem:[%s1238_s0 + $0x30] ss:$12 sps:$4 sm:$0xff]   ;;  %v948_v32 = vld [vmem:[%s1238_s0 + $0x4c] ss:$12 sps:$4 sm:$0xff]   ;;  %v959_v38 = vld [vmem:[%s1238_s0 + $0x94] ss:$12 sps:$4 sm:$0xff]  }
   0xd   :  { %v951_v34 = vld [vmem:[%s1238_s0 + $0x64] ss:$12 sps:$4 sm:$0xff]   ;;  %v956_v36 = vld [vmem:[%s1238_s0 + $0x7c] ss:$12 sps:$4 sm:$0xff]   ;;  %v964_v40 = vld [vmem:[%s1238_s0 + $0xac] ss:$12 sps:$4 sm:$0xff]  }
   0xe   :  { %882 = vmatmul.mubr.msk.bf16.vlgmr.msra.gmra.mrb[0].mxu1 %vm324_vm0, %v939_v17  ;;  %v958_v37 = vld [vmem:[%s1238_s0 + $0x78] ss:$12 sps:$4 sm:$0xff]   ;;  %v961_v39 = vld [vmem:[%s1238_s0 + $0x90] ss:$12 sps:$4 sm:$0xff]   ;;  %v966_v41 = vld [vmem:[%s1238_s0 + $0xa8] ss:$12 sps:$4 sm:$0xff]  }
   0xf   :  { %800 = vmatpush3.bf16.msra.mxu0 %v924_v7  ;;  %885 = vmatprep.mubr.msk.bf16.mxu1 %vm324_vm0, %v946_v20  ;;  %v967_v42 = vld [vmem:[%s1239_s3] sm:$0xff]   ;;  %v968_v43 = vld [vmem:[%s1239_s3 + $0x8] sm:$0xff]  }
  0x10   :  { %801 = vmatprep.subr.bf16.mxu0 %v925_v8  ;;  %897 = vmatprep.subr.bf16.mxu1 %v967_v42  ;;  %v1142_v52 = vld [vmem:[%s1240_s2] ss:$0 sm:$0xff] }
  0x11   :  { %898 = vmatpush3.bf16.msra.mxu1 %v967_v42 }
  0x12   :  { %899 = vmatprep.subr.bf16.mxu1 %v968_v43 }
  0x13   :  { %802 = vmatpush3.bf16.msra.mxu0 %v926_v9 }
  0x14   :  { %803 = vmatprep.subr.bf16.mxu0 %v927_v11 }
  0x15   :  { %900 = vmatpush3.bf16.msra.mxu1 %v968_v43 }
  0x16   :  { %886 = vmatmul.mubr.msk.bf16.gmra.mrb[4].mxu1 %vm324_vm0, %v947_v23 }
  0x17   :  { %804 = vmatpush3.bf16.msra.mxu0 %v928_v12  ;;  %889 = vmatprep.mubr.msk.bf16.mxu1 %vm324_vm0, %v954_v24 }
  0x18   :  { %805 = vmatprep.subr.bf16.mxu0 %v929_v13 }
  0x1b   :  { %806 = vmatpush3.bf16.msra.mxu0 %v930_v18 }
  0x1c   :  { %807 = vmatprep.subr.bf16.mxu0 %v931_v19 }
  0x1e   :  { %890 = vmatmul.mubr.msk.bf16.gmra.mrb[8].mxu1 %vm324_vm0, %v955_v26 }
  0x1f   :  { %808 = vmatpush3.bf16.msra.mxu0 %v933_v21  ;;  %893 = vmatprep.mubr.msk.bf16.mxu1 %vm324_vm0, %v962_v28 }
  0x22   :  { %382 = vmatmul.mubr.bf16.vlgmr.msra.gmra.mrb[0].mxu0 %v934_v22 }
  0x23   :  { %389 = vmatprep.mubr.bf16.mxu0 %v940_v25 }
  0x26   :  { %894 = vmatmul.mubr.msk.bf16.gmra.mrb[12].mxu1 %vm324_vm0, %v963_v30 }
  0x2a   :  { %390 = vmatmul.mubr.bf16.gmra.mrb[4].mxu0 %v942_v27 }
  0x2b   :  { %397 = vmatprep.mubr.bf16.mxu0 %v943_v29 }
  0x32   :  { %398 = vmatmul.mubr.bf16.gmra.mrb[8].mxu0 %v945_v31 }
  0x33   :  { %405 = vmatprep.mubr.bf16.mxu0 %v948_v32 }
  0x3a   :  { %406 = vmatmul.mubr.bf16.gmra.mrb[12].mxu0 %v950_v33 }
  0x3b   :  { %413 = vmatprep.mubr.bf16.mxu0 %v951_v34 }
  0x42   :  { %414 = vmatmul.mubr.bf16.gmra.mrb[16].mxu0 %v953_v35 }
  0x43   :  { %421 = vmatprep.mubr.bf16.mxu0 %v956_v36 }
  0x4a   :  { %422 = vmatmul.mubr.bf16.gmra.mrb[20].mxu0 %v958_v37 }
  0x4b   :  { %429 = vmatprep.mubr.bf16.mxu0 %v959_v38 }
  0x52   :  { %430 = vmatmul.mubr.bf16.gmra.mrb[24].mxu0 %v961_v39 }
  0x53   :  { %437 = vmatprep.mubr.bf16.mxu0 %v964_v40 }
  0x5a   :  { %438 = vmatmul.mubr.bf16.gmra.mrb[28].mxu0 %v966_v41 }
  0xe1   :  { %v883_v44 = vpop.f32.mrb[0].mxu1 }
  0xe2   :  { %v480_v45 = vpop.f32.mrb[1].mxu1 }
  0xe3   :  { %v884_v46 = vpop.f32.mrb[2].mxu1 }
  0xe4   :  { %v483_v47 = vpop.f32.mrb[3].mxu1 }
  0xe9   :  { %v887_v48 = vpop.f32.mrb[4].mxu1 }
  0xea   :  { %v496_v50 = vpop.f32.mrb[5].mxu1 }
  0xeb   :  { %v888_v53 = vpop.f32.mrb[6].mxu1 }
  0xec   :  { %v499_v56 = vpop.f32.mrb[7].mxu1 }
  0xf1   :  { %v1146_v62 = vpop.f32.mrb[8].mxu1 }
  0xf2   :  { %v512_v1 = vpop.f32.mrb[9].mxu1 }
  0xf3   :  { %v1148_v3 = vpop.f32.mrb[10].mxu1 }
  0xf4   :  { %v515_v8 = vpop.f32.mrb[11].mxu1 }
  0xf5   :  { %v809_v49 = vpop.f32.mrb[0].mxu0 }
  0xf6   :  { %v810_v51 = vpop.f32.mrb[1].mxu0 }
  0xf7   :  { %v811_v54 = vadd.f32 %v810_v51, %v809_v49  ;;  %v812_v55 = vpop.f32.mrb[2].mxu0 }
  0xf8   :  { %v813_v57 = vpop.f32.mrb[3].mxu0 }
  0xf9   :  { %v814_v58 = vadd.f32 %v813_v57, %v812_v55  ;;  %v384_v59 = vadd.f32 %v811_v54, %v1142_v52  ;;  %v1153_v15 = vpop.f32.mrb[12].mxu1 }
  0xfa   :  { %v1155_v18 = vpop.f32.mrb[13].mxu1 }
  0xfb   :  { %v481_v60 = vadd.f32 %v480_v45, %v384_v59  ;;  %v387_v61 = vadd.f32 %v814_v58, %v1142_v52  ;;  %v1157_v20 = vpop.f32.mrb[14].mxu1 }
  0xfc   :  { %v1159_v25 = vpop.f32.mrb[15].mxu1 }
  0xfd   :  { %v484_v63 = vadd.f32 %v483_v47, %v387_v61  ;;  %v815_v0 = vpop.f32.mrb[4].mxu0  ;;  %v543_v4 = vmax.f32 %v481_v60, 0.0 }
  0xfe   :  { %v816_v2 = vpop.f32.mrb[5].mxu0 }
  0xff   :  { %v544_v5 = vmax.f32 %v484_v63, 0.0  ;;  %v817_v6 = vadd.f32 %v816_v2, %v815_v0  ;;  %v818_v7 = vpop.f32.mrb[6].mxu0 }
 0x100   :  { %v819_v9 = vpop.f32.mrb[7].mxu0 }
 0x101   :  { %v559_v10 = vpack.c.bf16 %v544_v5, %v543_v4  ;;  %v392_v11 = vadd.f32 %v817_v6, %v1142_v52  ;;  %v820_v12 = vadd.f32 %v819_v9, %v818_v7 }
 0x103   :  { %v489_v13 = vadd.f32 %v883_v44, %v392_v11  ;;  %v395_v14 = vadd.f32 %v820_v12, %v1142_v52  ;;  %901 = vmatprep.mubr.msk.bf16.mxu1 %vm324_vm0, %v559_v10 }
 0x105   :  { %v492_v16 = vadd.f32 %v884_v46, %v395_v14  ;;  %v821_v17 = vpop.f32.mrb[8].mxu0  ;;  %v545_v21 = vmax.f32 %v489_v13, 0.0 }
 0x106   :  { %v822_v19 = vpop.f32.mrb[9].mxu0 }
 0x107   :  { %v546_v22 = vmax.f32 %v492_v16, 0.0  ;;  %v823_v23 = vadd.f32 %v822_v19, %v821_v17  ;;  %v824_v24 = vpop.f32.mrb[10].mxu0 }
 0x108   :  { %v825_v26 = vpop.f32.mrb[11].mxu0 }
 0x109   :  { %v560_v27 = vpack.c.bf16 %v546_v22, %v545_v21  ;;  %v826_v28 = vadd.f32 %v825_v26, %v824_v24  ;;  %v400_v29 = vadd.f32 %v823_v23, %v1142_v52 }
 0x10b   :  { %v497_v30 = vadd.f32 %v496_v50, %v400_v29  ;;  %902 = vmatmul.mubr.msk.bf16.vlgmr.msra.gmra.mrb[16].mxu1 %vm324_vm0, %v560_v27  ;;  %v403_v31 = vadd.f32 %v826_v28, %v1142_v52 }
 0x10d   :  { %v500_v32 = vadd.f32 %v499_v56, %v403_v31  ;;  %v827_v33 = vpop.f32.mrb[12].mxu0  ;;  %v547_v35 = vmax.f32 %v497_v30, 0.0 }
 0x10e   :  { %v828_v34 = vpop.f32.mrb[13].mxu0 }
 0x10f   :  { %v548_v36 = vmax.f32 %v500_v32, 0.0  ;;  %v829_v37 = vadd.f32 %v828_v34, %v827_v33  ;;  %v830_v38 = vpop.f32.mrb[14].mxu0 }
 0x110   :  { %v831_v39 = vpop.f32.mrb[15].mxu0 }
 0x111   :  { %v561_v40 = vpack.c.bf16 %v548_v36, %v547_v35  ;;  %v408_v41 = vadd.f32 %v829_v37, %v1142_v52  ;;  %v832_v42 = vadd.f32 %v831_v39, %v830_v38 }
 0x113   :  { %v505_v43 = vadd.f32 %v887_v48, %v408_v41  ;;  %v411_v44 = vadd.f32 %v832_v42, %v1142_v52  ;;  %905 = vmatprep.mubr.msk.bf16.mxu1 %vm324_vm0, %v561_v40  ;;  %v782_v40 = vld [vmem:[%s1241_s4] ss:$0 sm:$0xff] }
 0x115   :  { %v508_v45 = vadd.f32 %v888_v53, %v411_v44  ;;  %v833_v46 = vpop.f32.mrb[16].mxu0  ;;  %v549_v49 = vmax.f32 %v505_v43, 0.0 }
 0x116   :  { %v834_v47 = vpop.f32.mrb[17].mxu0 }
 0x117   :  { %v550_v50 = vmax.f32 %v508_v45, 0.0  ;;  %v835_v51 = vadd.f32 %v834_v47, %v833_v46  ;;  %v836_v54 = vpop.f32.mrb[18].mxu0 }
 0x118   :  { %v837_v55 = vpop.f32.mrb[19].mxu0 }
 0x119   :  { %v562_v56 = vpack.c.bf16 %v550_v50, %v549_v49  ;;  %v838_v57 = vadd.f32 %v837_v55, %v836_v54  ;;  %v416_v58 = vadd.f32 %v835_v51, %v1142_v52 }
 0x11b   :  { %v513_v59 = vadd.f32 %v512_v1, %v416_v58  ;;  %906 = vmatmul.mubr.msk.bf16.gmra.mrb[20].mxu1 %vm324_vm0, %v562_v56  ;;  %v419_v48 = vadd.f32 %v838_v57, %v1142_v52 }
 0x11d   :  { %v516_v60 = vadd.f32 %v515_v8, %v419_v48  ;;  %v839_v61 = vpop.f32.mrb[20].mxu0  ;;  %v551_v53 = vmax.f32 %v513_v59, 0.0 }
 0x11e   :  { %v840_v63 = vpop.f32.mrb[21].mxu0 }
 0x11f   :  { %v552_v0 = vmax.f32 %v516_v60, 0.0  ;;  %v841_v2 = vadd.f32 %v840_v63, %v839_v61  ;;  %v842_v4 = vpop.f32.mrb[22].mxu0 }
 0x120   :  { %v843_v5 = vpop.f32.mrb[23].mxu0 }
 0x121   :  { %v563_v6 = vpack.c.bf16 %v552_v0, %v551_v53  ;;  %v424_v7 = vadd.f32 %v841_v2, %v1142_v52  ;;  %v844_v9 = vadd.f32 %v843_v5, %v842_v4 }
 0x123   :  { %v521_v10 = vadd.f32 %v1146_v62, %v424_v7  ;;  %v427_v1 = vadd.f32 %v844_v9, %v1142_v52  ;;  %909 = vmatprep.mubr.msk.bf16.mxu1 %vm324_vm0, %v563_v6 }
 0x125   :  { %v524_v11 = vadd.f32 %v1148_v3, %v427_v1  ;;  %v845_v8 = vpop.f32.mrb[24].mxu0  ;;  %v553_v13 = vmax.f32 %v521_v10, 0.0 }
 0x126   :  { %v846_v12 = vpop.f32.mrb[25].mxu0 }
 0x127   :  { %v554_v14 = vmax.f32 %v524_v11, 0.0  ;;  %v847_v16 = vadd.f32 %v846_v12, %v845_v8  ;;  %v848_v17 = vpop.f32.mrb[26].mxu0 }
 0x128   :  { %v849_v19 = vpop.f32.mrb[27].mxu0 }
 0x129   :  { %v564_v21 = vpack.c.bf16 %v554_v14, %v553_v13  ;;  %v850_v22 = vadd.f32 %v849_v19, %v848_v17  ;;  %v432_v23 = vadd.f32 %v847_v16, %v1142_v52 }
 0x12b   :  { %v529_v24 = vadd.f32 %v1155_v18, %v432_v23  ;;  %910 = vmatmul.mubr.msk.bf16.gmra.mrb[24].mxu1 %vm324_vm0, %v564_v21  ;;  %v435_v62 = vadd.f32 %v850_v22, %v1142_v52 }
 0x12d   :  { %v532_v26 = vadd.f32 %v1159_v25, %v435_v62  ;;  %v851_v3 = vpop.f32.mrb[28].mxu0  ;;  %v555_v28 = vmax.f32 %v529_v24, 0.0 }
 0x12e   :  { %v852_v27 = vpop.f32.mrb[29].mxu0 }
 0x12f   :  { %v556_v29 = vmax.f32 %v532_v26, 0.0  ;;  %v853_v30 = vadd.f32 %v852_v27, %v851_v3  ;;  %v854_v31 = vpop.f32.mrb[30].mxu0 }
 0x130   :  { %v855_v32 = vpop.f32.mrb[31].mxu0 }
 0x131   :  { %v565_v33 = vpack.c.bf16 %v556_v29, %v555_v28  ;;  %v440_v34 = vadd.f32 %v853_v30, %v1142_v52  ;;  %v856_v35 = vadd.f32 %v855_v32, %v854_v31 }
 0x133   :  { %v537_v36 = vadd.f32 %v1153_v15, %v440_v34  ;;  %v443_v18 = vadd.f32 %v856_v35, %v1142_v52  ;;  %913 = vmatprep.mubr.msk.bf16.mxu1 %vm324_vm0, %v565_v33 }
 0x135   :  { %v540_v37 = vadd.f32 %v1157_v20, %v443_v18  ;;  %v557_v25 = vmax.f32 %v537_v36, 0.0 }
 0x137   :  { %v558_v38 = vmax.f32 %v540_v37, 0.0 }
 0x139   :  { %v566_v39 = vpack.c.bf16 %v558_v38, %v557_v25 }
 0x13b   :  { %914 = vmatmul.mubr.msk.bf16.gmra.mrb[28].mxu1 %vm324_vm0, %v566_v39 }
 0x1de   :  { %v903_v41 = vpop.f32.mrb[16].mxu1 }
 0x1df   :  { %v657_v42 = vadd.f32 %v903_v41, %v782_v40  ;;  %v648_v43 = vpop.f32.mrb[17].mxu1 }
 0x1e0   :  { %v649_v44 = vadd.f32 %v782_v40, %v648_v43  ;;  %v904_v15 = vpop.f32.mrb[18].mxu1 }
 0x1e1   :  { %713 = vst [vmem:[%s1242_s5 + $0x10] sm:$0xff] %v657_v42  ;;  %v660_v52 = vadd.f32 %v904_v15, %v782_v40  ;;  %v651_v20 = vpop.f32.mrb[19].mxu1 }
 0x1e2   :  { %711 = vst [vmem:[%s1242_s5] sm:$0xff] %v649_v44  ;;  %v652_v45 = vadd.f32 %v782_v40, %v651_v20 }
 0x1e3   :  { %714 = vst [vmem:[%s1242_s5 + $0x18] sm:$0xff] %v660_v52 }
 0x1e4   :  { %712 = vst [vmem:[%s1242_s5 + $0x8] sm:$0xff] %v652_v45 }
 0x1ee   :  { %v907_v46 = vpop.f32.mrb[20].mxu1 }
 0x1ef   :  { %v673_v47 = vadd.f32 %v907_v46, %v782_v40  ;;  %v664_v49 = vpop.f32.mrb[21].mxu1 }
 0x1f0   :  { %v665_v50 = vadd.f32 %v782_v40, %v664_v49  ;;  %v908_v51 = vpop.f32.mrb[22].mxu1 }
 0x1f1   :  { %717 = vst [vmem:[%s1242_s5 + $0x30] sm:$0xff] %v673_v47  ;;  %v676_v54 = vadd.f32 %v908_v51, %v782_v40  ;;  %v667_v55 = vpop.f32.mrb[23].mxu1 }
 0x1f2   :  { %715 = vst [vmem:[%s1242_s5 + $0x20] sm:$0xff] %v665_v50  ;;  %v668_v56 = vadd.f32 %v782_v40, %v667_v55 }
 0x1f3   :  { %718 = vst [vmem:[%s1242_s5 + $0x38] sm:$0xff] %v676_v54 }
 0x1f4   :  { %716 = vst [vmem:[%s1242_s5 + $0x28] sm:$0xff] %v668_v56 }
 0x1fe   :  { %v911_v57 = vpop.f32.mrb[24].mxu1 }
 0x1ff   :  { %v689_v58 = vadd.f32 %v911_v57, %v782_v40  ;;  %v680_v59 = vpop.f32.mrb[25].mxu1 }
 0x200   :  { %v681_v48 = vadd.f32 %v782_v40, %v680_v59  ;;  %v912_v60 = vpop.f32.mrb[26].mxu1 }
 0x201   :  { %721 = vst [vmem:[%s1242_s5 + $0x50] sm:$0xff] %v689_v58  ;;  %v692_v61 = vadd.f32 %v912_v60, %v782_v40  ;;  %v683_v63 = vpop.f32.mrb[27].mxu1 }
 0x202   :  { %719 = vst [vmem:[%s1242_s5 + $0x40] sm:$0xff] %v681_v48  ;;  %v684_v53 = vadd.f32 %v782_v40, %v683_v63 }
 0x203   :  { %722 = vst [vmem:[%s1242_s5 + $0x58] sm:$0xff] %v692_v61 }
 0x204   :  { %720 = vst [vmem:[%s1242_s5 + $0x48] sm:$0xff] %v684_v53 }
 0x20e   :  { %v915_v0 = vpop.f32.mrb[28].mxu1 }
 0x20f   :  { %v705_v2 = vadd.f32 %v915_v0, %v782_v40  ;;  %v696_v4 = vpop.f32.mrb[29].mxu1 }
 0x210   :  { %v697_v5 = vadd.f32 %v782_v40, %v696_v4  ;;  %v916_v6 = vpop.f32.mrb[30].mxu1 }
 0x211   :  { %725 = vst [vmem:[%s1242_s5 + $0x70] sm:$0xff] %v705_v2  ;;  %v708_v7 = vadd.f32 %v916_v6, %v782_v40  ;;  %v699_v9 = vpop.f32.mrb[31].mxu1 }
 0x212   :  { %723 = vst [vmem:[%s1242_s5 + $0x60] sm:$0xff] %v697_v5  ;;  %v700_v10 = vadd.f32 %v782_v40, %v699_v9 }
 0x213   :  { %726 = vst [vmem:[%s1242_s5 + $0x78] sm:$0xff] %v708_v7 }
 0x214   :  { %724 = vst [vmem:[%s1242_s5 + $0x68] sm:$0xff] %v700_v10 }

// kernel: faster_rcnn_eval_forward.18
= control target key start
LH: loop header
LB: loop body
LE: loop exit
PB: predicated region body
PF: predicated region fallthrough
CT: control target
= control target key end

     0   :  { %vm210_vm0 = vcmask 261120   ;;  %s649_s1 = inlined_call_operand.vmem [shape: bf16[288,32], index: 1, kind: input, shape index: {}]   ;;  %s650_s0 = inlined_call_operand.vmem [shape: bf16[32,288], index: 0, kind: input, shape index: {}]   ;;  %s651_s3 = inlined_call_operand.vmem [shape: bf16[32,128], index: 3, kind: input, shape index: {}]   ;;  %s652_s2 = inlined_call_operand.vmem [shape: f32[1,32], index: 2, kind: input, shape index: {}]   ;;  %s653_s4 = inlined_call_operand.vmem [shape: f32[1,128], index: 4, kind: input, shape index: {}]   ;;  %s654_s5 = inlined_call_operand.vmem [shape: f32[32,128], index: 5, kind: output, shape index: {}]  }
   0x1   :  { %v491_v0 = vld [vmem:[%s649_s1 + $0x40] sm:$0xff]   ;;  %v493_v2 = vld [vmem:[%s649_s1 + $0x48] sm:$0xff]   ;;  %v495_v4 = vld [vmem:[%s649_s1 + $0x50] sm:$0xff]  }
   0x2   :  { %v492_v1 = vld [vmem:[%s649_s1] sm:$0xff]   ;;  %439 = vmatprep.subr.bf16.mxu0 %v491_v0  ;;  %v494_v3 = vld [vmem:[%s649_s1 + $0x8] sm:$0xff]   ;;  %v496_v5 = vld [vmem:[%s649_s1 + $0x10] sm:$0xff]  }
   0x3   :  { %440 = vmatpush3.bf16.msra.mxu0 %v492_v1  ;;  %v497_v6 = vld [vmem:[%s649_s1 + $0x58] sm:$0xff]   ;;  %v499_v8 = vld [vmem:[%s649_s1 + $0x60] sm:$0xff]   ;;  %v501_v11 = vld [vmem:[%s649_s1 + $0x68] sm:$0xff]  }
   0x4   :  { %441 = vmatprep.subr.bf16.mxu0 %v493_v2  ;;  %v498_v7 = vld [vmem:[%s649_s1 + $0x18] sm:$0xff]   ;;  %v500_v9 = vld [vmem:[%s649_s1 + $0x20] sm:$0xff]   ;;  %v502_v12 = vld [vmem:[%s649_s1 + $0x28] sm:$0xff]  }
   0x5   :  { %v506_v10 = vld [vmem:[%s649_s1 + $0x80] sm:$0xff]   ;;  %v503_v13 = vld [vmem:[%s649_s1 + $0x70] sm:$0xff]   ;;  %v511_v15 = vld [vmem:[%s649_s1 + $0x88] sm:$0xff]  }
   0x6   :  { %475 = vmatprep.subr.bf16.mxu1 %v506_v10  ;;  %v510_v14 = vld [vmem:[%s650_s0 + $0x4] ss:$12 sps:$4 sm:$0xff]   ;;  %v512_v16 = vld [vmem:[%s650_s0 + $0x8] ss:$12 sps:$4 sm:$0xff]   ;;  %v513_v17 = vld [vmem:[%s650_s0 + $0x20] ss:$12 sps:$4 sm:$0xff]  }
   0x7   :  { %442 = vmatpush3.bf16.msra.mxu0 %v494_v3  ;;  %476 = vmatpush3.bf16.msra.mxu1 %v506_v10  ;;  %v504_v18 = vld [vmem:[%s649_s1 + $0x30] sm:$0xff]   ;;  %v505_v19 = vld [vmem:[%s649_s1 + $0x78] sm:$0xff]   ;;  %v508_v21 = vld [vmem:[%s650_s0] ss:$12 sps:$4 sm:$0xff]  }
   0x8   :  { %443 = vmatprep.subr.bf16.mxu0 %v495_v4  ;;  %249 = vmatprep.mubr.bf16.mxu0 %v510_v14  ;;  %v507_v20 = vld [vmem:[%s649_s1 + $0x38] sm:$0xff]   ;;  %v517_v24 = vld [vmem:[%s651_s3] sm:$0xff]   ;;  %v518_v25 = vld [vmem:[%s651_s3 + $0x8] sm:$0xff]  }
   0x9   :  { %477 = vmatprep.subr.bf16.mxu1 %v511_v15  ;;  %479 = vmatprep.mubr.msk.bf16.mxu1 %vm210_vm0, %v512_v16  ;;  %v514_v22 = vld [vmem:[%s650_s0 + $0x1c] ss:$12 sps:$4 sm:$0xff]   ;;  %v516_v23 = vld [vmem:[%s650_s0 + $0x18] ss:$12 sps:$4 sm:$0xff]   ;;  %v407_v32 = vld [vmem:[%s652_s2] ss:$0 sm:$0xff] }
   0xa   :  { %v434_v57 = vld [vmem:[%s653_s4] ss:$0 sm:$0xff] }
   0xb   :  { %444 = vmatpush3.bf16.msra.mxu0 %v496_v5  ;;  %478 = vmatpush3.bf16.msra.mxu1 %v511_v15 }
   0xc   :  { %445 = vmatprep.subr.bf16.mxu0 %v497_v6  ;;  %483 = vmatprep.subr.bf16.mxu1 %v517_v24 }
   0xe   :  { %480 = vmatmul.mubr.msk.bf16.vlgmr.msra.gmra.mrb[0].mxu1 %vm210_vm0, %v513_v17 }
   0xf   :  { %446 = vmatpush3.bf16.msra.mxu0 %v498_v7  ;;  %484 = vmatpush3.bf16.msra.mxu1 %v517_v24 }
  0x10   :  { %447 = vmatprep.subr.bf16.mxu0 %v499_v8  ;;  %485 = vmatprep.subr.bf16.mxu1 %v518_v25 }
  0x13   :  { %448 = vmatpush3.bf16.msra.mxu0 %v500_v9  ;;  %486 = vmatpush3.bf16.msra.mxu1 %v518_v25 }
  0x14   :  { %449 = vmatprep.subr.bf16.mxu0 %v501_v11 }
  0x17   :  { %450 = vmatpush3.bf16.msra.mxu0 %v502_v12 }
  0x18   :  { %451 = vmatprep.subr.bf16.mxu0 %v503_v13 }
  0x1b   :  { %452 = vmatpush3.bf16.msra.mxu0 %v504_v18 }
  0x1c   :  { %453 = vmatprep.subr.bf16.mxu0 %v505_v19 }
  0x1f   :  { %454 = vmatpush3.bf16.msra.mxu0 %v507_v20 }
  0x22   :  { %250 = vmatmul.mubr.bf16.vlgmr.msra.gmra.mrb[0].mxu0 %v508_v21 }
  0x23   :  { %257 = vmatprep.mubr.bf16.mxu0 %v514_v22 }
  0x2a   :  { %258 = vmatmul.mubr.bf16.gmra.mrb[4].mxu0 %v516_v23 }
  0xe1   :  { %v481_v26 = vpop.f32.mrb[0].mxu1 }
  0xe2   :  { %v300_v27 = vpop.f32.mrb[1].mxu1 }
  0xe3   :  { %v482_v28 = vpop.f32.mrb[2].mxu1 }
  0xe4   :  { %v303_v29 = vpop.f32.mrb[3].mxu1 }
  0xf5   :  { %v455_v30 = vpop.f32.mrb[0].mxu0 }
  0xf6   :  { %v456_v31 = vpop.f32.mrb[1].mxu0 }
  0xf7   :  { %v457_v33 = vadd.f32 %v456_v31, %v455_v30  ;;  %v458_v34 = vpop.f32.mrb[2].mxu0 }
  0xf8   :  { %v459_v35 = vpop.f32.mrb[3].mxu0 }
  0xf9   :  { %v460_v36 = vadd.f32 %v459_v35, %v458_v34  ;;  %v252_v37 = vadd.f32 %v457_v33, %v407_v32 }
  0xfb   :  { %v301_v38 = vadd.f32 %v300_v27, %v252_v37  ;;  %v255_v39 = vadd.f32 %v460_v36, %v407_v32 }
  0xfd   :  { %v304_v40 = vadd.f32 %v303_v29, %v255_v39  ;;  %v461_v41 = vpop.f32.mrb[4].mxu0  ;;  %v315_v43 = vmax.f32 %v301_v38, 0.0 }
  0xfe   :  { %v462_v42 = vpop.f32.mrb[5].mxu0 }
  0xff   :  { %v316_v44 = vmax.f32 %v304_v40, 0.0  ;;  %v463_v45 = vadd.f32 %v462_v42, %v461_v41  ;;  %v464_v46 = vpop.f32.mrb[6].mxu0 }
 0x100   :  { %v465_v47 = vpop.f32.mrb[7].mxu0 }
 0x101   :  { %v319_v48 = vpack.c.bf16 %v316_v44, %v315_v43  ;;  %v260_v49 = vadd.f32 %v463_v45, %v407_v32  ;;  %v466_v50 = vadd.f32 %v465_v47, %v464_v46 }
 0x103   :  { %v309_v51 = vadd.f32 %v481_v26, %v260_v49  ;;  %v263_v52 = vadd.f32 %v466_v50, %v407_v32  ;;  %487 = vmatprep.mubr.msk.bf16.mxu1 %vm210_vm0, %v319_v48 }
 0x105   :  { %v312_v53 = vadd.f32 %v482_v28, %v263_v52  ;;  %v317_v54 = vmax.f32 %v309_v51, 0.0 }
 0x107   :  { %v318_v55 = vmax.f32 %v312_v53, 0.0 }
 0x109   :  { %v320_v56 = vpack.c.bf16 %v318_v55, %v317_v54 }
 0x10b   :  { %488 = vmatmul.mubr.msk.bf16.vlgmr.msra.gmra.mrb[4].mxu1 %vm210_vm0, %v320_v56 }
 0x1de   :  { %v489_v58 = vpop.f32.mrb[4].mxu1 }
 0x1df   :  { %v393_v59 = vadd.f32 %v489_v58, %v434_v57  ;;  %v384_v60 = vpop.f32.mrb[5].mxu1 }
 0x1e0   :  { %v385_v61 = vadd.f32 %v434_v57, %v384_v60  ;;  %v490_v62 = vpop.f32.mrb[6].mxu1 }
 0x1e1   :  { %401 = vst [vmem:[%s654_s5 + $0x10] sm:$0xff] %v393_v59  ;;  %v396_v63 = vadd.f32 %v490_v62, %v434_v57  ;;  %v387_v0 = vpop.f32.mrb[7].mxu1 }
 0x1e2   :  { %399 = vst [vmem:[%s654_s5] sm:$0xff] %v385_v61  ;;  %v388_v1 = vadd.f32 %v434_v57, %v387_v0 }
 0x1e3   :  { %402 = vst [vmem:[%s654_s5 + $0x18] sm:$0xff] %v396_v63 }
 0x1e4   :  { %400 = vst [vmem:[%s654_s5 + $0x8] sm:$0xff] %v388_v1 }

// kernel: faster_rcnn_eval_forward.16
= control target key start
LH: loop header
LB: loop body
LE: loop exit
PB: predicated region body
PF: predicated region fallthrough
CT: control target
= control target key end

     0   :  { %vm204_vm0 = vcmask 261120   ;;  %vm325_vm1 = vcmask 257024   ;;  %s546_s1 = inlined_call_operand.vmem [shape: bf16[288,32], index: 1, kind: input, shape index: {}]   ;;  %s547_s0 = inlined_call_operand.vmem [shape: bf16[32,288], index: 0, kind: input, shape index: {}]   ;;  %s548_s2 = inlined_call_operand.vmem [shape: f32[1,32], index: 2, kind: input, shape index: {}]   ;;  %s549_s3 = inlined_call_operand.vmem [shape: bf16[32,32], index: 3, kind: output, shape index: {}]  }
   0x1   :  { %v409_v0 = vld [vmem:[%s546_s1 + $0x40] sm:$0xff]   ;;  %v411_v2 = vld [vmem:[%s546_s1 + $0x48] sm:$0xff]   ;;  %v413_v4 = vld [vmem:[%s546_s1 + $0x50] sm:$0xff]  }
   0x2   :  { %v410_v1 = vld [vmem:[%s546_s1] sm:$0xff]   ;;  %369 = vmatprep.subr.bf16.mxu0 %v409_v0  ;;  %v412_v3 = vld [vmem:[%s546_s1 + $0x8] sm:$0xff]   ;;  %v414_v5 = vld [vmem:[%s546_s1 + $0x10] sm:$0xff]  }
   0x3   :  { %370 = vmatpush3.bf16.msra.mxu0 %v410_v1  ;;  %v415_v6 = vld [vmem:[%s546_s1 + $0x58] sm:$0xff]   ;;  %v417_v8 = vld [vmem:[%s546_s1 + $0x60] sm:$0xff]   ;;  %v419_v11 = vld [vmem:[%s546_s1 + $0x68] sm:$0xff]  }
   0x4   :  { %371 = vmatprep.subr.bf16.mxu0 %v411_v2  ;;  %v416_v7 = vld [vmem:[%s546_s1 + $0x18] sm:$0xff]   ;;  %v418_v9 = vld [vmem:[%s546_s1 + $0x20] sm:$0xff]   ;;  %v420_v12 = vld [vmem:[%s546_s1 + $0x28] sm:$0xff]  }
   0x5   :  { %v424_v10 = vld [vmem:[%s546_s1 + $0x80] sm:$0xff]   ;;  %v421_v13 = vld [vmem:[%s546_s1 + $0x70] sm:$0xff]   ;;  %v429_v15 = vld [vmem:[%s546_s1 + $0x88] sm:$0xff]  }
   0x6   :  { %401 = vmatprep.subr.bf16.mxu1 %v424_v10  ;;  %v428_v14 = vld [vmem:[%s547_s0 + $0x4] ss:$12 sps:$4 sm:$0xff]   ;;  %v430_v16 = vld [vmem:[%s547_s0 + $0x8] ss:$12 sps:$4 sm:$0xff]   ;;  %v431_v17 = vld [vmem:[%s547_s0 + $0x20] ss:$12 sps:$4 sm:$0xff]  }
   0x7   :  { %372 = vmatpush3.bf16.msra.mxu0 %v412_v3  ;;  %402 = vmatpush3.bf16.msra.mxu1 %v424_v10  ;;  %v422_v18 = vld [vmem:[%s546_s1 + $0x30] sm:$0xff]   ;;  %v423_v19 = vld [vmem:[%s546_s1 + $0x78] sm:$0xff]   ;;  %v426_v21 = vld [vmem:[%s547_s0] ss:$12 sps:$4 sm:$0xff]  }
   0x8   :  { %373 = vmatprep.subr.bf16.mxu0 %v413_v4  ;;  %243 = vmatprep.mubr.bf16.mxu0 %v428_v14  ;;  %v425_v20 = vld [vmem:[%s546_s1 + $0x38] sm:$0xff]   ;;  %v334_v30 = vld [vmem:[%s548_s2] ss:$0 sm:$0xff] }
   0x9   :  { %403 = vmatprep.subr.bf16.mxu1 %v429_v15  ;;  %405 = vmatprep.mubr.msk.bf16.mxu1 %vm204_vm0, %v430_v16  ;;  %v432_v22 = vld [vmem:[%s547_s0 + $0x1c] ss:$12 sps:$4 sm:$0xff]   ;;  %v434_v23 = vld [vmem:[%s547_s0 + $0x18] ss:$12 sps:$4 sm:$0xff]  }
   0xb   :  { %374 = vmatpush3.bf16.msra.mxu0 %v414_v5  ;;  %404 = vmatpush3.bf16.msra.mxu1 %v429_v15 }
   0xc   :  { %375 = vmatprep.subr.bf16.mxu0 %v415_v6 }
   0xe   :  { %406 = vmatmul.mubr.msk.bf16.vlgmr.msra.gmra.mrb[0].mxu1 %vm204_vm0, %v431_v17 }
   0xf   :  { %376 = vmatpush3.bf16.msra.mxu0 %v416_v7 }
  0x10   :  { %377 = vmatprep.subr.bf16.mxu0 %v417_v8 }
  0x13   :  { %378 = vmatpush3.bf16.msra.mxu0 %v418_v9 }
  0x14   :  { %379 = vmatprep.subr.bf16.mxu0 %v419_v11 }
  0x17   :  { %380 = vmatpush3.bf16.msra.mxu0 %v420_v12 }
  0x18   :  { %381 = vmatprep.subr.bf16.mxu0 %v421_v13 }
  0x1b   :  { %382 = vmatpush3.bf16.msra.mxu0 %v422_v18 }
  0x1c   :  { %383 = vmatprep.subr.bf16.mxu0 %v423_v19 }
  0x1f   :  { %384 = vmatpush3.bf16.msra.mxu0 %v425_v20 }
  0x22   :  { %244 = vmatmul.mubr.bf16.vlgmr.msra.gmra.mrb[0].mxu0 %v426_v21 }
  0x23   :  { %251 = vmatprep.mubr.bf16.mxu0 %v432_v22 }
  0x2a   :  { %252 = vmatmul.mubr.bf16.gmra.mrb[4].mxu0 %v434_v23 }
  0xe1   :  { %v407_v24 = vpop.f32.mrb[0].mxu1 }
  0xe2   :  { %v294_v25 = vpop.f32.mrb[1].mxu1 }
  0xe3   :  { %v408_v26 = vpop.f32.mrb[2].mxu1 }
  0xe4   :  { %v297_v27 = vpop.f32.mrb[3].mxu1 }
  0xf5   :  { %v385_v28 = vpop.f32.mrb[0].mxu0 }
  0xf6   :  { %v386_v29 = vpop.f32.mrb[1].mxu0 }
  0xf7   :  { %v387_v31 = vadd.f32 %v386_v29, %v385_v28  ;;  %v388_v32 = vpop.f32.mrb[2].mxu0 }
  0xf8   :  { %v389_v33 = vpop.f32.mrb[3].mxu0 }
  0xf9   :  { %v390_v34 = vadd.f32 %v389_v33, %v388_v32  ;;  %v246_v35 = vadd.f32 %v387_v31, %v334_v30 }
  0xfb   :  { %v295_v36 = vadd.f32 %v294_v25, %v246_v35  ;;  %v249_v37 = vadd.f32 %v390_v34, %v334_v30 }
  0xfd   :  { %v365_v38 = vpack.c.bf16 %v295_v36, %v295_v36  ;;  %v298_v39 = vadd.f32 %v297_v27, %v249_v37  ;;  %v391_v40 = vpop.f32.mrb[4].mxu0 }
  0xfe   :  { %v392_v41 = vpop.f32.mrb[5].mxu0 }
  0xff   :  { %326 = vst.msk [vmem:[%s549_s3] sm:$0xf] %vm325_vm1, %v365_v38  ;;  %v366_v42 = vpack.c.bf16 %v298_v39, %v298_v39  ;;  %v393_v43 = vadd.f32 %v392_v41, %v391_v40  ;;  %v394_v44 = vpop.f32.mrb[6].mxu0 }
 0x100   :  { %v395_v45 = vpop.f32.mrb[7].mxu0 }
 0x101   :  { %327 = vst.msk [vmem:[%s549_s3 + $0x4] sm:$0xf] %vm325_vm1, %v366_v42  ;;  %v254_v46 = vadd.f32 %v393_v43, %v334_v30  ;;  %v396_v47 = vadd.f32 %v395_v45, %v394_v44 }
 0x103   :  { %v303_v48 = vadd.f32 %v407_v24, %v254_v46  ;;  %v257_v49 = vadd.f32 %v396_v47, %v334_v30 }
 0x105   :  { %v367_v50 = vpack.c.bf16 %v303_v48, %v303_v48  ;;  %v306_v51 = vadd.f32 %v408_v26, %v257_v49 }
 0x107   :  { %328 = vst.msk [vmem:[%s549_s3 + $0x8] sm:$0xf] %vm325_vm1, %v367_v50  ;;  %v368_v52 = vpack.c.bf16 %v306_v51, %v306_v51 }
 0x109   :  { %329 = vst.msk [vmem:[%s549_s3 + $0xc] sm:$0xf] %vm325_vm1, %v368_v52 }

// kernel: squeeze.43
= control target key start
LH: loop header
LB: loop body
LE: loop exit
PB: predicated region body
PF: predicated region fallthrough
CT: control target
= control target key end

     0   :  { %vm7_vm0 = vcmask 261120   ;;  %s39_s0 = inlined_call_operand.vmem [shape: f32[64], index: 0, kind: input, shape index: {}]   ;;  %s40_s1 = inlined_call_operand.vmem [shape: f32[2,32], index: 1, kind: output, shape index: {}]  }
   0x1   :  { %v4_v0 = vld [vmem:[%s39_s0] sm:$0x1]  ;;  %s22_s0 = smov 96  }
   0x2   :  { %5 = vst [vmem:[#allocation1] sm:$0x1] %v4_v0 }
   0x9   :  { %v9_v1 = vld [vmem:[#allocation1] sm:$0x1]  }
   0xa   :  { %v6_v2 = vld [vmem:[#allocation1] sm:$0x1]   ;;  %10 = vrot.lane.b32.xlu0 %v9_v1, %s22_s0 }
   0xb   :  { %8 = vst.msk [vmem:[#allocation0] sm:$0x1] %vm7_vm0, %v6_v2  }
  0x7c   :  { %v11_v3 = vpop.permute.xlu0 %10  }
  0x7d   :  { %14 = vst.msk [vmem:[#allocation0 + $0x1] sm:$0x1] %vm7_vm0, %v11_v3  }
  0x84   :  { %v18_v4 = vld [vmem:[#allocation0] sm:$0x3] }
  0x85   :  { %20 = vst [vmem:[%s40_s1] sm:$0x3] %v18_v4 }

// kernel: faster_rcnn_eval_forward.19
= control target key start
LH: loop header
LB: loop body
LE: loop exit
PB: predicated region body
PF: predicated region fallthrough
CT: control target
= control target key end

     0   :  { %vm1134_vm0 = vcmask 261120   ;;  %vm1653_vm1 = vcmask 523264   ;;  %s3123_s1 = inlined_call_operand.vmem [shape: bf16[1568,64], index: 1, kind: input, shape index: {}]   ;;  %s3124_s0 = inlined_call_operand.vmem [shape: bf16[64,1568], index: 0, kind: input, shape index: {}]   ;;  %s3125_s3 = inlined_call_operand.vmem [shape: bf16[64,64], index: 3, kind: input, shape index: {}]   ;;  %s3126_s2 = inlined_call_operand.vmem [shape: f32[1,64], index: 2, kind: input, shape index: {}]   ;;  %s3127_s5 = inlined_call_operand.vmem [shape: bf16[64,128], index: 5, kind: input, shape index: {}]   ;;  %s3128_s4 = inlined_call_operand.vmem [shape: f32[1,64], index: 4, kind: input, shape index: {}]   ;;  %s3129_s6 = inlined_call_operand.vmem [shape: f32[1,128], index: 6, kind: input, shape index: {}]   ;;  %s3130_s7 = inlined_call_operand.vmem [shape: f32[64,128], index: 7, kind: output, shape index: {}]  }
   0x1   :  { %v2358_v0 = vld [vmem:[%s3123_s1 + $0x40] sm:$0xff]   ;;  %v2362_v4 = vld [vmem:[%s3123_s1 + $0x48] sm:$0xff]   ;;  %v2366_v8 = vld [vmem:[%s3123_s1 + $0x50] sm:$0xff]  }
   0x2   :  { %v2359_v1 = vld [vmem:[%s3123_s1] sm:$0xff]   ;;  %2044 = vmatprep.subr.bf16.mxu0 %v2358_v0  ;;  %v2363_v5 = vld [vmem:[%s3123_s1 + $0x8] sm:$0xff]   ;;  %v2367_v9 = vld [vmem:[%s3123_s1 + $0x10] sm:$0xff]  }
   0x3   :  { %v2360_v2 = vld [vmem:[%s3123_s1 + $0xc0] sm:$0xff]   ;;  %2045 = vmatpush3.bf16.msra.mxu0 %v2359_v1  ;;  %v2364_v6 = vld [vmem:[%s3123_s1 + $0xc8] sm:$0xff]   ;;  %v2368_v10 = vld [vmem:[%s3123_s1 + $0xd0] sm:$0xff]  }
   0x4   :  { %v2361_v3 = vld [vmem:[%s3123_s1 + $0x80] sm:$0xff]   ;;  %2084 = vmatprep.subr.bf16.mxu1 %v2360_v2  ;;  %2046 = vmatprep.subr.bf16.mxu0 %v2362_v4  ;;  %v2365_v7 = vld [vmem:[%s3123_s1 + $0x88] sm:$0xff]   ;;  %v2369_v11 = vld [vmem:[%s3123_s1 + $0x90] sm:$0xff]  }
   0x5   :  { %2085 = vmatpush3.bf16.msra.mxu1 %v2361_v3  ;;  %v2370_v12 = vld [vmem:[%s3123_s1 + $0x58] sm:$0xff]   ;;  %v2374_v16 = vld [vmem:[%s3123_s1 + $0x60] sm:$0xff]   ;;  %v2378_v20 = vld [vmem:[%s3123_s1 + $0x68] sm:$0xff]  }
   0x6   :  { %2086 = vmatprep.subr.bf16.mxu1 %v2364_v6  ;;  %v2371_v13 = vld [vmem:[%s3123_s1 + $0x18] sm:$0xff]   ;;  %v2375_v17 = vld [vmem:[%s3123_s1 + $0x20] sm:$0xff]   ;;  %v2379_v21 = vld [vmem:[%s3123_s1 + $0x28] sm:$0xff]  }
   0x7   :  { %2047 = vmatpush3.bf16.msra.mxu0 %v2363_v5  ;;  %v2372_v14 = vld [vmem:[%s3123_s1 + $0xd8] sm:$0xff]   ;;  %v2376_v18 = vld [vmem:[%s3123_s1 + $0xe0] sm:$0xff]   ;;  %v2380_v22 = vld [vmem:[%s3123_s1 + $0xe8] sm:$0xff]  }
   0x8   :  { %2048 = vmatprep.subr.bf16.mxu0 %v2366_v8  ;;  %v2373_v15 = vld [vmem:[%s3123_s1 + $0x98] sm:$0xff]   ;;  %v2377_v19 = vld [vmem:[%s3123_s1 + $0xa0] sm:$0xff]   ;;  %v2381_v23 = vld [vmem:[%s3123_s1 + $0xa8] sm:$0xff]  }
   0x9   :  { %2087 = vmatpush3.bf16.msra.mxu1 %v2365_v7  ;;  %v2382_v24 = vld [vmem:[%s3123_s1 + $0x70] sm:$0xff]   ;;  %v2386_v28 = vld [vmem:[%s3123_s1 + $0x78] sm:$0xff]   ;;  %v2393_v34 = vld [vmem:[%s3123_s1 + $0x140] sm:$0xff]  }
   0xa   :  { %2088 = vmatprep.subr.bf16.mxu1 %v2368_v10  ;;  %v2383_v25 = vld [vmem:[%s3123_s1 + $0x30] sm:$0xff]   ;;  %v2387_v29 = vld [vmem:[%s3123_s1 + $0x38] sm:$0xff]   ;;  %v2396_v36 = vld [vmem:[%s3124_s0 + $0xc] ss:$52 sps:$4 sm:$0xff]  }
   0xb   :  { %2049 = vmatpush3.bf16.msra.mxu0 %v2367_v9  ;;  %v2384_v26 = vld [vmem:[%s3123_s1 + $0xf0] sm:$0xff]   ;;  %v2388_v30 = vld [vmem:[%s3123_s1 + $0xf8] sm:$0xff]   ;;  %v2397_v37 = vld [vmem:[%s3123_s1 + $0x100] sm:$0xff]   ;;  %1244 = vmatprep.mubr.bf16.mxu1 %v2396_v36 }
   0xc   :  { %2050 = vmatprep.subr.bf16.mxu0 %v2370_v12  ;;  %v2385_v27 = vld [vmem:[%s3123_s1 + $0xb0] sm:$0xff]   ;;  %v2391_v32 = vld [vmem:[%s3124_s0 + $0x4] ss:$52 sps:$4 sm:$0xff]   ;;  %v2394_v35 = vld [vmem:[%s3124_s0 + $0x8] ss:$52 sps:$4 sm:$0xff]  }
   0xd   :  { %2089 = vmatpush3.bf16.msra.mxu1 %v2369_v11  ;;  %v2389_v31 = vld [vmem:[%s3124_s0] ss:$52 sps:$4 sm:$0xff]   ;;  %v2392_v33 = vld [vmem:[%s3123_s1 + $0xb8] sm:$0xff]   ;;  %1179 = vmatprep.mubr.bf16.mxu0 %v2391_v32  ;;  %v2400_v40 = vld [vmem:[%s3123_s1 + $0x148] sm:$0xff]  }
   0xe   :  { %2090 = vmatprep.subr.bf16.mxu1 %v2372_v14  ;;  %v2398_v38 = vld [vmem:[%s3123_s1 + $0x1c0] sm:$0xff]   ;;  %v2401_v41 = vld [vmem:[%s3123_s1 + $0x108] sm:$0xff]   ;;  %v2407_v46 = vld [vmem:[%s3123_s1 + $0x150] sm:$0xff]  }
   0xf   :  { %2051 = vmatpush3.bf16.msra.mxu0 %v2371_v13  ;;  %v2399_v39 = vld [vmem:[%s3123_s1 + $0x180] sm:$0xff]   ;;  %v2402_v42 = vld [vmem:[%s3123_s1 + $0x1c8] sm:$0xff]   ;;  %v2410_v48 = vld [vmem:[%s3123_s1 + $0x110] sm:$0xff]  }
  0x10   :  { %2052 = vmatprep.subr.bf16.mxu0 %v2374_v16  ;;  %v2403_v43 = vld [vmem:[%s3124_s0 + $0x6c] ss:$52 sps:$4 sm:$0xff]   ;;  %v2406_v45 = vld [vmem:[%s3124_s0 + $0x68] ss:$52 sps:$4 sm:$0xff]   ;;  %v2411_v49 = vld [vmem:[%s3124_s0 + $0x70] ss:$52 sps:$4 sm:$0xff]  }
  0x11   :  { %2091 = vmatpush3.bf16.msra.mxu1 %v2373_v15  ;;  %v2405_v44 = vld [vmem:[%s3123_s1 + $0x188] sm:$0xff]   ;;  %v2412_v50 = vld [vmem:[%s3123_s1 + $0x1d0] sm:$0xff]   ;;  %v2414_v52 = vld [vmem:[%s3123_s1 + $0x158] sm:$0xff]  }
  0x12   :  { %2092 = vmatprep.subr.bf16.mxu1 %v2376_v18  ;;  %v2408_v47 = vld [vmem:[%s3124_s0 + $0x74] ss:$52 sps:$4 sm:$0xff]   ;;  %v2415_v53 = vld [vmem:[%s3123_s1 + $0x118] sm:$0xff]   ;;  %v2420_v57 = vld [vmem:[%s3124_s0 + $0xd0] ss:$52 sps:$4 sm:$0xff]  }
  0x13   :  { %2053 = vmatpush3.bf16.msra.mxu0 %v2375_v17  ;;  %v2413_v51 = vld [vmem:[%s3123_s1 + $0x190] sm:$0xff]   ;;  %v2416_v54 = vld [vmem:[%s3123_s1 + $0x1d8] sm:$0xff]   ;;  %v2421_v58 = vld [vmem:[%s3123_s1 + $0x160] sm:$0xff]  }
  0x14   :  { %2054 = vmatprep.subr.bf16.mxu0 %v2378_v20  ;;  %v2417_v55 = vld [vmem:[%s3124_s0 + $0xd4] ss:$52 sps:$4 sm:$0xff]   ;;  %v2419_v56 = vld [vmem:[%s3123_s1 + $0x198] sm:$0xff]   ;;  %v2424_v60 = vld [vmem:[%s3123_s1 + $0x120] sm:$0xff]  }
  0x15   :  { %2093 = vmatpush3.bf16.msra.mxu1 %v2377_v19  ;;  %v2422_v59 = vld [vmem:[%s3124_s0 + $0xdc] ss:$52 sps:$4 sm:$0xff]   ;;  %v2425_v61 = vld [vmem:[%s3124_s0 + $0xd8] ss:$52 sps:$4 sm:$0xff]   ;;  %v2426_v62 = vld [vmem:[%s3123_s1 + $0x1e0] sm:$0xff]  }
  0x16   :  { %2094 = vmatprep.subr.bf16.mxu1 %v2380_v22  ;;  %v2427_v63 = vld [vmem:[%s3123_s1 + $0x1a0] sm:$0xff]   ;;  %v2428_v0 = vld [vmem:[%s3123_s1 + $0x168] sm:$0xff]   ;;  %v2431_v3 = vld [vmem:[%s3124_s0 + $0x13c] ss:$52 sps:$4 sm:$0xff]  }
  0x17   :  { %2055 = vmatpush3.bf16.msra.mxu0 %v2379_v21  ;;  %v2429_v1 = vld [vmem:[%s3123_s1 + $0x128] sm:$0xff]   ;;  %v2435_v6 = vld [vmem:[%s3123_s1 + $0x170] sm:$0xff]   ;;  %v2436_v7 = vld [vmem:[%s3124_s0 + $0x144] ss:$52 sps:$4 sm:$0xff]  }
  0x18   :  { %2056 = vmatprep.subr.bf16.mxu0 %v2382_v24  ;;  %v2430_v2 = vld [vmem:[%s3123_s1 + $0x1e8] sm:$0xff]   ;;  %v2438_v8 = vld [vmem:[%s3123_s1 + $0x130] sm:$0xff]   ;;  %v2442_v12 = vld [vmem:[%s3123_s1 + $0x178] sm:$0xff]  }
  0x19   :  { %2095 = vmatpush3.bf16.msra.mxu1 %v2381_v23  ;;  %v2433_v4 = vld [vmem:[%s3123_s1 + $0x1a8] sm:$0xff]   ;;  %v2439_v9 = vld [vmem:[%s3124_s0 + $0x140] ss:$52 sps:$4 sm:$0xff]   ;;  %v2443_v13 = vld [vmem:[%s3123_s1 + $0x138] sm:$0xff]  }
  0x1a   :  { %2096 = vmatprep.subr.bf16.mxu1 %v2384_v26  ;;  %v2434_v5 = vld [vmem:[%s3124_s0 + $0x138] ss:$52 sps:$4 sm:$0xff]   ;;  %v2440_v10 = vld [vmem:[%s3123_s1 + $0x1f0] sm:$0xff]   ;;  %v2449_v18 = vld [vmem:[%s3123_s1 + $0x240] sm:$0xff]  }
  0x1b   :  { %2057 = vmatpush3.bf16.msra.mxu0 %v2383_v25  ;;  %v2441_v11 = vld [vmem:[%s3123_s1 + $0x1b0] sm:$0xff]   ;;  %v2444_v14 = vld [vmem:[%s3123_s1 + $0x1f8] sm:$0xff]   ;;  %v2453_v21 = vld [vmem:[%s3123_s1 + $0x200] sm:$0xff]  }
  0x1c   :  { %2058 = vmatprep.subr.bf16.mxu0 %v2386_v28  ;;  %v2445_v15 = vld [vmem:[%s3124_s0 + $0x10] ss:$52 sps:$4 sm:$0xff]   ;;  %v2447_v16 = vld [vmem:[%s3124_s0 + $0x14] ss:$52 sps:$4 sm:$0xff]   ;;  %v2448_v17 = vld [vmem:[%s3123_s1 + $0x1b8] sm:$0xff]  }
  0x1d   :  { %2097 = vmatpush3.bf16.msra.mxu1 %v2385_v27  ;;  %v2450_v19 = vld [vmem:[%s3124_s0 + $0x18] ss:$52 sps:$4 sm:$0xff]   ;;  %v2452_v20 = vld [vmem:[%s3124_s0 + $0x1c] ss:$52 sps:$4 sm:$0xff]   ;;  %v2454_v22 = vld [vmem:[%s3123_s1 + $0x2c0] sm:$0xff]  }
  0x1e   :  { %2098 = vmatprep.subr.bf16.mxu1 %v2388_v30  ;;  %v2455_v23 = vld [vmem:[%s3123_s1 + $0x280] sm:$0xff]   ;;  %v2456_v24 = vld [vmem:[%s3123_s1 + $0x248] sm:$0xff]   ;;  %v2459_v27 = vld [vmem:[%s3124_s0 + $0x7c] ss:$52 sps:$4 sm:$0xff]  }
  0x1f   :  { %2059 = vmatpush3.bf16.msra.mxu0 %v2387_v29  ;;  %v2457_v25 = vld [vmem:[%s3123_s1 + $0x208] sm:$0xff]   ;;  %v2463_v30 = vld [vmem:[%s3123_s1 + $0x250] sm:$0xff]   ;;  %v2470_v36 = vld [vmem:[%s3123_s1 + $0x258] sm:$0xff]  }
  0x20   :  { %2124 = vmatprep.subr.bf16.mxu0 %v2393_v34  ;;  %v2458_v26 = vld [vmem:[%s3123_s1 + $0x2c8] sm:$0xff]   ;;  %v2466_v32 = vld [vmem:[%s3123_s1 + $0x210] sm:$0xff]  }
  0x21   :  { %2099 = vmatpush3.bf16.msra.mxu1 %v2392_v33  ;;  %v2461_v28 = vld [vmem:[%s3123_s1 + $0x288] sm:$0xff]   ;;  %v2467_v33 = vld [vmem:[%s3124_s0 + $0x80] ss:$52 sps:$4 sm:$0xff]  }
  0x22   :  { %1180 = vmatmul.mubr.bf16.vlgmr.msra.gmra.mrb[0].mxu0 %v2389_v31  ;;  %2164 = vmatprep.subr.bf16.mxu1 %v2398_v38  ;;  %v2462_v29 = vld [vmem:[%s3124_s0 + $0x78] ss:$52 sps:$4 sm:$0xff]   ;;  %v2468_v34 = vld [vmem:[%s3123_s1 + $0x2d0] sm:$0xff]  }
  0x23   :  { %2125 = vmatpush3.bf16.msra.mxu0 %v2397_v37  ;;  %1187 = vmatprep.mubr.bf16.mxu0 %v2403_v43  ;;  %v2464_v31 = vld [vmem:[%s3124_s0 + $0x84] ss:$52 sps:$4 sm:$0xff]   ;;  %v2478_v43 = vld [vmem:[%s3124_s0 + $0xec] ss:$52 sps:$4 sm:$0xff]  }
  0x24   :  { %1245 = vmatmul.mubr.bf16.vlgmr.msra.gmra.mrb[0].mxu1 %v2394_v35  ;;  %2126 = vmatprep.subr.bf16.mxu0 %v2400_v40  ;;  %v2469_v35 = vld [vmem:[%s3123_s1 + $0x290] sm:$0xff]   ;;  %v2471_v37 = vld [vmem:[%s3123_s1 + $0x218] sm:$0xff]  }
  0x25   :  { %2165 = vmatpush3.bf16.msra.mxu1 %v2399_v39  ;;  %1252 = vmatprep.mubr.bf16.mxu1 %v2408_v47  ;;  %v2472_v38 = vld [vmem:[%s3123_s1 + $0x2d8] sm:$0xff]   ;;  %v2483_v47 = vld [vmem:[%s3123_s1 + $0x2a0] sm:$0xff]  }
  0x26   :  { %2166 = vmatprep.subr.bf16.mxu1 %v2402_v42  ;;  %v2473_v39 = vld [vmem:[%s3124_s0 + $0xe4] ss:$52 sps:$4 sm:$0xff]  }
  0x27   :  { %2127 = vmatpush3.bf16.msra.mxu0 %v2401_v41  ;;  %v2475_v40 = vld [vmem:[%s3123_s1 + $0x298] sm:$0xff]   ;;  %v2476_v41 = vld [vmem:[%s3124_s0 + $0xe0] ss:$52 sps:$4 sm:$0xff]  }
  0x28   :  { %2128 = vmatprep.subr.bf16.mxu0 %v2407_v46  ;;  %v2477_v42 = vld [vmem:[%s3123_s1 + $0x260] sm:$0xff]  }
  0x29   :  { %2167 = vmatpush3.bf16.msra.mxu1 %v2405_v44  ;;  %v2480_v44 = vld [vmem:[%s3123_s1 + $0x220] sm:$0xff]  }
  0x2a   :  { %1188 = vmatmul.mubr.bf16.gmra.mrb[4].mxu0 %v2406_v45  ;;  %2168 = vmatprep.subr.bf16.mxu1 %v2412_v50  ;;  %v2481_v45 = vld [vmem:[%s3124_s0 + $0xe8] ss:$52 sps:$4 sm:$0xff]   ;;  %v2482_v46 = vld [vmem:[%s3123_s1 + $0x2e0] sm:$0xff]  }
  0x2b   :  { %2129 = vmatpush3.bf16.msra.mxu0 %v2410_v48  ;;  %1195 = vmatprep.mubr.bf16.mxu0 %v2417_v55  ;;  %v2484_v48 = vld [vmem:[%s3123_s1 + $0x268] sm:$0xff]  }
  0x2c   :  { %1253 = vmatmul.mubr.bf16.gmra.mrb[4].mxu1 %v2411_v49  ;;  %2130 = vmatprep.subr.bf16.mxu0 %v2414_v52  ;;  %v2485_v49 = vld [vmem:[%s3123_s1 + $0x228] sm:$0xff]  }
  0x2d   :  { %2169 = vmatpush3.bf16.msra.mxu1 %v2413_v51  ;;  %1260 = vmatprep.mubr.bf16.mxu1 %v2422_v59  ;;  %v2486_v50 = vld [vmem:[%s3123_s1 + $0x2e8] sm:$0xff]   ;;  %v2497_v59 = vld [vmem:[%s3123_s1 + $0x2b0] sm:$0xff]  }
  0x2e   :  { %2170 = vmatprep.subr.bf16.mxu1 %v2416_v54  ;;  %v2487_v51 = vld [vmem:[%s3124_s0 + $0x14c] ss:$52 sps:$4 sm:$0xff]   ;;  %v2491_v54 = vld [vmem:[%s3123_s1 + $0x270] sm:$0xff]  }
  0x2f   :  { %2131 = vmatpush3.bf16.msra.mxu0 %v2415_v53  ;;  %v2489_v52 = vld [vmem:[%s3123_s1 + $0x2a8] sm:$0xff]  }
  0x30   :  { %2132 = vmatprep.subr.bf16.mxu0 %v2421_v58  ;;  %v2490_v53 = vld [vmem:[%s3124_s0 + $0x148] ss:$52 sps:$4 sm:$0xff]   ;;  %v2496_v58 = vld [vmem:[%s3123_s1 + $0x2f0] sm:$0xff]  }
  0x31   :  { %2171 = vmatpush3.bf16.msra.mxu1 %v2419_v56  ;;  %v2492_v55 = vld [vmem:[%s3124_s0 + $0x154] ss:$52 sps:$4 sm:$0xff]  }
  0x32   :  { %1196 = vmatmul.mubr.bf16.gmra.mrb[8].mxu0 %v2420_v57  ;;  %2172 = vmatprep.subr.bf16.mxu1 %v2426_v62  ;;  %v2494_v56 = vld [vmem:[%s3123_s1 + $0x230] sm:$0xff]   ;;  %v2500_v62 = vld [vmem:[%s3123_s1 + $0x2f8] sm:$0xff]  }
  0x33   :  { %2133 = vmatpush3.bf16.msra.mxu0 %v2424_v60  ;;  %1203 = vmatprep.mubr.bf16.mxu0 %v2431_v3  ;;  %v2495_v57 = vld [vmem:[%s3124_s0 + $0x150] ss:$52 sps:$4 sm:$0xff]   ;;  %v2498_v60 = vld [vmem:[%s3123_s1 + $0x278] sm:$0xff]  }
  0x34   :  { %1261 = vmatmul.mubr.bf16.gmra.mrb[8].mxu1 %v2425_v61  ;;  %2134 = vmatprep.subr.bf16.mxu0 %v2428_v0  ;;  %v2499_v61 = vld [vmem:[%s3123_s1 + $0x238] sm:$0xff]  }
  0x35   :  { %2173 = vmatpush3.bf16.msra.mxu1 %v2427_v63  ;;  %1268 = vmatprep.mubr.bf16.mxu1 %v2436_v7  ;;  %v2501_v63 = vld [vmem:[%s3124_s0 + $0x20] ss:$52 sps:$4 sm:$0xff]   ;;  %v2503_v0 = vld [vmem:[%s3124_s0 + $0x24] ss:$52 sps:$4 sm:$0xff]   ;;  %v2506_v3 = vld [vmem:[%s3124_s0 + $0x28] ss:$52 sps:$4 sm:$0xff]  }
  0x36   :  { %2174 = vmatprep.subr.bf16.mxu1 %v2430_v2  ;;  %v2505_v2 = vld [vmem:[%s3123_s1 + $0x300] sm:$0xff]   ;;  %v2511_v7 = vld [vmem:[%s3124_s0 + $0x88] ss:$52 sps:$4 sm:$0xff]  }
  0x37   :  { %2135 = vmatpush3.bf16.msra.mxu0 %v2429_v1  ;;  %v2504_v1 = vld [vmem:[%s3123_s1 + $0x2b8] sm:$0xff]  }
  0x38   :  { %2136 = vmatprep.subr.bf16.mxu0 %v2435_v6  ;;  %v2512_v6 = vld [vmem:[%s3124_s0 + $0x94] ss:$52 sps:$4 sm:$0xff]  }
  0x39   :  { %2175 = vmatpush3.bf16.msra.mxu1 %v2433_v4  ;;  %v2508_v4 = vld [vmem:[%s3124_s0 + $0x2c] ss:$52 sps:$4 sm:$0xff]  }
  0x3a   :  { %1204 = vmatmul.mubr.bf16.gmra.mrb[12].mxu0 %v2434_v5  ;;  %2176 = vmatprep.subr.bf16.mxu1 %v2440_v10  ;;  %v2509_v5 = vld [vmem:[%s3124_s0 + $0x8c] ss:$52 sps:$4 sm:$0xff]   ;;  %v2514_v10 = vld [vmem:[%s3124_s0 + $0x90] ss:$52 sps:$4 sm:$0xff]  }
  0x3b   :  { %2137 = vmatpush3.bf16.msra.mxu0 %v2438_v8  ;;  %1309 = vmatprep.mubr.bf16.mxu0 %v2447_v16  ;;  %v2515_v8 = vld [vmem:[%s3124_s0 + $0xf4] ss:$52 sps:$4 sm:$0xff]   ;;  %v2524_v16 = vld [vmem:[%s3124_s0 + $0x158] ss:$52 sps:$4 sm:$0xff]  }
  0x3c   :  { %1269 = vmatmul.mubr.bf16.gmra.mrb[12].mxu1 %v2439_v9  ;;  %2138 = vmatprep.subr.bf16.mxu0 %v2442_v12  ;;  %v2518_v9 = vld [vmem:[%s3123_s1 + $0x308] sm:$0xff]   ;;  %v2517_v12 = vld [vmem:[%s3124_s0 + $0xf0] ss:$52 sps:$4 sm:$0xff]  }
  0x3d   :  { %2177 = vmatpush3.bf16.msra.mxu1 %v2441_v11  ;;  %1374 = vmatprep.mubr.bf16.mxu1 %v2452_v20  ;;  %v2519_v11 = vld [vmem:[%s3124_s0 + $0xfc] ss:$52 sps:$4 sm:$0xff]   ;;  %v2530_v20 = vld [vmem:[%s3124_s0 + $0x100] ss:$52 sps:$4 sm:$0xff]  }
  0x3e   :  { %2178 = vmatprep.subr.bf16.mxu1 %v2444_v14  ;;  %v2521_v14 = vld [vmem:[%s3124_s0 + $0xf8] ss:$52 sps:$4 sm:$0xff]  }
  0x3f   :  { %2139 = vmatpush3.bf16.msra.mxu0 %v2443_v13  ;;  %v2522_v13 = vld [vmem:[%s3124_s0 + $0x15c] ss:$52 sps:$4 sm:$0xff]  }
  0x40   :  { %2204 = vmatprep.subr.bf16.mxu0 %v2449_v18  ;;  %v2527_v18 = vld [vmem:[%s3124_s0 + $0x160] ss:$52 sps:$4 sm:$0xff]  }
  0x41   :  { %2179 = vmatpush3.bf16.msra.mxu1 %v2448_v17  ;;  %v2528_v17 = vld [vmem:[%s3124_s0 + $0x30] ss:$52 sps:$4 sm:$0xff]  }
  0x42   :  { %1310 = vmatmul.mubr.bf16.vlgmr.msra.gmra.mrb[16].mxu0 %v2445_v15  ;;  %2244 = vmatprep.subr.bf16.mxu1 %v2454_v22  ;;  %v2525_v15 = vld [vmem:[%s3124_s0 + $0x164] ss:$52 sps:$4 sm:$0xff]  }
  0x43   :  { %2205 = vmatpush3.bf16.msra.mxu0 %v2453_v21  ;;  %1317 = vmatprep.mubr.bf16.mxu0 %v2459_v27  ;;  %v2531_v21 = vld [vmem:[%s3124_s0 + $0x168] ss:$52 sps:$4 sm:$0xff]   ;;  %v2532_v22 = vld [vmem:[%s3125_s3] sm:$0xff]  }
  0x44   :  { %1375 = vmatmul.mubr.bf16.vlgmr.msra.gmra.mrb[16].mxu1 %v2450_v19  ;;  %2206 = vmatprep.subr.bf16.mxu0 %v2456_v24  ;;  %v2529_v19 = vld [vmem:[%s3124_s0 + $0x98] ss:$52 sps:$4 sm:$0xff]   ;;  %v2534_v24 = vld [vmem:[%s3125_s3 + $0x10] sm:$0xff]   ;;  %v3045_v27 = vld [vmem:[%s3126_s2] ss:$0 sm:$0xff] }
  0x45   :  { %2245 = vmatpush3.bf16.msra.mxu1 %v2455_v23  ;;  %1382 = vmatprep.mubr.bf16.mxu1 %v2464_v31  ;;  %v2533_v23 = vld [vmem:[%s3125_s3 + $0x8] sm:$0xff]  }
  0x46   :  { %2246 = vmatprep.subr.bf16.mxu1 %v2458_v26 }
  0x47   :  { %2207 = vmatpush3.bf16.msra.mxu0 %v2457_v25  ;;  %v2535_v25 = vld [vmem:[%s3125_s3 + $0x18] sm:$0xff]  }
  0x48   :  { %2208 = vmatprep.subr.bf16.mxu0 %v2463_v30 }
  0x49   :  { %2247 = vmatpush3.bf16.msra.mxu1 %v2461_v28 }
  0x4a   :  { %1318 = vmatmul.mubr.bf16.gmra.mrb[20].mxu0 %v2462_v29  ;;  %2248 = vmatprep.subr.bf16.mxu1 %v2468_v34 }
  0x4b   :  { %2209 = vmatpush3.bf16.msra.mxu0 %v2466_v32  ;;  %1325 = vmatprep.mubr.bf16.mxu0 %v2473_v39 }
  0x4c   :  { %1383 = vmatmul.mubr.bf16.gmra.mrb[20].mxu1 %v2467_v33  ;;  %2210 = vmatprep.subr.bf16.mxu0 %v2470_v36 }
  0x4d   :  { %2249 = vmatpush3.bf16.msra.mxu1 %v2469_v35  ;;  %1390 = vmatprep.mubr.bf16.mxu1 %v2478_v43  ;;  %v3056_v43 = vld [vmem:[%s3127_s5] sm:$0xff]  }
  0x4e   :  { %2250 = vmatprep.subr.bf16.mxu1 %v2472_v38 }
  0x4f   :  { %2211 = vmatpush3.bf16.msra.mxu0 %v2471_v37 }
  0x50   :  { %2212 = vmatprep.subr.bf16.mxu0 %v2477_v42 }
  0x51   :  { %2251 = vmatpush3.bf16.msra.mxu1 %v2475_v40 }
  0x52   :  { %1326 = vmatmul.mubr.bf16.gmra.mrb[24].mxu0 %v2476_v41  ;;  %2252 = vmatprep.subr.bf16.mxu1 %v2482_v46 }
  0x53   :  { %2213 = vmatpush3.bf16.msra.mxu0 %v2480_v44  ;;  %1333 = vmatprep.mubr.bf16.mxu0 %v2487_v51 }
  0x54   :  { %1391 = vmatmul.mubr.bf16.gmra.mrb[24].mxu1 %v2481_v45  ;;  %2214 = vmatprep.subr.bf16.mxu0 %v2484_v48  ;;  %v3061_v45 = vld [vmem:[%s3127_s5 + $0x8] sm:$0xff]  }
  0x55   :  { %2253 = vmatpush3.bf16.msra.mxu1 %v2483_v47  ;;  %1398 = vmatprep.mubr.bf16.mxu1 %v2492_v55 }
  0x56   :  { %2254 = vmatprep.subr.bf16.mxu1 %v2486_v50 }
  0x57   :  { %2215 = vmatpush3.bf16.msra.mxu0 %v2485_v49 }
  0x58   :  { %2216 = vmatprep.subr.bf16.mxu0 %v2491_v54 }
  0x59   :  { %2255 = vmatpush3.bf16.msra.mxu1 %v2489_v52 }
  0x5a   :  { %1334 = vmatmul.mubr.bf16.gmra.mrb[28].mxu0 %v2490_v53  ;;  %2256 = vmatprep.subr.bf16.mxu1 %v2496_v58 }
  0x5b   :  { %2217 = vmatpush3.bf16.msra.mxu0 %v2494_v56  ;;  %1439 = vmatprep.mubr.bf16.mxu0 %v2503_v0 }
  0x5c   :  { %1399 = vmatmul.mubr.bf16.gmra.mrb[28].mxu1 %v2495_v57  ;;  %2218 = vmatprep.subr.bf16.mxu0 %v2498_v60 }
  0x5d   :  { %2257 = vmatpush3.bf16.msra.mxu1 %v2497_v59  ;;  %1504 = vmatprep.mubr.bf16.mxu1 %v2508_v4 }
  0x5e   :  { %2258 = vmatprep.subr.bf16.mxu1 %v2500_v62 }
  0x5f   :  { %2219 = vmatpush3.bf16.msra.mxu0 %v2499_v61 }
  0x60   :  { %2306 = vmatprep.subr.bf16.mxu0 %v2505_v2 }
  0x61   :  { %2259 = vmatpush3.bf16.msra.mxu1 %v2504_v1 }
  0x62   :  { %1440 = vmatmul.mubr.bf16.vlgmr.msra.gmra.mrb[32].mxu0 %v2501_v63  ;;  %2318 = vmatprep.subr.bf16.mxu1 %v2532_v22 }
  0x63   :  { %2307 = vmatpush3.bf16.msra.mxu0 %v2505_v2  ;;  %1447 = vmatprep.mubr.bf16.mxu0 %v2509_v5 }
  0x64   :  { %1505 = vmatmul.mubr.bf16.vlgmr.msra.gmra.mrb[32].mxu1 %v2506_v3  ;;  %2308 = vmatprep.subr.bf16.mxu0 %v2518_v9 }
  0x65   :  { %1512 = vmatprep.mubr.bf16.mxu1 %v2512_v6  ;;  %2319 = vmatpush3.bf16.msra.mxu1 %v2532_v22 }
  0x66   :  { %2320 = vmatprep.subr.bf16.mxu1 %v2533_v23 }
  0x67   :  { %2309 = vmatpush3.bf16.msra.mxu0 %v2518_v9 }
  0x68   :  { %2334 = vmatprep.subr.bf16.mxu0 %v3056_v43 }
  0x69   :  { %2321 = vmatpush3.bf16.msra.mxu1 %v2533_v23 }
  0x6a   :  { %1448 = vmatmul.mubr.bf16.gmra.mrb[36].mxu0 %v2511_v7  ;;  %2322 = vmatprep.subr.bf16.mxu1 %v2534_v24 }
  0x6b   :  { %1455 = vmatprep.mubr.bf16.mxu0 %v2515_v8 }
  0x6c   :  { %1513 = vmatmul.mubr.bf16.gmra.mrb[36].mxu1 %v2514_v10 }
  0x6d   :  { %1520 = vmatprep.mubr.bf16.mxu1 %v2519_v11  ;;  %2323 = vmatpush3.bf16.msra.mxu1 %v2534_v24 }
  0x6e   :  { %2324 = vmatprep.subr.bf16.mxu1 %v2535_v25 }
  0x71   :  { %2325 = vmatpush3.bf16.msra.mxu1 %v2535_v25 }
  0x72   :  { %1456 = vmatmul.mubr.bf16.gmra.mrb[40].mxu0 %v2517_v12  ;;  %2350 = vmatprep.subr.bf16.mxu1 %v3056_v43 }
  0x73   :  { %1463 = vmatprep.mubr.bf16.mxu0 %v2522_v13 }
  0x74   :  { %1521 = vmatmul.mubr.bf16.gmra.mrb[40].mxu1 %v2521_v14 }
  0x75   :  { %1528 = vmatprep.mubr.bf16.mxu1 %v2525_v15 }
  0x7a   :  { %1464 = vmatmul.mubr.bf16.gmra.mrb[44].mxu0 %v2524_v16 }
  0x7b   :  { %2310 = vmatprep.mubr.msk.bf16.mxu0 %vm1134_vm0, %v2528_v17 }
  0x7c   :  { %1529 = vmatmul.mubr.bf16.gmra.mrb[44].mxu1 %v2527_v18 }
  0x82   :  { %2311 = vmatmul.mubr.msk.bf16.vlgmr.msra.gmra.mrb[48].mxu0 %vm1134_vm0, %v2529_v19 }
  0x83   :  { %2314 = vmatprep.mubr.msk.bf16.mxu0 %vm1134_vm0, %v2530_v20  ;;  %2335 = vmatpush3.bf16.msra.mxu0 %v3056_v43 }
  0x84   :  { %2336 = vmatprep.subr.bf16.mxu0 %v3061_v45 }
  0x87   :  { %2337 = vmatpush3.bf16.msra.mxu0 %v3061_v45 }
  0x8a   :  { %2315 = vmatmul.mubr.msk.bf16.gmra.mrb[52].mxu0 %vm1134_vm0, %v2531_v21 }
  0xf5   :  { %v2060_v26 = vpop.f32.mrb[0].mxu0 }
  0xf6   :  { %v2061_v28 = vpop.f32.mrb[1].mxu0 }
  0xf7   :  { %v2062_v29 = vadd.f32 %v2061_v28, %v2060_v26  ;;  %v2063_v30 = vpop.f32.mrb[2].mxu0  ;;  %v2100_v31 = vpop.f32.mrb[0].mxu1 }
  0xf8   :  { %v2064_v32 = vpop.f32.mrb[3].mxu0  ;;  %v2101_v35 = vpop.f32.mrb[1].mxu1 }
  0xf9   :  { %v1182_v33 = vadd.f32 %v2062_v29, %v3045_v27  ;;  %v2065_v34 = vadd.f32 %v2064_v32, %v2063_v30  ;;  %v2102_v36 = vadd.f32 %v2101_v35, %v2100_v31  ;;  %v2103_v37 = vpop.f32.mrb[2].mxu1 }
  0xfa   :  { %v2104_v39 = vpop.f32.mrb[3].mxu1 }
  0xfb   :  { %v1185_v38 = vadd.f32 %v2065_v34, %v3045_v27  ;;  %v3049_v40 = vadd.f32 %v2102_v36, %v1182_v33  ;;  %v2105_v41 = vadd.f32 %v2104_v39, %v2103_v37 }
  0xfd   :  { %v3051_v42 = vadd.f32 %v2105_v41, %v1185_v38  ;;  %v2066_v44 = vpop.f32.mrb[4].mxu0 }
  0xfe   :  { %v2067_v46 = vpop.f32.mrb[5].mxu0 }
  0xff   :  { %v2068_v47 = vadd.f32 %v2067_v46, %v2066_v44  ;;  %v2069_v48 = vpop.f32.mrb[6].mxu0  ;;  %v2106_v51 = vpop.f32.mrb[4].mxu1 }
 0x100   :  { %v2070_v49 = vpop.f32.mrb[7].mxu0  ;;  %v2107_v53 = vpop.f32.mrb[5].mxu1 }
 0x101   :  { %v1190_v50 = vadd.f32 %v2068_v47, %v3045_v27  ;;  %v2071_v52 = vadd.f32 %v2070_v49, %v2069_v48  ;;  %v2108_v55 = vadd.f32 %v2107_v53, %v2106_v51  ;;  %v2109_v56 = vpop.f32.mrb[6].mxu1 }
 0x102   :  { %v2110_v57 = vpop.f32.mrb[7].mxu1 }
 0x103   :  { %v1193_v54 = vadd.f32 %v2071_v52, %v3045_v27  ;;  %v1255_v58 = vadd.f32 %v2108_v55, %v1190_v50  ;;  %v2111_v59 = vadd.f32 %v2110_v57, %v2109_v56 }
 0x105   :  { %v1258_v60 = vadd.f32 %v2111_v59, %v1193_v54  ;;  %v2072_v61 = vpop.f32.mrb[8].mxu0 }
 0x106   :  { %v2073_v62 = vpop.f32.mrb[9].mxu0 }
 0x107   :  { %v2074_v63 = vadd.f32 %v2073_v62, %v2072_v61  ;;  %v2075_v0 = vpop.f32.mrb[10].mxu0  ;;  %v2112_v1 = vpop.f32.mrb[8].mxu1 }
 0x108   :  { %v2076_v2 = vpop.f32.mrb[11].mxu0  ;;  %v2113_v5 = vpop.f32.mrb[9].mxu1 }
 0x109   :  { %v1198_v3 = vadd.f32 %v2074_v63, %v3045_v27  ;;  %v2077_v4 = vadd.f32 %v2076_v2, %v2075_v0  ;;  %v2114_v6 = vadd.f32 %v2113_v5, %v2112_v1  ;;  %v2115_v7 = vpop.f32.mrb[10].mxu1 }
 0x10a   :  { %v2116_v9 = vpop.f32.mrb[11].mxu1 }
 0x10b   :  { %v1201_v8 = vadd.f32 %v2077_v4, %v3045_v27  ;;  %v1263_v10 = vadd.f32 %v2114_v6, %v1198_v3  ;;  %v2117_v11 = vadd.f32 %v2116_v9, %v2115_v7 }
 0x10d   :  { %v1266_v12 = vadd.f32 %v2117_v11, %v1201_v8  ;;  %v2078_v13 = vpop.f32.mrb[12].mxu0 }
 0x10e   :  { %v2079_v14 = vpop.f32.mrb[13].mxu0 }
 0x10f   :  { %v2080_v15 = vadd.f32 %v2079_v14, %v2078_v13  ;;  %v2081_v16 = vpop.f32.mrb[14].mxu0  ;;  %v2118_v17 = vpop.f32.mrb[12].mxu1 }
 0x110   :  { %v2082_v18 = vpop.f32.mrb[15].mxu0  ;;  %v2119_v21 = vpop.f32.mrb[13].mxu1 }
 0x111   :  { %v1206_v19 = vadd.f32 %v2080_v15, %v3045_v27  ;;  %v2083_v20 = vadd.f32 %v2082_v18, %v2081_v16  ;;  %v2120_v22 = vadd.f32 %v2119_v21, %v2118_v17  ;;  %v2121_v23 = vpop.f32.mrb[14].mxu1 }
 0x112   :  { %v2122_v25 = vpop.f32.mrb[15].mxu1 }
 0x113   :  { %v1209_v24 = vadd.f32 %v2083_v20, %v3045_v27  ;;  %v1271_v26 = vadd.f32 %v2120_v22, %v1206_v19  ;;  %v2123_v28 = vadd.f32 %v2122_v25, %v2121_v23 }
 0x115   :  { %v1274_v29 = vadd.f32 %v2123_v28, %v1209_v24  ;;  %v2140_v30 = vpop.f32.mrb[16].mxu0 }
 0x116   :  { %v2141_v31 = vpop.f32.mrb[17].mxu0 }
 0x117   :  { %v2142_v32 = vadd.f32 %v2141_v31, %v2140_v30  ;;  %v2143_v33 = vpop.f32.mrb[18].mxu0  ;;  %v2180_v36 = vpop.f32.mrb[16].mxu1 }
 0x118   :  { %v2144_v34 = vpop.f32.mrb[19].mxu0  ;;  %v2181_v38 = vpop.f32.mrb[17].mxu1 }
 0x119   :  { %v1312_v35 = vadd.f32 %v2142_v32, %v3049_v40  ;;  %v2145_v37 = vadd.f32 %v2144_v34, %v2143_v33  ;;  %v2182_v41 = vadd.f32 %v2181_v38, %v2180_v36  ;;  %v2183_v44 = vpop.f32.mrb[18].mxu1 }
 0x11a   :  { %v2184_v46 = vpop.f32.mrb[19].mxu1 }
 0x11b   :  { %v1315_v39 = vadd.f32 %v2145_v37, %v3051_v42  ;;  %v1377_v27 = vadd.f32 %v2182_v41, %v1312_v35  ;;  %v2185_v47 = vadd.f32 %v2184_v46, %v2183_v44 }
 0x11d   :  { %v1380_v48 = vadd.f32 %v2185_v47, %v1315_v39  ;;  %v2146_v49 = vpop.f32.mrb[20].mxu0 }
 0x11e   :  { %v2147_v50 = vpop.f32.mrb[21].mxu0 }
 0x11f   :  { %v2148_v51 = vadd.f32 %v2147_v50, %v2146_v49  ;;  %v2149_v52 = vpop.f32.mrb[22].mxu0  ;;  %v2186_v53 = vpop.f32.mrb[20].mxu1 }
 0x120   :  { %v2150_v54 = vpop.f32.mrb[23].mxu0  ;;  %v2187_v40 = vpop.f32.mrb[21].mxu1 }
 0x121   :  { %v1320_v55 = vadd.f32 %v2148_v51, %v1255_v58  ;;  %v2151_v56 = vadd.f32 %v2150_v54, %v2149_v52  ;;  %v2188_v57 = vadd.f32 %v2187_v40, %v2186_v53  ;;  %v2189_v59 = vpop.f32.mrb[22].mxu1 }
 0x122   :  { %v2190_v62 = vpop.f32.mrb[23].mxu1 }
 0x123   :  { %v1323_v61 = vadd.f32 %v2151_v56, %v1258_v60  ;;  %v1385_v42 = vadd.f32 %v2188_v57, %v1320_v55  ;;  %v2191_v63 = vadd.f32 %v2190_v62, %v2189_v59 }
 0x125   :  { %v1388_v0 = vadd.f32 %v2191_v63, %v1323_v61  ;;  %v2152_v1 = vpop.f32.mrb[24].mxu0 }
 0x126   :  { %v2153_v2 = vpop.f32.mrb[25].mxu0 }
 0x127   :  { %v2154_v3 = vadd.f32 %v2153_v2, %v2152_v1  ;;  %v2155_v4 = vpop.f32.mrb[26].mxu0  ;;  %v2192_v5 = vpop.f32.mrb[24].mxu1 }
 0x128   :  { %v2156_v6 = vpop.f32.mrb[27].mxu0  ;;  %v2193_v9 = vpop.f32.mrb[25].mxu1 }
 0x129   :  { %v1328_v7 = vadd.f32 %v2154_v3, %v1263_v10  ;;  %v2157_v8 = vadd.f32 %v2156_v6, %v2155_v4  ;;  %v2194_v11 = vadd.f32 %v2193_v9, %v2192_v5  ;;  %v2195_v58 = vpop.f32.mrb[26].mxu1 }
 0x12a   :  { %v2196_v14 = vpop.f32.mrb[27].mxu1 }
 0x12b   :  { %v1331_v13 = vadd.f32 %v2157_v8, %v1266_v12  ;;  %v1393_v15 = vadd.f32 %v2194_v11, %v1328_v7  ;;  %v2197_v16 = vadd.f32 %v2196_v14, %v2195_v58 }
 0x12d   :  { %v1396_v60 = vadd.f32 %v2197_v16, %v1331_v13  ;;  %v2158_v17 = vpop.f32.mrb[28].mxu0 }
 0x12e   :  { %v2159_v18 = vpop.f32.mrb[29].mxu0 }
 0x12f   :  { %v2160_v19 = vadd.f32 %v2159_v18, %v2158_v17  ;;  %v2161_v20 = vpop.f32.mrb[30].mxu0  ;;  %v2198_v23 = vpop.f32.mrb[28].mxu1 }
 0x130   :  { %v2162_v21 = vpop.f32.mrb[31].mxu0  ;;  %v2199_v25 = vpop.f32.mrb[29].mxu1 }
 0x131   :  { %v1336_v22 = vadd.f32 %v2160_v19, %v1271_v26  ;;  %v2163_v24 = vadd.f32 %v2162_v21, %v2161_v20  ;;  %v2200_v10 = vadd.f32 %v2199_v25, %v2198_v23  ;;  %v2201_v30 = vpop.f32.mrb[30].mxu1 }
 0x132   :  { %v2202_v31 = vpop.f32.mrb[31].mxu1 }
 0x133   :  { %v1339_v28 = vadd.f32 %v2163_v24, %v1274_v29  ;;  %v1401_v32 = vadd.f32 %v2200_v10, %v1336_v22  ;;  %v2203_v33 = vadd.f32 %v2202_v31, %v2201_v30 }
 0x135   :  { %v1404_v12 = vadd.f32 %v2203_v33, %v1339_v28  ;;  %v2220_v34 = vpop.f32.mrb[32].mxu0 }
 0x136   :  { %v2221_v35 = vpop.f32.mrb[33].mxu0 }
 0x137   :  { %v2222_v36 = vadd.f32 %v2221_v35, %v2220_v34  ;;  %v2223_v37 = vpop.f32.mrb[34].mxu0  ;;  %v2260_v38 = vpop.f32.mrb[32].mxu1 }
 0x138   :  { %v2224_v39 = vpop.f32.mrb[35].mxu0  ;;  %v2261_v46 = vpop.f32.mrb[33].mxu1 }
 0x139   :  { %v1442_v41 = vadd.f32 %v2222_v36, %v1377_v27  ;;  %v2225_v44 = vadd.f32 %v2224_v39, %v2223_v37  ;;  %v2262_v26 = vadd.f32 %v2261_v46, %v2260_v38  ;;  %v2263_v47 = vpop.f32.mrb[34].mxu1 }
 0x13a   :  { %v2264_v50 = vpop.f32.mrb[35].mxu1 }
 0x13b   :  { %v1445_v49 = vadd.f32 %v2225_v44, %v1380_v48  ;;  %v2265_v29 = vadd.f32 %v2264_v50, %v2263_v47  ;;  %v1507_v51 = vadd.f32 %v2262_v26, %v1442_v41 }
 0x13d   :  { %v2226_v52 = vpop.f32.mrb[36].mxu0  ;;  %v1510_v54 = vadd.f32 %v2265_v29, %v1445_v49 }
 0x13e   :  { %v2227_v53 = vpop.f32.mrb[37].mxu0 }
 0x13f   :  { %v2228_v55 = vadd.f32 %v2227_v53, %v2226_v52  ;;  %v2229_v56 = vpop.f32.mrb[38].mxu0  ;;  %v2266_v40 = vpop.f32.mrb[36].mxu1 }
 0x140   :  { %v2230_v57 = vpop.f32.mrb[39].mxu0  ;;  %v2267_v62 = vpop.f32.mrb[37].mxu1 }
 0x141   :  { %v1450_v59 = vadd.f32 %v2228_v55, %v1385_v42  ;;  %v2231_v61 = vadd.f32 %v2230_v57, %v2229_v56  ;;  %v2268_v63 = vadd.f32 %v2267_v62, %v2266_v40  ;;  %v2269_v27 = vpop.f32.mrb[38].mxu1 }
 0x142   :  { %v2270_v2 = vpop.f32.mrb[39].mxu1 }
 0x143   :  { %v1453_v1 = vadd.f32 %v2231_v61, %v1388_v0  ;;  %v2271_v3 = vadd.f32 %v2270_v2, %v2269_v27  ;;  %v1515_v4 = vadd.f32 %v2268_v63, %v1450_v59 }
 0x145   :  { %v2232_v48 = vpop.f32.mrb[40].mxu0  ;;  %v1518_v6 = vadd.f32 %v2271_v3, %v1453_v1 }
 0x146   :  { %v2233_v5 = vpop.f32.mrb[41].mxu0 }
 0x147   :  { %v2234_v7 = vadd.f32 %v2233_v5, %v2232_v48  ;;  %v2235_v8 = vpop.f32.mrb[42].mxu0  ;;  %v2272_v9 = vpop.f32.mrb[40].mxu1 }
 0x148   :  { %v2236_v11 = vpop.f32.mrb[43].mxu0  ;;  %v2273_v14 = vpop.f32.mrb[41].mxu1 }
 0x149   :  { %v1458_v58 = vadd.f32 %v2234_v7, %v1393_v15  ;;  %v2237_v13 = vadd.f32 %v2236_v11, %v2235_v8  ;;  %v2274_v16 = vadd.f32 %v2273_v14, %v2272_v9  ;;  %v2275_v42 = vpop.f32.mrb[42].mxu1 }
 0x14a   :  { %v2276_v18 = vpop.f32.mrb[43].mxu1 }
 0x14b   :  { %v1461_v17 = vadd.f32 %v2237_v13, %v1396_v60  ;;  %v2277_v19 = vadd.f32 %v2276_v18, %v2275_v42  ;;  %v1523_v20 = vadd.f32 %v2274_v16, %v1458_v58 }
 0x14d   :  { %v2238_v0 = vpop.f32.mrb[44].mxu0  ;;  %v1526_v22 = vadd.f32 %v2277_v19, %v1461_v17 }
 0x14e   :  { %v2239_v21 = vpop.f32.mrb[45].mxu0 }
 0x14f   :  { %v2240_v23 = vadd.f32 %v2239_v21, %v2238_v0  ;;  %v2241_v24 = vpop.f32.mrb[46].mxu0  ;;  %v2278_v25 = vpop.f32.mrb[44].mxu1 }
 0x150   :  { %v2242_v28 = vpop.f32.mrb[47].mxu0  ;;  %v2279_v31 = vpop.f32.mrb[45].mxu1 }
 0x151   :  { %v1466_v10 = vadd.f32 %v2240_v23, %v1401_v32  ;;  %v2243_v30 = vadd.f32 %v2242_v28, %v2241_v24  ;;  %v2280_v33 = vadd.f32 %v2279_v31, %v2278_v25  ;;  %v2281_v15 = vpop.f32.mrb[46].mxu1 }
 0x152   :  { %v2282_v35 = vpop.f32.mrb[47].mxu1 }
 0x153   :  { %v1469_v34 = vadd.f32 %v2243_v30, %v1404_v12  ;;  %v2283_v36 = vadd.f32 %v2282_v35, %v2281_v15  ;;  %v1531_v37 = vadd.f32 %v2280_v33, %v1466_v10 }
 0x155   :  { %v2312_v60 = vpop.f32.mrb[48].mxu0  ;;  %v1534_v41 = vadd.f32 %v2283_v36, %v1469_v34  ;;  %v2035_v34 = vld [vmem:[%s3129_s6] ss:$0 sm:$0xff] }
 0x156   :  { %v1580_v38 = vadd.f32 %v2312_v60, %v1515_v4  ;;  %v1571_v39 = vpop.f32.mrb[49].mxu0  ;;  %v2538_v4 = vld [vmem:[%s3127_s5 + $0x10] sm:$0xff]  }
 0x157   :  { %v1572_v44 = vadd.f32 %v1571_v39, %v1507_v51  ;;  %v2313_v46 = vpop.f32.mrb[50].mxu0  ;;  %2338 = vmatprep.subr.bf16.mxu0 %v2538_v4 }
 0x158   :  { %v1583_v26 = vadd.f32 %v2313_v46, %v1518_v6  ;;  %v1574_v47 = vpop.f32.mrb[51].mxu0  ;;  %v1604_v50 = vmax.f32 %v1580_v38, 0.0  ;;  %2339 = vmatpush3.bf16.msra.mxu0 %v2538_v4 }
 0x159   :  { %v1575_v49 = vadd.f32 %v1574_v47, %v1510_v54  ;;  %v1602_v32 = vmax.f32 %v1572_v44, 0.0 }
 0x15a   :  { %v1605_v29 = vmax.f32 %v1583_v26, 0.0 }
 0x15b   :  { %v1603_v52 = vmax.f32 %v1575_v49, 0.0 }
 0x15c   :  { %v1611_v53 = vpack.c.bf16 %v1605_v29, %v1604_v50 }
 0x15d   :  { %v1610_v55 = vpack.c.bf16 %v1603_v52, %v1602_v32  ;;  %v2316_v12 = vpop.f32.mrb[52].mxu0 }
 0x15e   :  { %v1596_v56 = vadd.f32 %v2316_v12, %v1531_v37  ;;  %v1587_v40 = vpop.f32.mrb[53].mxu0 }
 0x15f   :  { %v1588_v57 = vadd.f32 %v1587_v40, %v1523_v20  ;;  %v2317_v59 = vpop.f32.mrb[54].mxu0  ;;  %2326 = vmatprep.mubr.msk.bf16.mxu1 %vm1653_vm1, %v1610_v55 }
 0x160   :  { %v1599_v61 = vadd.f32 %v2317_v59, %v1534_v41  ;;  %v1590_v51 = vpop.f32.mrb[55].mxu0  ;;  %2327 = vmatmul.mubr.msk.bf16.vlgmr.msra.gmra.mrb[48].mxu1 %vm1653_vm1, %v1611_v53  ;;  %v1608_v54 = vmax.f32 %v1596_v56, 0.0 }
 0x161   :  { %v1591_v62 = vadd.f32 %v1590_v51, %v1526_v22  ;;  %2354 = vmatpush3.bf16.msra.mxu1 %v3056_v43  ;;  %v1606_v27 = vmax.f32 %v1588_v57, 0.0  ;;  %v2539_v43 = vld [vmem:[%s3127_s5 + $0x18] sm:$0xff]  }
 0x162   :  { %v1609_v63 = vmax.f32 %v1599_v61, 0.0  ;;  %2351 = vmatprep.subr.bf16.mxu1 %v3061_v45  ;;  %2340 = vmatprep.subr.bf16.mxu0 %v2539_v43 }
 0x163   :  { %v1607_v1 = vmax.f32 %v1591_v62, 0.0  ;;  %2341 = vmatpush3.bf16.msra.mxu0 %v2539_v43 }
 0x164   :  { %v1613_v2 = vpack.c.bf16 %v1609_v63, %v1608_v54 }
 0x165   :  { %v1612_v3 = vpack.c.bf16 %v1607_v1, %v1606_v27  ;;  %2355 = vmatpush3.bf16.msra.mxu1 %v3061_v45  ;;  %v2026_v45 = vld [vmem:[%s3128_s4] ss:$0 sm:$0xff] }
 0x166   :  { %2352 = vmatprep.subr.bf16.mxu1 %v2538_v4 }
 0x167   :  { %2330 = vmatprep.mubr.msk.bf16.mxu1 %vm1653_vm1, %v1612_v3 }
 0x168   :  { %2331 = vmatmul.mubr.msk.bf16.gmra.mrb[52].mxu1 %vm1653_vm1, %v1613_v2 }
 0x169   :  { %2356 = vmatpush3.bf16.msra.mxu1 %v2538_v4 }
 0x16a   :  { %2353 = vmatprep.subr.bf16.mxu1 %v2539_v43 }
 0x16d   :  { %2357 = vmatpush3.bf16.msra.mxu1 %v2539_v43 }
 0x233   :  { %v2328_v48 = vpop.f32.mrb[48].mxu1 }
 0x234   :  { %v1709_v5 = vadd.f32 %v2328_v48, %v2026_v45  ;;  %v1700_v6 = vpop.f32.mrb[49].mxu1 }
 0x235   :  { %v1701_v7 = vadd.f32 %v2026_v45, %v1700_v6  ;;  %v2329_v8 = vpop.f32.mrb[50].mxu1 }
 0x236   :  { %v1712_v9 = vadd.f32 %v2329_v8, %v2026_v45  ;;  %v1703_v11 = vpop.f32.mrb[51].mxu1  ;;  %v1733_v13 = vmax.f32 %v1709_v5, 0.0 }
 0x237   :  { %v1704_v58 = vadd.f32 %v2026_v45, %v1703_v11  ;;  %v1731_v16 = vmax.f32 %v1701_v7, 0.0 }
 0x238   :  { %v1734_v14 = vmax.f32 %v1712_v9, 0.0 }
 0x239   :  { %v1732_v42 = vmax.f32 %v1704_v58, 0.0 }
 0x23a   :  { %v1740_v17 = vpack.c.bf16 %v1734_v14, %v1733_v13 }
 0x23b   :  { %v1739_v18 = vpack.c.bf16 %v1732_v42, %v1731_v16  ;;  %v2332_v19 = vpop.f32.mrb[52].mxu1 }
 0x23c   :  { %v1725_v20 = vadd.f32 %v2332_v19, %v2026_v45  ;;  %v1716_v0 = vpop.f32.mrb[53].mxu1 }
 0x23d   :  { %v1717_v21 = vadd.f32 %v2026_v45, %v1716_v0  ;;  %v2333_v22 = vpop.f32.mrb[54].mxu1  ;;  %2342 = vmatprep.mubr.msk.bf16.mxu0 %vm1653_vm1, %v1739_v18 }
 0x23e   :  { %v1728_v23 = vadd.f32 %v2333_v22, %v2026_v45  ;;  %v1719_v24 = vpop.f32.mrb[55].mxu1  ;;  %2343 = vmatmul.mubr.msk.bf16.vlgmr.msra.gmra.mrb[56].mxu0 %vm1653_vm1, %v1740_v17  ;;  %v1737_v28 = vmax.f32 %v1725_v20, 0.0 }
 0x23f   :  { %v1720_v25 = vadd.f32 %v2026_v45, %v1719_v24  ;;  %v1735_v30 = vmax.f32 %v1717_v21, 0.0 }
 0x240   :  { %v1738_v10 = vmax.f32 %v1728_v23, 0.0 }
 0x241   :  { %v1736_v31 = vmax.f32 %v1720_v25, 0.0 }
 0x242   :  { %v1742_v33 = vpack.c.bf16 %v1738_v10, %v1737_v28 }
 0x243   :  { %v1741_v15 = vpack.c.bf16 %v1736_v31, %v1735_v30 }
 0x245   :  { %2346 = vmatprep.mubr.msk.bf16.mxu1 %vm1653_vm1, %v1741_v15 }
 0x246   :  { %2347 = vmatmul.mubr.msk.bf16.vlgmr.msra.gmra.mrb[56].mxu1 %vm1653_vm1, %v1742_v33 }
 0x311   :  { %v2344_v35 = vpop.f32.mrb[56].mxu0 }
 0x312   :  { %v1837_v36 = vadd.f32 %v2344_v35, %v2035_v34  ;;  %v1828_v37 = vpop.f32.mrb[57].mxu0 }
 0x313   :  { %v1829_v60 = vadd.f32 %v2035_v34, %v1828_v37  ;;  %v2345_v38 = vpop.f32.mrb[58].mxu0 }
 0x314   :  { %1861 = vst [vmem:[%s3130_s7 + $0x10] sm:$0xff] %v1837_v36  ;;  %v1840_v39 = vadd.f32 %v2345_v38, %v2035_v34  ;;  %v1831_v41 = vpop.f32.mrb[59].mxu0 }
 0x315   :  { %1859 = vst [vmem:[%s3130_s7] sm:$0xff] %v1829_v60  ;;  %v1832_v44 = vadd.f32 %v2035_v34, %v1831_v41 }
 0x316   :  { %1862 = vst [vmem:[%s3130_s7 + $0x18] sm:$0xff] %v1840_v39 }
 0x317   :  { %1860 = vst [vmem:[%s3130_s7 + $0x8] sm:$0xff] %v1832_v44 }
 0x319   :  { %v2348_v46 = vpop.f32.mrb[56].mxu1 }
 0x31a   :  { %v1853_v26 = vadd.f32 %v2348_v46, %v2035_v34  ;;  %v1844_v47 = vpop.f32.mrb[57].mxu1 }
 0x31b   :  { %v1845_v49 = vadd.f32 %v2035_v34, %v1844_v47  ;;  %v2349_v50 = vpop.f32.mrb[58].mxu1 }
 0x31c   :  { %1865 = vst [vmem:[%s3130_s7 + $0x30] sm:$0xff] %v1853_v26  ;;  %v1856_v29 = vadd.f32 %v2349_v50, %v2035_v34  ;;  %v1847_v32 = vpop.f32.mrb[59].mxu1 }
 0x31d   :  { %1863 = vst [vmem:[%s3130_s7 + $0x20] sm:$0xff] %v1845_v49  ;;  %v1848_v52 = vadd.f32 %v2035_v34, %v1847_v32 }
 0x31e   :  { %1866 = vst [vmem:[%s3130_s7 + $0x38] sm:$0xff] %v1856_v29 }
 0x31f   :  { %1864 = vst [vmem:[%s3130_s7 + $0x28] sm:$0xff] %v1848_v52 }

</bundles_post_ra>
